<compile_context>
chip_gen: v7x
topology: tpu7x:2x2x1
jax: 0.10.0
libtpu: 0.0.40
codegen_flags: <defaults>
</compile_context>

<pallas_src>
import math

import jax
import jax.numpy as jnp
import numpy as np
from jax.experimental import pallas as pl
from jax.experimental.pallas import tpu as pltpu


def _conv_stats_kernel(xd_ref, w_ref, y_ref, sum_ref, ssq_ref):
    """Conv 3x3 (pad=1) at the four 2x2-pool offsets + per-tile BN sum / sumsq.

    xd_ref : (Mt, 4*(Ht+1), Wh, Cin) bf16 parity-decomposed padded input tile
    w_ref  : (9, Cin, Ct)            bf16 conv weights, tap index = kh*3 + kw
    y_ref  : (Mt, 4*Ht, Wp, Ct)      bf16 conv output, row = (dh*2+dw)*Ht + i
    sum_ref: (1, 1, Ct)              f32 per-tile per-channel sum
    ssq_ref: (1, 1, Ct)              f32 per-tile per-channel sum-of-squares
    """
    Mt, four_hh, Wh, Cin = xd_ref.shape
    Hh = four_hh // 4
    Ht, Wp = Hh - 1, Wh - 1
    N = Mt * Ht * Wp
    Ct = w_ref.shape[-1]
    f32 = jnp.float32

    # Hoist the 9 weight-tap loads out of the slab loops.
    w_taps = [w_ref[t] for t in range(9)]

    # One f32 accumulator per 2x2-pool offset; each of the 16 unique parity slabs
    # is sliced/reshaped once and fed straight to the MXU as K=Cin matmuls
    # (no im2col scratch, no extra vector-store traffic).
    accs = [jnp.zeros((N, Ct), f32) for _ in range(4)]
    for ph in range(2):
        for oi in range(2):
            for pw in range(2):
                for oj in range(2):
                    p = ph * 2 + pw
                    xs = xd_ref[:, pl.ds(p * Hh + oi, Ht), pl.ds(oj, Wp), :]
                    xs = xs.reshape(N, Cin)
                    for dh in range(2):
                        kh = 2 * oi + ph - dh          # from dh + kh = 2*oi + ph
                        if not 0 <= kh <= 2:
                            continue
                        for dw in range(2):
                            kw = 2 * oj + pw - dw      # from dw + kw = 2*oj + pw
                            if not 0 <= kw <= 2:
                                continue
                            off = dh * 2 + dw
                            accs[off] = accs[off] + jnp.dot(
                                xs, w_taps[kh * 3 + kw],
                                preferred_element_type=f32)

    part_sum = jnp.zeros((1, Ct), f32)
    part_ssq = jnp.zeros((1, Ct), f32)
    for off in range(4):
        acc = accs[off]
        part_sum = part_sum + jnp.sum(acc, axis=0, keepdims=True)
        part_ssq = part_ssq + jnp.sum(acc * acc, axis=0, keepdims=True)
        # bf16 intermediate halves the dominant HBM stream; stats above stay f32.
        y_ref[:, pl.ds(off * Ht, Ht), :, :] = (
            acc.reshape(Mt, Ht, Wp, Ct).astype(y_ref.dtype))

    sum_ref[...] = part_sum.reshape(sum_ref.shape)
    ssq_ref[...] = part_ssq.reshape(ssq_ref.shape)


def _bn_relu_pool_kernel(y_ref, scale_ref, shift_ref, o_ref):
    """BN affine (global batch stats) + ReLU + 2x2 max-pool.

    y_ref    : (Mt, 4*Ht, Wp, Ct) bf16 conv output, row = (dh*2+dw)*Ht + i
    scale_ref: (1, Ct)            f32 gamma * rsqrt(var + eps)
    shift_ref: (1, Ct)            f32 beta - mean * scale
    o_ref    : (Mt, Ht, Wp, Ct)   f32 pooled output
    """
    Mt, four_ht, Wp, Ct = y_ref.shape
    Ht = four_ht // 4
    scale = scale_ref[...]                     # hoisted out of the offset loop
    shift = shift_ref[...]

    pooled = None
    for off in range(4):
        z = y_ref[:, pl.ds(off * Ht, Ht), :, :].astype(jnp.float32) * scale + shift
        z = jnp.maximum(z, 0.0)
        pooled = z if pooled is None else jnp.maximum(pooled, z)
    o_ref[...] = pooled.astype(o_ref.dtype)


def _vmem_config():
    """(vmem_limit_bytes, block-sizing budget) derived from the actual part."""
    cap = 64 * 1024 * 1024
    try:
        info = pltpu.get_tpu_info()
        cap = int(getattr(info, "vmem_capacity_bytes", cap))
    except Exception:
        pass
    if cap >= 96 * 1024 * 1024:            # v5e / v6e: 128 MiB physical
        limit = 100 * 1024 * 1024
    else:                                  # v7x: 64 MiB per TensorCore
        limit = 48 * 1024 * 1024
    return limit, limit - 8 * 1024 * 1024


def _pick_tiles(B, Hp, Wp, Cin, Cout, budget):
    """Pick (leading-axis tile Mt, pooled-row tile Ht, Cout tile Ct) under budget."""
    if Cout % 256 == 0:
        ct = 256                           # fills the 256-wide v6e/v7x MXU
    elif Cout % 128 == 0:
        ct = 128                           # lane-dense
    else:
        ct = Cout
    Wh = Wp + 1

    def blk_bytes(mt, ht):
        n = mt * ht * Wp
        xd = mt * 4 * (ht + 1) * Wh * Cin * 2       # bf16 input block
        y = mt * 4 * ht * Wp * ct * 2               # bf16 conv-output block
        w = 9 * Cin * ct * 2                        # bf16 weight block
        acc = 4 * n * ct * 4                        # 4 live f32 offset accumulators
        slab = 2 * n * Cin * 2                      # live bf16 parity slabs
        a_bytes = 2 * (xd + y) + 2 * w + acc + slab  # x2: double-buffered pipeline
        out = mt * ht * Wp * ct * 4                 # f32 pooled output (kernel B)
        b_bytes = 2 * (y + out) + 2 * n * ct * 4
        return max(a_bytes, b_bytes)

    ht = 1
    for cand in range(1, Hp + 1):
        if Hp % cand == 0 and blk_bytes(1, cand) <= budget:
            ht = cand
    m_total = B * (Hp // ht)

    mt = 1
    for cand in range(1, m_total + 1):
        if m_total % cand == 0 and blk_bytes(cand, ht) <= budget:
            mt = cand

    # v7x megacore: keep a parallel grid extent >= 2 when the problem allows it.
    if (m_total // mt) * (Cout // ct) < 2 and mt > 1 and mt % 2 == 0:
        mt //= 2
    return mt, ht, ct


def conv_block_forward(x_nchw, w_oihw, bias, gamma, beta):
    """ConvBlock forward.  x_nchw: (B, Cin, H, W) -> (B, Cout, H//2, W//2)."""
    # Under training-mode BatchNorm the per-channel conv bias cancels exactly in the
    # forward output (mean subtraction removes it), so it is not fed to the kernels.
    del bias
    B, Cin, H, W = x_nchw.shape
    assert H % 2 == 0 and W % 2 == 0, "MaxPool2d(2) path assumes even spatial dims"
    Cout = w_oihw.shape[0]
    Hp, Wp = H // 2, W // 2
    Hh, Wh = Hp + 1, Wp + 1

    vmem_limit, budget = _vmem_config()
    Mt, Ht, Ct = _pick_tiles(B, Hp, Wp, Cin, Cout, budget)
    n_r = Hp // Ht
    M = B * n_r
    n_mt = M // Mt
    n_co = Cout // Ct

    # ---- layout prep (bf16 to halve the HBM traffic of these passes) ----
    x = jnp.transpose(x_nchw.astype(jnp.bfloat16), (0, 2, 3, 1))     # NHWC
    x = jnp.pad(x, ((0, 0), (1, 1), (1, 1), (0, 0)))                 # padding=1
    # Parity-decompose: xp[b, ph, pw, i, j, c] = x_pad[b, 2i+ph, 2j+pw, c]
    xp = x.reshape(B, Hh, 2, Wh, 2, Cin).transpose(0, 2, 4, 1, 3, 5)  # (B,2,2,Hh,Wh,Cin)
    if n_r == 1:
        xd = xp.reshape(B, 4 * Hh, Wh, Cin)
    else:
        # Row tiles with a 1-row halo per parity, so BlockSpecs stay non-overlapping.
        idx = jnp.arange(n_r)[:, None] * Ht + jnp.arange(Ht + 1)[None, :]
        xd = xp[:, :, :, idx, :, :]                                   # (B,2,2,n_r,Ht+1,Wh,Cin)
        xd = xd.transpose(0, 3, 1, 2, 4, 5, 6).reshape(M, 4 * (Ht + 1), Wh, Cin)

    # OIHW -> (9, Cin, Cout), tap index = kh*3 + kw.
    w_k = jnp.transpose(w_oihw, (2, 3, 1, 0)).reshape(9, Cin, Cout).astype(jnp.bfloat16)

    # ---- kernel A: conv at the four pool offsets (bf16 out) + per-tile sum/sumsq ----
    y, csum, cssq = pl.pallas_call(
        _conv_stats_kernel,
        out_shape=(
            jax.ShapeDtypeStruct((M, 4 * Ht, Wp, Cout), jnp.bfloat16),
            jax.ShapeDtypeStruct((n_mt, 1, Cout), jnp.float32),
            jax.ShapeDtypeStruct((n_mt, 1, Cout), jnp.float32),
        ),
        grid_spec=pltpu.PrefetchScalarGridSpec(
            num_scalar_prefetch=0,
            grid=(n_mt, n_co),   # tile axis OUTER: input block resident across ci
            in_specs=[
                pl.BlockSpec((Mt, 4 * (Ht + 1), Wh, Cin), lambda mi, ci: (mi, 0, 0, 0)),
                pl.BlockSpec((9, Cin, Ct), lambda mi, ci: (0, 0, ci)),
            ],
            out_specs=[
                pl.BlockSpec((Mt, 4 * Ht, Wp, Ct), lambda mi, ci: (mi, 0, 0, ci)),
                pl.BlockSpec((1, 1, Ct), lambda mi, ci: (mi, 0, ci)),
                pl.BlockSpec((1, 1, Ct), lambda mi, ci: (mi, 0, ci)),
            ],
        ),
        compiler_params=pltpu.CompilerParams(
            dimension_semantics=("parallel", "parallel"),
            vmem_limit_bytes=vmem_limit),
    )(xd, w_k)

    # ---- per-channel BN affine from GLOBAL batch statistics (training-mode BN) ----
    # Per-tile partials combined with the parallel-variance form (better conditioned
    # than a single global ssq - mean^2).  f32 throughout.
    # TODO(synk): running_mean/running_var buffer updates (training side effect) are
    # not materialized; they do not affect the forward output.
    n_per = jnp.float32(Mt * Ht * Wp * 4)
    total = jnp.float32(B * H * W)
    s = csum[:, 0, :]                                 # (n_mt, Cout)
    q = cssq[:, 0, :]
    mean_t = s / n_per
    m2_t = jnp.maximum(q - s * mean_t, 0.0)
    mean = jnp.sum(s, axis=0) / total                 # (Cout,)
    m2 = jnp.sum(m2_t, axis=0) + jnp.sum(n_per * (mean_t - mean[None, :]) ** 2, axis=0)
    var = m2 / total
    scale = gamma.astype(jnp.float32) * jax.lax.rsqrt(var + 1e-5)
    shift = beta.astype(jnp.float32) - mean * scale
    scale2 = scale.reshape(1, Cout)
    shift2 = shift.reshape(1, Cout)

    # ---- kernel B: BN affine + ReLU + 2x2 max-pool ----
    out_nhwc = pl.pallas_call(
        _bn_relu_pool_kernel,
        out_shape=jax.ShapeDtypeStruct((M, Ht, Wp, Cout), jnp.float32),
        grid_spec=pltpu.PrefetchScalarGridSpec(
            num_scalar_prefetch=0,
            grid=(n_mt, n_co),
            in_specs=[
                pl.BlockSpec((Mt, 4 * Ht, Wp, Ct), lambda mi, ci: (mi, 0, 0, ci)),
                pl.BlockSpec((1, Ct), lambda mi, ci: (0, ci)),
                pl.BlockSpec((1, Ct), lambda mi, ci: (0, ci)),
            ],
            out_specs=pl.BlockSpec((Mt, Ht, Wp, Ct), lambda mi, ci: (mi, 0, 0, ci)),
        ),
        compiler_params=pltpu.CompilerParams(
            dimension_semantics=("parallel", "parallel"),
            vmem_limit_bytes=vmem_limit),
    )(y, scale2, shift2)

    out = out_nhwc.reshape(B, n_r, Ht, Wp, Cout).reshape(B, Hp, Wp, Cout)
    return jnp.transpose(out, (0, 3, 1, 2))           # back to NCHW


def _reference(x, w, b, gamma, beta):
    """Pure-JAX reference matching PyTorch semantics (training-mode BN)."""
    y = jax.lax.conv_general_dilated(
        x, w, window_strides=(1, 1), padding=((1, 1), (1, 1)),
        dimension_numbers=("NCHW", "OIHW", "NCHW"),
        precision=jax.lax.Precision.HIGHEST)
    y = y + b.reshape(1, -1, 1, 1)
    mean = y.mean(axis=(0, 2, 3), keepdims=True)
    var = ((y - mean) ** 2).mean(axis=(0, 2, 3), keepdims=True)
    y = (y - mean) * jax.lax.rsqrt(var + 1e-5)
    y = y * gamma.reshape(1, -1, 1, 1) + beta.reshape(1, -1, 1, 1)
    y = jnp.maximum(y, 0.0)
    B, C, H, W = y.shape
    return y.reshape(B, C, H // 2, 2, W // 2, 2).max(axis=(3, 5))


if __name__ == "__main__":
    B, Cin, Cout, H, W = 2, 4, 8, 16, 16

    key = jax.random.PRNGKey(0)
    kx, kw, kb = jax.random.split(key, 3)

    x = jax.random.normal(kx, (B, Cin, H, W), dtype=jnp.float32)

    # init_layer: conv weight ~ N(0, sqrt(2 / (3*3*outdim))); conv bias keeps the
    # default PyTorch uniform(-1/sqrt(fan_in), 1/sqrt(fan_in)) init.
    n = 3 * 3 * Cout
    w = jax.random.normal(kw, (Cout, Cin, 3, 3), dtype=jnp.float32) * math.sqrt(2.0 / n)
    kbound = 1.0 / math.sqrt(Cin * 3 * 3)
    b = jax.random.uniform(kb, (Cout,), minval=-kbound, maxval=kbound, dtype=jnp.float32)

    # init_layer: BN weight = 1, bias = 0.
    gamma = jnp.ones((Cout,), jnp.float32)
    beta = jnp.zeros((Cout,), jnp.float32)

    out = jax.jit(conv_block_forward)(x, w, b, gamma, beta)
    out = jax.block_until_ready(out)

    ref = _reference(x, w, b, gamma, beta)
    # bf16 matmul operands + bf16 conv intermediate (f32 stats / accumulation) vs an
    # f32 HIGHEST-precision reference.
    np.testing.assert_allclose(np.asarray(out), np.asarray(ref), atol=3e-2, rtol=3e-2)

    print("KERNEL_OK")
</pallas_src>

<mosaic_0001>
module attributes {stable_mosaic.version = 11 : i64} {
  func.func @_conv_stats_kernel(%arg0: i32, %arg1: i32, %arg2: memref<1x36x9x4xbf16, #tpu.memory_space<vmem>>, %arg3: memref<9x4x8xbf16, #tpu.memory_space<vmem>>, %arg4: memref<1x32x8x8xbf16, #tpu.memory_space<vmem>>, %arg5: memref<1x1x8xf32, #tpu.memory_space<vmem>>, %arg6: memref<1x1x8xf32, #tpu.memory_space<vmem>>) attributes {dimension_semantics = [#tpu.dimension_semantics<parallel>, #tpu.dimension_semantics<parallel>], iteration_bounds = array<i64: 2, 1>, scalar_prefetch = 0 : i64, scratch_operands = 0 : i64, tpu.core_type = #tpu.core_type<tc>, window_params = [{transform_indices = @transform_0, window_bounds = array<i64: 1, 36, 9, 4>}, {transform_indices = @transform_1, window_bounds = array<i64: 9, 4, 8>}, {transform_indices = @transform_2, window_bounds = array<i64: 1, 32, 8, 8>}, {transform_indices = @transform_3, window_bounds = array<i64: 1, 1, 8>}, {transform_indices = @transform_4, window_bounds = array<i64: 1, 1, 8>}]} {
    %c0 = arith.constant 0 : index
    %c0_0 = arith.constant 0 : index
    %c0_1 = arith.constant 0 : index
    %0 = vector.load %arg3[%c0, %c0_0, %c0_1] : memref<9x4x8xbf16, #tpu.memory_space<vmem>>, vector<1x4x8xbf16>
    %1 = vector.shape_cast %0 : vector<1x4x8xbf16> to vector<4x8xbf16>
    %c1 = arith.constant 1 : index
    %c0_2 = arith.constant 0 : index
    %c0_3 = arith.constant 0 : index
    %2 = vector.load %arg3[%c1, %c0_2, %c0_3] : memref<9x4x8xbf16, #tpu.memory_space<vmem>>, vector<1x4x8xbf16>
    %3 = vector.shape_cast %2 : vector<1x4x8xbf16> to vector<4x8xbf16>
    %c2 = arith.constant 2 : index
    %c0_4 = arith.constant 0 : index
    %c0_5 = arith.constant 0 : index
    %4 = vector.load %arg3[%c2, %c0_4, %c0_5] : memref<9x4x8xbf16, #tpu.memory_space<vmem>>, vector<1x4x8xbf16>
    %5 = vector.shape_cast %4 : vector<1x4x8xbf16> to vector<4x8xbf16>
    %c3 = arith.constant 3 : index
    %c0_6 = arith.constant 0 : index
    %c0_7 = arith.constant 0 : index
    %6 = vector.load %arg3[%c3, %c0_6, %c0_7] : memref<9x4x8xbf16, #tpu.memory_space<vmem>>, vector<1x4x8xbf16>
    %7 = vector.shape_cast %6 : vector<1x4x8xbf16> to vector<4x8xbf16>
    %c4 = arith.constant 4 : index
    %c0_8 = arith.constant 0 : index
    %c0_9 = arith.constant 0 : index
    %8 = vector.load %arg3[%c4, %c0_8, %c0_9] : memref<9x4x8xbf16, #tpu.memory_space<vmem>>, vector<1x4x8xbf16>
    %9 = vector.shape_cast %8 : vector<1x4x8xbf16> to vector<4x8xbf16>
    %c5 = arith.constant 5 : index
    %c0_10 = arith.constant 0 : index
    %c0_11 = arith.constant 0 : index
    %10 = vector.load %arg3[%c5, %c0_10, %c0_11] : memref<9x4x8xbf16, #tpu.memory_space<vmem>>, vector<1x4x8xbf16>
    %11 = vector.shape_cast %10 : vector<1x4x8xbf16> to vector<4x8xbf16>
    %c6 = arith.constant 6 : index
    %c0_12 = arith.constant 0 : index
    %c0_13 = arith.constant 0 : index
    %12 = vector.load %arg3[%c6, %c0_12, %c0_13] : memref<9x4x8xbf16, #tpu.memory_space<vmem>>, vector<1x4x8xbf16>
    %13 = vector.shape_cast %12 : vector<1x4x8xbf16> to vector<4x8xbf16>
    %c7 = arith.constant 7 : index
    %c0_14 = arith.constant 0 : index
    %c0_15 = arith.constant 0 : index
    %14 = vector.load %arg3[%c7, %c0_14, %c0_15] : memref<9x4x8xbf16, #tpu.memory_space<vmem>>, vector<1x4x8xbf16>
    %15 = vector.shape_cast %14 : vector<1x4x8xbf16> to vector<4x8xbf16>
    %c8 = arith.constant 8 : index
    %c0_16 = arith.constant 0 : index
    %c0_17 = arith.constant 0 : index
    %16 = vector.load %arg3[%c8, %c0_16, %c0_17] : memref<9x4x8xbf16, #tpu.memory_space<vmem>>, vector<1x4x8xbf16>
    %17 = vector.shape_cast %16 : vector<1x4x8xbf16> to vector<4x8xbf16>
    %cst = arith.constant 0.000000e+00 : f32
    %18 = vector.broadcast %cst : f32 to vector<64x8xf32>
    %cst_18 = arith.constant 0.000000e+00 : f32
    %19 = vector.broadcast %cst_18 : f32 to vector<64x8xf32>
    %cst_19 = arith.constant 0.000000e+00 : f32
    %20 = vector.broadcast %cst_19 : f32 to vector<64x8xf32>
    %cst_20 = arith.constant 0.000000e+00 : f32
    %21 = vector.broadcast %cst_20 : f32 to vector<64x8xf32>
    %c0_21 = arith.constant 0 : index
    %c0_22 = arith.constant 0 : index
    %c0_23 = arith.constant 0 : index
    %c0_24 = arith.constant 0 : index
    %22 = vector.load %arg2[%c0_21, %c0_22, %c0_23, %c0_24] : memref<1x36x9x4xbf16, #tpu.memory_space<vmem>>, vector<1x8x8x4xbf16>
    %23 = vector.shape_cast %22 : vector<1x8x8x4xbf16> to vector<64x4xbf16>
    %cst_25 = arith.constant dense<0.000000e+00> : vector<64x8xf32>
    %24 = tpu.matmul %23, %1, %cst_25 {dimension_numbers = #tpu.dot_dimension_numbers<[1], [0], [0], [1], [0, 0, 1, 1], [], []>} : vector<64x4xbf16>, vector<4x8xbf16>, vector<64x8xf32> -> vector<64x8xf32>
    %25 = arith.addf %18, %24 : vector<64x8xf32>
    %c0_26 = arith.constant 0 : index
    %c0_27 = arith.constant 0 : index
    %c1_28 = arith.constant 1 : index
    %c0_29 = arith.constant 0 : index
    %26 = vector.load %arg2[%c0_26, %c0_27, %c1_28, %c0_29] : memref<1x36x9x4xbf16, #tpu.memory_space<vmem>>, vector<1x8x8x4xbf16>
    %27 = vector.shape_cast %26 : vector<1x8x8x4xbf16> to vector<64x4xbf16>
    %cst_30 = arith.constant dense<0.000000e+00> : vector<64x8xf32>
    %28 = tpu.matmul %27, %5, %cst_30 {dimension_numbers = #tpu.dot_dimension_numbers<[1], [0], [0], [1], [0, 0, 1, 1], [], []>} : vector<64x4xbf16>, vector<4x8xbf16>, vector<64x8xf32> -> vector<64x8xf32>
    %29 = arith.addf %25, %28 : vector<64x8xf32>
    %cst_31 = arith.constant dense<0.000000e+00> : vector<64x8xf32>
    %30 = tpu.matmul %27, %3, %cst_31 {dimension_numbers = #tpu.dot_dimension_numbers<[1], [0], [0], [1], [0, 0, 1, 1], [], []>} : vector<64x4xbf16>, vector<4x8xbf16>, vector<64x8xf32> -> vector<64x8xf32>
    %31 = arith.addf %19, %30 : vector<64x8xf32>
    %c0_32 = arith.constant 0 : index
    %c9 = arith.constant 9 : index
    %c0_33 = arith.constant 0 : index
    %c0_34 = arith.constant 0 : index
    %32 = vector.load %arg2[%c0_32, %c9, %c0_33, %c0_34] : memref<1x36x9x4xbf16, #tpu.memory_space<vmem>>, vector<1x8x8x4xbf16>
    %33 = vector.shape_cast %32 : vector<1x8x8x4xbf16> to vector<64x4xbf16>
    %cst_35 = arith.constant dense<0.000000e+00> : vector<64x8xf32>
    %34 = tpu.matmul %33, %3, %cst_35 {dimension_numbers = #tpu.dot_dimension_numbers<[1], [0], [0], [1], [0, 0, 1, 1], [], []>} : vector<64x4xbf16>, vector<4x8xbf16>, vector<64x8xf32> -> vector<64x8xf32>
    %35 = arith.addf %29, %34 : vector<64x8xf32>
    %cst_36 = arith.constant dense<0.000000e+00> : vector<64x8xf32>
    %36 = tpu.matmul %33, %1, %cst_36 {dimension_numbers = #tpu.dot_dimension_numbers<[1], [0], [0], [1], [0, 0, 1, 1], [], []>} : vector<64x4xbf16>, vector<4x8xbf16>, vector<64x8xf32> -> vector<64x8xf32>
    %37 = arith.addf %31, %36 : vector<64x8xf32>
    %c0_37 = arith.constant 0 : index
    %c9_38 = arith.constant 9 : index
    %c1_39 = arith.constant 1 : index
    %c0_40 = arith.constant 0 : index
    %38 = vector.load %arg2[%c0_37, %c9_38, %c1_39, %c0_40] : memref<1x36x9x4xbf16, #tpu.memory_space<vmem>>, vector<1x8x8x4xbf16>
    %39 = vector.shape_cast %38 : vector<1x8x8x4xbf16> to vector<64x4xbf16>
    %cst_41 = arith.constant dense<0.000000e+00> : vector<64x8xf32>
    %40 = tpu.matmul %39, %5, %cst_41 {dimension_numbers = #tpu.dot_dimension_numbers<[1], [0], [0], [1], [0, 0, 1, 1], [], []>} : vector<64x4xbf16>, vector<4x8xbf16>, vector<64x8xf32> -> vector<64x8xf32>
    %41 = arith.addf %37, %40 : vector<64x8xf32>
    %c0_42 = arith.constant 0 : index
    %c1_43 = arith.constant 1 : index
    %c0_44 = arith.constant 0 : index
    %c0_45 = arith.constant 0 : index
    %42 = vector.load %arg2[%c0_42, %c1_43, %c0_44, %c0_45] : memref<1x36x9x4xbf16, #tpu.memory_space<vmem>>, vector<1x8x8x4xbf16>
    %43 = vector.shape_cast %42 : vector<1x8x8x4xbf16> to vector<64x4xbf16>
    %cst_46 = arith.constant dense<0.000000e+00> : vector<64x8xf32>
    %44 = tpu.matmul %43, %13, %cst_46 {dimension_numbers = #tpu.dot_dimension_numbers<[1], [0], [0], [1], [0, 0, 1, 1], [], []>} : vector<64x4xbf16>, vector<4x8xbf16>, vector<64x8xf32> -> vector<64x8xf32>
    %45 = arith.addf %35, %44 : vector<64x8xf32>
    %cst_47 = arith.constant dense<0.000000e+00> : vector<64x8xf32>
    %46 = tpu.matmul %43, %7, %cst_47 {dimension_numbers = #tpu.dot_dimension_numbers<[1], [0], [0], [1], [0, 0, 1, 1], [], []>} : vector<64x4xbf16>, vector<4x8xbf16>, vector<64x8xf32> -> vector<64x8xf32>
    %47 = arith.addf %20, %46 : vector<64x8xf32>
    %c0_48 = arith.constant 0 : index
    %c1_49 = arith.constant 1 : index
    %c1_50 = arith.constant 1 : index
    %c0_51 = arith.constant 0 : index
    %48 = vector.load %arg2[%c0_48, %c1_49, %c1_50, %c0_51] : memref<1x36x9x4xbf16, #tpu.memory_space<vmem>>, vector<1x8x8x4xbf16>
    %49 = vector.shape_cast %48 : vector<1x8x8x4xbf16> to vector<64x4xbf16>
    %cst_52 = arith.constant dense<0.000000e+00> : vector<64x8xf32>
    %50 = tpu.matmul %49, %17, %cst_52 {dimension_numbers = #tpu.dot_dimension_numbers<[1], [0], [0], [1], [0, 0, 1, 1], [], []>} : vector<64x4xbf16>, vector<4x8xbf16>, vector<64x8xf32> -> vector<64x8xf32>
    %51 = arith.addf %45, %50 : vector<64x8xf32>
    %cst_53 = arith.constant dense<0.000000e+00> : vector<64x8xf32>
    %52 = tpu.matmul %49, %15, %cst_53 {dimension_numbers = #tpu.dot_dimension_numbers<[1], [0], [0], [1], [0, 0, 1, 1], [], []>} : vector<64x4xbf16>, vector<4x8xbf16>, vector<64x8xf32> -> vector<64x8xf32>
    %53 = arith.addf %41, %52 : vector<64x8xf32>
    %cst_54 = arith.constant dense<0.000000e+00> : vector<64x8xf32>
    %54 = tpu.matmul %49, %11, %cst_54 {dimension_numbers = #tpu.dot_dimension_numbers<[1], [0], [0], [1], [0, 0, 1, 1], [], []>} : vector<64x4xbf16>, vector<4x8xbf16>, vector<64x8xf32> -> vector<64x8xf32>
    %55 = arith.addf %47, %54 : vector<64x8xf32>
    %cst_55 = arith.constant dense<0.000000e+00> : vector<64x8xf32>
    %56 = tpu.matmul %49, %9, %cst_55 {dimension_numbers = #tpu.dot_dimension_numbers<[1], [0], [0], [1], [0, 0, 1, 1], [], []>} : vector<64x4xbf16>, vector<4x8xbf16>, vector<64x8xf32> -> vector<64x8xf32>
    %57 = arith.addf %21, %56 : vector<64x8xf32>
    %c0_56 = arith.constant 0 : index
    %c10 = arith.constant 10 : index
    %c0_57 = arith.constant 0 : index
    %c0_58 = arith.constant 0 : index
    %58 = vector.load %arg2[%c0_56, %c10, %c0_57, %c0_58] : memref<1x36x9x4xbf16, #tpu.memory_space<vmem>>, vector<1x8x8x4xbf16>
    %59 = vector.shape_cast %58 : vector<1x8x8x4xbf16> to vector<64x4xbf16>
    %cst_59 = arith.constant dense<0.000000e+00> : vector<64x8xf32>
    %60 = tpu.matmul %59, %15, %cst_59 {dimension_numbers = #tpu.dot_dimension_numbers<[1], [0], [0], [1], [0, 0, 1, 1], [], []>} : vector<64x4xbf16>, vector<4x8xbf16>, vector<64x8xf32> -> vector<64x8xf32>
    %61 = arith.addf %51, %60 : vector<64x8xf32>
    %cst_60 = arith.constant dense<0.000000e+00> : vector<64x8xf32>
    %62 = tpu.matmul %59, %13, %cst_60 {dimension_numbers = #tpu.dot_dimension_numbers<[1], [0], [0], [1], [0, 0, 1, 1], [], []>} : vector<64x4xbf16>, vector<4x8xbf16>, vector<64x8xf32> -> vector<64x8xf32>
    %63 = arith.addf %53, %62 : vector<64x8xf32>
    %cst_61 = arith.constant dense<0.000000e+00> : vector<64x8xf32>
    %64 = tpu.matmul %59, %9, %cst_61 {dimension_numbers = #tpu.dot_dimension_numbers<[1], [0], [0], [1], [0, 0, 1, 1], [], []>} : vector<64x4xbf16>, vector<4x8xbf16>, vector<64x8xf32> -> vector<64x8xf32>
    %65 = arith.addf %55, %64 : vector<64x8xf32>
    %cst_62 = arith.constant dense<0.000000e+00> : vector<64x8xf32>
    %66 = tpu.matmul %59, %7, %cst_62 {dimension_numbers = #tpu.dot_dimension_numbers<[1], [0], [0], [1], [0, 0, 1, 1], [], []>} : vector<64x4xbf16>, vector<4x8xbf16>, vector<64x8xf32> -> vector<64x8xf32>
    %67 = arith.addf %57, %66 : vector<64x8xf32>
    %c0_63 = arith.constant 0 : index
    %c10_64 = arith.constant 10 : index
    %c1_65 = arith.constant 1 : index
    %c0_66 = arith.constant 0 : index
    %68 = vector.load %arg2[%c0_63, %c10_64, %c1_65, %c0_66] : memref<1x36x9x4xbf16, #tpu.memory_space<vmem>>, vector<1x8x8x4xbf16>
    %69 = vector.shape_cast %68 : vector<1x8x8x4xbf16> to vector<64x4xbf16>
    %cst_67 = arith.constant dense<0.000000e+00> : vector<64x8xf32>
    %70 = tpu.matmul %69, %17, %cst_67 {dimension_numbers = #tpu.dot_dimension_numbers<[1], [0], [0], [1], [0, 0, 1, 1], [], []>} : vector<64x4xbf16>, vector<4x8xbf16>, vector<64x8xf32> -> vector<64x8xf32>
    %71 = arith.addf %63, %70 : vector<64x8xf32>
    %cst_68 = arith.constant dense<0.000000e+00> : vector<64x8xf32>
    %72 = tpu.matmul %69, %11, %cst_68 {dimension_numbers = #tpu.dot_dimension_numbers<[1], [0], [0], [1], [0, 0, 1, 1], [], []>} : vector<64x4xbf16>, vector<4x8xbf16>, vector<64x8xf32> -> vector<64x8xf32>
    %73 = arith.addf %67, %72 : vector<64x8xf32>
    %c0_69 = arith.constant 0 : index
    %c18 = arith.constant 18 : index
    %c0_70 = arith.constant 0 : index
    %c0_71 = arith.constant 0 : index
    %74 = vector.load %arg2[%c0_69, %c18, %c0_70, %c0_71] : memref<1x36x9x4xbf16, #tpu.memory_space<vmem>>, vector<1x8x8x4xbf16>
    %75 = vector.shape_cast %74 : vector<1x8x8x4xbf16> to vector<64x4xbf16>
    %cst_72 = arith.constant dense<0.000000e+00> : vector<64x8xf32>
    %76 = tpu.matmul %75, %7, %cst_72 {dimension_numbers = #tpu.dot_dimension_numbers<[1], [0], [0], [1], [0, 0, 1, 1], [], []>} : vector<64x4xbf16>, vector<4x8xbf16>, vector<64x8xf32> -> vector<64x8xf32>
    %77 = arith.addf %61, %76 : vector<64x8xf32>
    %cst_73 = arith.constant dense<0.000000e+00> : vector<64x8xf32>
    %78 = tpu.matmul %75, %1, %cst_73 {dimension_numbers = #tpu.dot_dimension_numbers<[1], [0], [0], [1], [0, 0, 1, 1], [], []>} : vector<64x4xbf16>, vector<4x8xbf16>, vector<64x8xf32> -> vector<64x8xf32>
    %79 = arith.addf %65, %78 : vector<64x8xf32>
    %c0_74 = arith.constant 0 : index
    %c18_75 = arith.constant 18 : index
    %c1_76 = arith.constant 1 : index
    %c0_77 = arith.constant 0 : index
    %80 = vector.load %arg2[%c0_74, %c18_75, %c1_76, %c0_77] : memref<1x36x9x4xbf16, #tpu.memory_space<vmem>>, vector<1x8x8x4xbf16>
    %81 = vector.shape_cast %80 : vector<1x8x8x4xbf16> to vector<64x4xbf16>
    %cst_78 = arith.constant dense<0.000000e+00> : vector<64x8xf32>
    %82 = tpu.matmul %81, %11, %cst_78 {dimension_numbers = #tpu.dot_dimension_numbers<[1], [0], [0], [1], [0, 0, 1, 1], [], []>} : vector<64x4xbf16>, vector<4x8xbf16>, vector<64x8xf32> -> vector<64x8xf32>
    %83 = arith.addf %77, %82 : vector<64x8xf32>
    %cst_79 = arith.constant dense<0.000000e+00> : vector<64x8xf32>
    %84 = tpu.matmul %81, %9, %cst_79 {dimension_numbers = #tpu.dot_dimension_numbers<[1], [0], [0], [1], [0, 0, 1, 1], [], []>} : vector<64x4xbf16>, vector<4x8xbf16>, vector<64x8xf32> -> vector<64x8xf32>
    %85 = arith.addf %71, %84 : vector<64x8xf32>
    %cst_80 = arith.constant dense<0.000000e+00> : vector<64x8xf32>
    %86 = tpu.matmul %81, %5, %cst_80 {dimension_numbers = #tpu.dot_dimension_numbers<[1], [0], [0], [1], [0, 0, 1, 1], [], []>} : vector<64x4xbf16>, vector<4x8xbf16>, vector<64x8xf32> -> vector<64x8xf32>
    %87 = arith.addf %79, %86 : vector<64x8xf32>
    %cst_81 = arith.constant dense<0.000000e+00> : vector<64x8xf32>
    %88 = tpu.matmul %81, %3, %cst_81 {dimension_numbers = #tpu.dot_dimension_numbers<[1], [0], [0], [1], [0, 0, 1, 1], [], []>} : vector<64x4xbf16>, vector<4x8xbf16>, vector<64x8xf32> -> vector<64x8xf32>
    %89 = arith.addf %73, %88 : vector<64x8xf32>
    %c0_82 = arith.constant 0 : index
    %c27 = arith.constant 27 : index
    %c0_83 = arith.constant 0 : index
    %c0_84 = arith.constant 0 : index
    %90 = vector.load %arg2[%c0_82, %c27, %c0_83, %c0_84] : memref<1x36x9x4xbf16, #tpu.memory_space<vmem>>, vector<1x8x8x4xbf16>
    %91 = vector.shape_cast %90 : vector<1x8x8x4xbf16> to vector<64x4xbf16>
    %cst_85 = arith.constant dense<0.000000e+00> : vector<64x8xf32>
    %92 = tpu.matmul %91, %9, %cst_85 {dimension_numbers = #tpu.dot_dimension_numbers<[1], [0], [0], [1], [0, 0, 1, 1], [], []>} : vector<64x4xbf16>, vector<4x8xbf16>, vector<64x8xf32> -> vector<64x8xf32>
    %93 = arith.addf %83, %92 : vector<64x8xf32>
    %cst_86 = arith.constant dense<0.000000e+00> : vector<64x8xf32>
    %94 = tpu.matmul %91, %7, %cst_86 {dimension_numbers = #tpu.dot_dimension_numbers<[1], [0], [0], [1], [0, 0, 1, 1], [], []>} : vector<64x4xbf16>, vector<4x8xbf16>, vector<64x8xf32> -> vector<64x8xf32>
    %95 = arith.addf %85, %94 : vector<64x8xf32>
    %cst_87 = arith.constant dense<0.000000e+00> : vector<64x8xf32>
    %96 = tpu.matmul %91, %3, %cst_87 {dimension_numbers = #tpu.dot_dimension_numbers<[1], [0], [0], [1], [0, 0, 1, 1], [], []>} : vector<64x4xbf16>, vector<4x8xbf16>, vector<64x8xf32> -> vector<64x8xf32>
    %97 = arith.addf %87, %96 : vector<64x8xf32>
    %cst_88 = arith.constant dense<0.000000e+00> : vector<64x8xf32>
    %98 = tpu.matmul %91, %1, %cst_88 {dimension_numbers = #tpu.dot_dimension_numbers<[1], [0], [0], [1], [0, 0, 1, 1], [], []>} : vector<64x4xbf16>, vector<4x8xbf16>, vector<64x8xf32> -> vector<64x8xf32>
    %99 = arith.addf %89, %98 : vector<64x8xf32>
    %c0_89 = arith.constant 0 : index
    %c27_90 = arith.constant 27 : index
    %c1_91 = arith.constant 1 : index
    %c0_92 = arith.constant 0 : index
    %100 = vector.load %arg2[%c0_89, %c27_90, %c1_91, %c0_92] : memref<1x36x9x4xbf16, #tpu.memory_space<vmem>>, vector<1x8x8x4xbf16>
    %101 = vector.shape_cast %100 : vector<1x8x8x4xbf16> to vector<64x4xbf16>
    %cst_93 = arith.constant dense<0.000000e+00> : vector<64x8xf32>
    %102 = tpu.matmul %101, %11, %cst_93 {dimension_numbers = #tpu.dot_dimension_numbers<[1], [0], [0], [1], [0, 0, 1, 1], [], []>} : vector<64x4xbf16>, vector<4x8xbf16>, vector<64x8xf32> -> vector<64x8xf32>
    %103 = arith.addf %95, %102 : vector<64x8xf32>
    %cst_94 = arith.constant dense<0.000000e+00> : vector<64x8xf32>
    %104 = tpu.matmul %101, %5, %cst_94 {dimension_numbers = #tpu.dot_dimension_numbers<[1], [0], [0], [1], [0, 0, 1, 1], [], []>} : vector<64x4xbf16>, vector<4x8xbf16>, vector<64x8xf32> -> vector<64x8xf32>
    %105 = arith.addf %99, %104 : vector<64x8xf32>
    %c0_95 = arith.constant 0 : index
    %c19 = arith.constant 19 : index
    %c0_96 = arith.constant 0 : index
    %c0_97 = arith.constant 0 : index
    %106 = vector.load %arg2[%c0_95, %c19, %c0_96, %c0_97] : memref<1x36x9x4xbf16, #tpu.memory_space<vmem>>, vector<1x8x8x4xbf16>
    %107 = vector.shape_cast %106 : vector<1x8x8x4xbf16> to vector<64x4xbf16>
    %cst_98 = arith.constant dense<0.000000e+00> : vector<64x8xf32>
    %108 = tpu.matmul %107, %13, %cst_98 {dimension_numbers = #tpu.dot_dimension_numbers<[1], [0], [0], [1], [0, 0, 1, 1], [], []>} : vector<64x4xbf16>, vector<4x8xbf16>, vector<64x8xf32> -> vector<64x8xf32>
    %109 = arith.addf %97, %108 : vector<64x8xf32>
    %c0_99 = arith.constant 0 : index
    %c19_100 = arith.constant 19 : index
    %c1_101 = arith.constant 1 : index
    %c0_102 = arith.constant 0 : index
    %110 = vector.load %arg2[%c0_99, %c19_100, %c1_101, %c0_102] : memref<1x36x9x4xbf16, #tpu.memory_space<vmem>>, vector<1x8x8x4xbf16>
    %111 = vector.shape_cast %110 : vector<1x8x8x4xbf16> to vector<64x4xbf16>
    %cst_103 = arith.constant dense<0.000000e+00> : vector<64x8xf32>
    %112 = tpu.matmul %111, %17, %cst_103 {dimension_numbers = #tpu.dot_dimension_numbers<[1], [0], [0], [1], [0, 0, 1, 1], [], []>} : vector<64x4xbf16>, vector<4x8xbf16>, vector<64x8xf32> -> vector<64x8xf32>
    %113 = arith.addf %109, %112 : vector<64x8xf32>
    %cst_104 = arith.constant dense<0.000000e+00> : vector<64x8xf32>
    %114 = tpu.matmul %111, %15, %cst_104 {dimension_numbers = #tpu.dot_dimension_numbers<[1], [0], [0], [1], [0, 0, 1, 1], [], []>} : vector<64x4xbf16>, vector<4x8xbf16>, vector<64x8xf32> -> vector<64x8xf32>
    %115 = arith.addf %105, %114 : vector<64x8xf32>
    %c0_105 = arith.constant 0 : index
    %c28 = arith.constant 28 : index
    %c0_106 = arith.constant 0 : index
    %c0_107 = arith.constant 0 : index
    %116 = vector.load %arg2[%c0_105, %c28, %c0_106, %c0_107] : memref<1x36x9x4xbf16, #tpu.memory_space<vmem>>, vector<1x8x8x4xbf16>
    %117 = vector.shape_cast %116 : vector<1x8x8x4xbf16> to vector<64x4xbf16>
    %cst_108 = arith.constant dense<0.000000e+00> : vector<64x8xf32>
    %118 = tpu.matmul %117, %15, %cst_108 {dimension_numbers = #tpu.dot_dimension_numbers<[1], [0], [0], [1], [0, 0, 1, 1], [], []>} : vector<64x4xbf16>, vector<4x8xbf16>, vector<64x8xf32> -> vector<64x8xf32>
    %119 = arith.addf %113, %118 : vector<64x8xf32>
    %cst_109 = arith.constant dense<0.000000e+00> : vector<64x8xf32>
    %120 = tpu.matmul %117, %13, %cst_109 {dimension_numbers = #tpu.dot_dimension_numbers<[1], [0], [0], [1], [0, 0, 1, 1], [], []>} : vector<64x4xbf16>, vector<4x8xbf16>, vector<64x8xf32> -> vector<64x8xf32>
    %121 = arith.addf %115, %120 : vector<64x8xf32>
    %c0_110 = arith.constant 0 : index
    %c28_111 = arith.constant 28 : index
    %c1_112 = arith.constant 1 : index
    %c0_113 = arith.constant 0 : index
    %122 = vector.load %arg2[%c0_110, %c28_111, %c1_112, %c0_113] : memref<1x36x9x4xbf16, #tpu.memory_space<vmem>>, vector<1x8x8x4xbf16>
    %123 = vector.shape_cast %122 : vector<1x8x8x4xbf16> to vector<64x4xbf16>
    %cst_114 = arith.constant dense<0.000000e+00> : vector<64x8xf32>
    %124 = tpu.matmul %123, %17, %cst_114 {dimension_numbers = #tpu.dot_dimension_numbers<[1], [0], [0], [1], [0, 0, 1, 1], [], []>} : vector<64x4xbf16>, vector<4x8xbf16>, vector<64x8xf32> -> vector<64x8xf32>
    %125 = arith.addf %121, %124 : vector<64x8xf32>
    %cst_115 = arith.constant 0.000000e+00 : f32
    %126 = vector.broadcast %cst_115 : f32 to vector<1x8xf32>
    %cst_116 = arith.constant 0.000000e+00 : f32
    %127 = vector.broadcast %cst_116 : f32 to vector<1x8xf32>
    %cst_117 = arith.constant dense<0.000000e+00> : vector<8xf32>
    %128 = vector.multi_reduction <add>, %93, %cst_117 [0] : vector<64x8xf32> to vector<8xf32>
    %129 = vector.shape_cast %128 : vector<8xf32> to vector<1x8xf32>
    %130 = arith.addf %126, %129 : vector<1x8xf32>
    %131 = arith.mulf %93, %93 : vector<64x8xf32>
    %cst_118 = arith.constant dense<0.000000e+00> : vector<8xf32>
    %132 = vector.multi_reduction <add>, %131, %cst_118 [0] : vector<64x8xf32> to vector<8xf32>
    %133 = vector.shape_cast %132 : vector<8xf32> to vector<1x8xf32>
    %134 = arith.addf %127, %133 : vector<1x8xf32>
    %135 = vector.shape_cast %93 : vector<64x8xf32> to vector<1x8x8x8xf32>
    %136 = arith.truncf %135 : vector<1x8x8x8xf32> to vector<1x8x8x8xbf16>
    %c0_119 = arith.constant 0 : index
    %c0_120 = arith.constant 0 : index
    %c0_121 = arith.constant 0 : index
    %c0_122 = arith.constant 0 : index
    %137 = vector.load %arg4[%c0_119, %c0_120, %c0_121, %c0_122] : memref<1x32x8x8xbf16, #tpu.memory_space<vmem>>, vector<1x8x8x8xbf16>
    tpu.vector_store %arg4[%c0_119, %c0_120, %c0_121, %c0_122], %136 {strides = array<i32>} : memref<1x32x8x8xbf16, #tpu.memory_space<vmem>>, vector<1x8x8x8xbf16>,
    %cst_123 = arith.constant dense<0.000000e+00> : vector<8xf32>
    %138 = vector.multi_reduction <add>, %103, %cst_123 [0] : vector<64x8xf32> to vector<8xf32>
    %139 = vector.shape_cast %138 : vector<8xf32> to vector<1x8xf32>
    %140 = arith.addf %130, %139 : vector<1x8xf32>
    %141 = arith.mulf %103, %103 : vector<64x8xf32>
    %cst_124 = arith.constant dense<0.000000e+00> : vector<8xf32>
    %142 = vector.multi_reduction <add>, %141, %cst_124 [0] : vector<64x8xf32> to vector<8xf32>
    %143 = vector.shape_cast %142 : vector<8xf32> to vector<1x8xf32>
    %144 = arith.addf %134, %143 : vector<1x8xf32>
    %145 = vector.shape_cast %103 : vector<64x8xf32> to vector<1x8x8x8xf32>
    %146 = arith.truncf %145 : vector<1x8x8x8xf32> to vector<1x8x8x8xbf16>
    %c0_125 = arith.constant 0 : index
    %c8_126 = arith.constant 8 : index
    %c0_127 = arith.constant 0 : index
    %c0_128 = arith.constant 0 : index
    %147 = vector.load %arg4[%c0_125, %c8_126, %c0_127, %c0_128] : memref<1x32x8x8xbf16, #tpu.memory_space<vmem>>, vector<1x8x8x8xbf16>
    tpu.vector_store %arg4[%c0_125, %c8_126, %c0_127, %c0_128], %146 {strides = array<i32>} : memref<1x32x8x8xbf16, #tpu.memory_space<vmem>>, vector<1x8x8x8xbf16>,
    %cst_129 = arith.constant dense<0.000000e+00> : vector<8xf32>
    %148 = vector.multi_reduction <add>, %119, %cst_129 [0] : vector<64x8xf32> to vector<8xf32>
    %149 = vector.shape_cast %148 : vector<8xf32> to vector<1x8xf32>
    %150 = arith.addf %140, %149 : vector<1x8xf32>
    %151 = arith.mulf %119, %119 : vector<64x8xf32>
    %cst_130 = arith.constant dense<0.000000e+00> : vector<8xf32>
    %152 = vector.multi_reduction <add>, %151, %cst_130 [0] : vector<64x8xf32> to vector<8xf32>
    %153 = vector.shape_cast %152 : vector<8xf32> to vector<1x8xf32>
    %154 = arith.addf %144, %153 : vector<1x8xf32>
    %155 = vector.shape_cast %119 : vector<64x8xf32> to vector<1x8x8x8xf32>
    %156 = arith.truncf %155 : vector<1x8x8x8xf32> to vector<1x8x8x8xbf16>
    %c0_131 = arith.constant 0 : index
    %c16 = arith.constant 16 : index
    %c0_132 = arith.constant 0 : index
    %c0_133 = arith.constant 0 : index
    %157 = vector.load %arg4[%c0_131, %c16, %c0_132, %c0_133] : memref<1x32x8x8xbf16, #tpu.memory_space<vmem>>, vector<1x8x8x8xbf16>
    tpu.vector_store %arg4[%c0_131, %c16, %c0_132, %c0_133], %156 {strides = array<i32>} : memref<1x32x8x8xbf16, #tpu.memory_space<vmem>>, vector<1x8x8x8xbf16>,
    %cst_134 = arith.constant dense<0.000000e+00> : vector<8xf32>
    %158 = vector.multi_reduction <add>, %125, %cst_134 [0] : vector<64x8xf32> to vector<8xf32>
    %159 = vector.shape_cast %158 : vector<8xf32> to vector<1x8xf32>
    %160 = arith.addf %150, %159 : vector<1x8xf32>
    %161 = arith.mulf %125, %125 : vector<64x8xf32>
    %cst_135 = arith.constant dense<0.000000e+00> : vector<8xf32>
    %162 = vector.multi_reduction <add>, %161, %cst_135 [0] : vector<64x8xf32> to vector<8xf32>
    %163 = vector.shape_cast %162 : vector<8xf32> to vector<1x8xf32>
    %164 = arith.addf %154, %163 : vector<1x8xf32>
    %165 = vector.shape_cast %125 : vector<64x8xf32> to vector<1x8x8x8xf32>
    %166 = arith.truncf %165 : vector<1x8x8x8xf32> to vector<1x8x8x8xbf16>
    %c0_136 = arith.constant 0 : index
    %c24 = arith.constant 24 : index
    %c0_137 = arith.constant 0 : index
    %c0_138 = arith.constant 0 : index
    %167 = vector.load %arg4[%c0_136, %c24, %c0_137, %c0_138] : memref<1x32x8x8xbf16, #tpu.memory_space<vmem>>, vector<1x8x8x8xbf16>
    tpu.vector_store %arg4[%c0_136, %c24, %c0_137, %c0_138], %166 {strides = array<i32>} : memref<1x32x8x8xbf16, #tpu.memory_space<vmem>>, vector<1x8x8x8xbf16>,
    %168 = vector.shape_cast %160 : vector<1x8xf32> to vector<1x1x8xf32>
    %c0_139 = arith.constant 0 : index
    %c0_140 = arith.constant 0 : index
    %c0_141 = arith.constant 0 : index
    %169 = vector.load %arg5[%c0_139, %c0_140, %c0_141] : memref<1x1x8xf32, #tpu.memory_space<vmem>>, vector<1x1x8xf32>
    tpu.vector_store %arg5[%c0_139, %c0_140, %c0_141], %168 {strides = array<i32>} : memref<1x1x8xf32, #tpu.memory_space<vmem>>, vector<1x1x8xf32>,
    %170 = vector.shape_cast %164 : vector<1x8xf32> to vector<1x1x8xf32>
    %c0_142 = arith.constant 0 : index
    %c0_143 = arith.constant 0 : index
    %c0_144 = arith.constant 0 : index
    %171 = vector.load %arg6[%c0_142, %c0_143, %c0_144] : memref<1x1x8xf32, #tpu.memory_space<vmem>>, vector<1x1x8xf32>
    tpu.vector_store %arg6[%c0_142, %c0_143, %c0_144], %170 {strides = array<i32>} : memref<1x1x8xf32, #tpu.memory_space<vmem>>, vector<1x1x8xf32>,
    return
  }
  func.func @transform_0(%arg0: i32, %arg1: i32) -> (i32, i32, i32, i32) {
    %c0_i32 = arith.constant 0 : i32
    %c0_i32_0 = arith.constant 0 : i32
    %c0_i32_1 = arith.constant 0 : i32
    %c0_i32_2 = arith.constant 0 : i32
    return %arg0, %c0_i32, %c0_i32_0, %c0_i32_1 : i32, i32, i32, i32
  }
  func.func @transform_1(%arg0: i32, %arg1: i32) -> (i32, i32, i32) {
    %c0_i32 = arith.constant 0 : i32
    %c0_i32_0 = arith.constant 0 : i32
    %c0_i32_1 = arith.constant 0 : i32
    return %c0_i32, %c0_i32_0, %arg1 : i32, i32, i32
  }
  func.func @transform_2(%arg0: i32, %arg1: i32) -> (i32, i32, i32, i32) {
    %c0_i32 = arith.constant 0 : i32
    %c0_i32_0 = arith.constant 0 : i32
    %c0_i32_1 = arith.constant 0 : i32
    return %arg0, %c0_i32, %c0_i32_0, %arg1 : i32, i32, i32, i32
  }
  func.func @transform_3(%arg0: i32, %arg1: i32) -> (i32, i32, i32) {
    %c0_i32 = arith.constant 0 : i32
    %c0_i32_0 = arith.constant 0 : i32
    return %arg0, %c0_i32, %arg1 : i32, i32, i32
  }
  func.func @transform_4(%arg0: i32, %arg1: i32) -> (i32, i32, i32) {
    %c0_i32 = arith.constant 0 : i32
    %c0_i32_0 = arith.constant 0 : i32
    return %arg0, %c0_i32, %arg1 : i32, i32, i32
  }
}

module attributes {stable_mosaic.version = 11 : i64} {
  func.func @_bn_relu_pool_kernel(%arg0: i32, %arg1: i32, %arg2: memref<1x32x8x8xbf16, #tpu.memory_space<vmem>>, %arg3: memref<1x8xf32, #tpu.memory_space<vmem>>, %arg4: memref<1x8xf32, #tpu.memory_space<vmem>>, %arg5: memref<1x8x8x8xf32, #tpu.memory_space<vmem>>) attributes {dimension_semantics = [#tpu.dimension_semantics<parallel>, #tpu.dimension_semantics<parallel>], iteration_bounds = array<i64: 2, 1>, scalar_prefetch = 0 : i64, scratch_operands = 0 : i64, tpu.core_type = #tpu.core_type<tc>, window_params = [{transform_indices = @transform_0, window_bounds = array<i64: 1, 32, 8, 8>}, {transform_indices = @transform_1, window_bounds = array<i64: 1, 8>}, {transform_indices = @transform_2, window_bounds = array<i64: 1, 8>}, {transform_indices = @transform_3, window_bounds = array<i64: 1, 8, 8, 8>}]} {
    %c0 = arith.constant 0 : index
    %c0_0 = arith.constant 0 : index
    %0 = vector.load %arg3[%c0, %c0_0] : memref<1x8xf32, #tpu.memory_space<vmem>>, vector<1x8xf32>
    %c0_1 = arith.constant 0 : index
    %c0_2 = arith.constant 0 : index
    %1 = vector.load %arg4[%c0_1, %c0_2] : memref<1x8xf32, #tpu.memory_space<vmem>>, vector<1x8xf32>
    %c0_3 = arith.constant 0 : index
    %c0_4 = arith.constant 0 : index
    %c0_5 = arith.constant 0 : index
    %c0_6 = arith.constant 0 : index
    %2 = vector.load %arg2[%c0_3, %c0_4, %c0_5, %c0_6] : memref<1x32x8x8xbf16, #tpu.memory_space<vmem>>, vector<1x8x8x8xbf16>
    %3 = arith.extf %2 : vector<1x8x8x8xbf16> to vector<1x8x8x8xf32>
    %4 = vector.shape_cast %0 : vector<1x8xf32> to vector<1x1x1x8xf32>
    %5 = vector.broadcast %4 : vector<1x1x1x8xf32> to vector<1x8x8x8xf32>
    %6 = arith.mulf %3, %5 : vector<1x8x8x8xf32>
    %7 = vector.shape_cast %1 : vector<1x8xf32> to vector<1x1x1x8xf32>
    %8 = vector.broadcast %7 : vector<1x1x1x8xf32> to vector<1x8x8x8xf32>
    %9 = arith.addf %6, %8 : vector<1x8x8x8xf32>
    %cst = arith.constant 0.000000e+00 : f32
    %10 = vector.broadcast %cst : f32 to vector<1x8x8x8xf32>
    %11 = arith.maximumf %9, %10 : vector<1x8x8x8xf32>
    %c0_7 = arith.constant 0 : index
    %c8 = arith.constant 8 : index
    %c0_8 = arith.constant 0 : index
    %c0_9 = arith.constant 0 : index
    %12 = vector.load %arg2[%c0_7, %c8, %c0_8, %c0_9] : memref<1x32x8x8xbf16, #tpu.memory_space<vmem>>, vector<1x8x8x8xbf16>
    %13 = arith.extf %12 : vector<1x8x8x8xbf16> to vector<1x8x8x8xf32>
    %14 = vector.shape_cast %0 : vector<1x8xf32> to vector<1x1x1x8xf32>
    %15 = vector.broadcast %14 : vector<1x1x1x8xf32> to vector<1x8x8x8xf32>
    %16 = arith.mulf %13, %15 : vector<1x8x8x8xf32>
    %17 = vector.shape_cast %1 : vector<1x8xf32> to vector<1x1x1x8xf32>
    %18 = vector.broadcast %17 : vector<1x1x1x8xf32> to vector<1x8x8x8xf32>
    %19 = arith.addf %16, %18 : vector<1x8x8x8xf32>
    %cst_10 = arith.constant 0.000000e+00 : f32
    %20 = vector.broadcast %cst_10 : f32 to vector<1x8x8x8xf32>
    %21 = arith.maximumf %19, %20 : vector<1x8x8x8xf32>
    %22 = arith.maximumf %11, %21 : vector<1x8x8x8xf32>
    %c0_11 = arith.constant 0 : index
    %c16 = arith.constant 16 : index
    %c0_12 = arith.constant 0 : index
    %c0_13 = arith.constant 0 : index
    %23 = vector.load %arg2[%c0_11, %c16, %c0_12, %c0_13] : memref<1x32x8x8xbf16, #tpu.memory_space<vmem>>, vector<1x8x8x8xbf16>
    %24 = arith.extf %23 : vector<1x8x8x8xbf16> to vector<1x8x8x8xf32>
    %25 = vector.shape_cast %0 : vector<1x8xf32> to vector<1x1x1x8xf32>
    %26 = vector.broadcast %25 : vector<1x1x1x8xf32> to vector<1x8x8x8xf32>
    %27 = arith.mulf %24, %26 : vector<1x8x8x8xf32>
    %28 = vector.shape_cast %1 : vector<1x8xf32> to vector<1x1x1x8xf32>
    %29 = vector.broadcast %28 : vector<1x1x1x8xf32> to vector<1x8x8x8xf32>
    %30 = arith.addf %27, %29 : vector<1x8x8x8xf32>
    %cst_14 = arith.constant 0.000000e+00 : f32
    %31 = vector.broadcast %cst_14 : f32 to vector<1x8x8x8xf32>
    %32 = arith.maximumf %30, %31 : vector<1x8x8x8xf32>
    %33 = arith.maximumf %22, %32 : vector<1x8x8x8xf32>
    %c0_15 = arith.constant 0 : index
    %c24 = arith.constant 24 : index
    %c0_16 = arith.constant 0 : index
    %c0_17 = arith.constant 0 : index
    %34 = vector.load %arg2[%c0_15, %c24, %c0_16, %c0_17] : memref<1x32x8x8xbf16, #tpu.memory_space<vmem>>, vector<1x8x8x8xbf16>
    %35 = arith.extf %34 : vector<1x8x8x8xbf16> to vector<1x8x8x8xf32>
    %36 = vector.shape_cast %0 : vector<1x8xf32> to vector<1x1x1x8xf32>
    %37 = vector.broadcast %36 : vector<1x1x1x8xf32> to vector<1x8x8x8xf32>
    %38 = arith.mulf %35, %37 : vector<1x8x8x8xf32>
    %39 = vector.shape_cast %1 : vector<1x8xf32> to vector<1x1x1x8xf32>
    %40 = vector.broadcast %39 : vector<1x1x1x8xf32> to vector<1x8x8x8xf32>
    %41 = arith.addf %38, %40 : vector<1x8x8x8xf32>
    %cst_18 = arith.constant 0.000000e+00 : f32
    %42 = vector.broadcast %cst_18 : f32 to vector<1x8x8x8xf32>
    %43 = arith.maximumf %41, %42 : vector<1x8x8x8xf32>
    %44 = arith.maximumf %33, %43 : vector<1x8x8x8xf32>
    %c0_19 = arith.constant 0 : index
    %c0_20 = arith.constant 0 : index
    %c0_21 = arith.constant 0 : index
    %c0_22 = arith.constant 0 : index
    %45 = vector.load %arg5[%c0_19, %c0_20, %c0_21, %c0_22] : memref<1x8x8x8xf32, #tpu.memory_space<vmem>>, vector<1x8x8x8xf32>
    tpu.vector_store %arg5[%c0_19, %c0_20, %c0_21, %c0_22], %44 {strides = array<i32>} : memref<1x8x8x8xf32, #tpu.memory_space<vmem>>, vector<1x8x8x8xf32>,
    return
  }
  func.func @transform_0(%arg0: i32, %arg1: i32) -> (i32, i32, i32, i32) {
    %c0_i32 = arith.constant 0 : i32
    %c0_i32_0 = arith.constant 0 : i32
    %c0_i32_1 = arith.constant 0 : i32
    return %arg0, %c0_i32, %c0_i32_0, %arg1 : i32, i32, i32, i32
  }
  func.func @transform_1(%arg0: i32, %arg1: i32) -> (i32, i32) {
    %c0_i32 = arith.constant 0 : i32
    %c0_i32_0 = arith.constant 0 : i32
    return %c0_i32, %arg1 : i32, i32
  }
  func.func @transform_2(%arg0: i32, %arg1: i32) -> (i32, i32) {
    %c0_i32 = arith.constant 0 : i32
    %c0_i32_0 = arith.constant 0 : i32
    return %c0_i32, %arg1 : i32, i32
  }
  func.func @transform_3(%arg0: i32, %arg1: i32) -> (i32, i32, i32, i32) {
    %c0_i32 = arith.constant 0 : i32
    %c0_i32_0 = arith.constant 0 : i32
    %c0_i32_1 = arith.constant 0 : i32
    return %arg0, %c0_i32, %c0_i32_0, %arg1 : i32, i32, i32, i32
  }
}

</mosaic_0001>

<bundles_post_ra>
// kernel: conv_block_forward.3
= control target key start
LH: loop header
LB: loop body
LE: loop exit
PB: predicated region body
PF: predicated region fallthrough
CT: control target
= control target key end

     0   :  { %s736_s12 = smov 0   ;;  %s738_s13 = smov 0   ;;  %s883_s0 = inlined_call_operand.vmem [shape: bf16[2,32,8,8], index: 0, kind: input, shape index: {}]   ;;  %s884_s1 = inlined_call_operand.vmem [shape: f32[1,8], index: 1, kind: input, shape index: {}]   ;;  %s885_s2 = inlined_call_operand.vmem [shape: f32[1,8], index: 2, kind: input, shape index: {}]   ;;  %s886_s3 = inlined_call_operand.vmem [shape: f32[2,8,8,8], index: 3, kind: output, shape index: {}]  }
   0x1   :  { %s740_s14 = smov 0  }
   0x2 LB: > { %s25_s15 = sadd.s32 1, %s710_s13  ;;  %p554_p0 = scmp.ge.s32.totalorder %s714_s14, 1  ;;  %s714_s14 = sphi %s740_s14, %s13_s14   ;;  %s710_s13 = sphi %s738_s13, %s888_s13   ;;  %s706_s12 = sphi %s736_s12, %s887_s12  }
   0x3   : > { %p27_p1 = scmp.ge.s32.totalorder %s25_s15, 2  ;;  %p172_p2 = scmp.lt.s32.totalorder %s714_s14, 3 }
   0x5   : > { %s890_s15 = smov (%p27_p1, %s25_s15), 0  ;;  %p173_p3 = pnand %p554_p0, %p172_p2 }
   0x6   : > { %p208_p4 = scmp.lt.s32.totalorder (!%p173_p3), %s706_s12, 1  ;;  %v765_v0 = vld [vmem:[%s884_s1] ss:$0 sm:$0xff] (!%p173_p3)  ;;  %vm431_vm0 = vcmask (!%p173_p3), 64512  }
   0x7   : > { %176 = sbr.rel (%p173_p3) target bundleno = 64 (0x40), region = 32  ;;  %v774_v9 = vld [vmem:[%s885_s2] ss:$0 sm:$0xff] (!%p173_p3) }
   0xe   : > { %s892_s12 = smov (!%p208_p4, %s706_s12), 1 }
   0xf   : > { %s587_s16 = sshll.u32 %s892_s12, 7  ;;  %s588_s24 = sshll.u32 %s892_s12, 6 }
  0x10   : > { %s760_s19 = scalar_lea.vmem %s883_s0, %s587_s16  ;;  %s803_s27 = scalar_lea.vmem %s886_s3, %s588_s24 }
  0x11   : > { %v590_v1 = vld [vmem:[%s760_s19] sm:$0xff]   ;;  %v653_v30 = vld [vmem:[%s760_s19 + $0x8] sm:$0xff]  }
  0x12   : > { %v656_v2 = vld [vmem:[%s760_s19 + $0x20] sm:$0xff]   ;;  %v591_v4 = vunpack.c.l.bf16 %v590_v1  ;;  %v592_v8 = vunpack.c.h.bf16 %v590_v1  ;;  %v657_v31 = vld [vmem:[%s760_s19 + $0x28] sm:$0xff]   ;;  %v595_v43 = vunpack.c.l.bf16 %v653_v30  ;;  %v596_v48 = vunpack.c.h.bf16 %v653_v30 }
  0x13   : > { %v660_v3 = vld [vmem:[%s760_s19 + $0x40] sm:$0xff]   ;;  %v607_v5 = vunpack.c.l.bf16 %v656_v2  ;;  %v608_v11 = vunpack.c.h.bf16 %v656_v2  ;;  %v661_v32 = vld [vmem:[%s760_s19 + $0x48] sm:$0xff]   ;;  %v611_v44 = vunpack.c.l.bf16 %v657_v31  ;;  %v612_v49 = vunpack.c.h.bf16 %v657_v31 }
  0x14   : > { %v623_v6 = vunpack.c.l.bf16 %v660_v3  ;;  %v664_v7 = vld [vmem:[%s760_s19 + $0x60] sm:$0xff]   ;;  %v624_v12 = vunpack.c.h.bf16 %v660_v3  ;;  %v254_v14 = vmul.f32 %v591_v4, %v765_v0  ;;  %v255_v17 = vmul.f32 %v592_v8, %v765_v0  ;;  %v665_v37 = vld [vmem:[%s760_s19 + $0x68] sm:$0xff]   ;;  %v654_v3 = vld [vmem:[%s760_s19 + $0x10] sm:$0xff]  }
  0x15   : > { %v639_v10 = vunpack.c.l.bf16 %v664_v7  ;;  %v640_v13 = vunpack.c.h.bf16 %v664_v7  ;;  %v301_v15 = vmul.f32 %v607_v5, %v765_v0  ;;  %v302_v19 = vmul.f32 %v608_v11, %v765_v0  ;;  %v658_v4 = vld [vmem:[%s760_s19 + $0x30] sm:$0xff]  }
  0x16   : > { %v350_v16 = vmul.f32 %v623_v6, %v765_v0  ;;  %v351_v20 = vmul.f32 %v624_v12, %v765_v0  ;;  %v268_v22 = vadd.f32 %v774_v9, %v254_v14  ;;  %v269_v25 = vadd.f32 %v774_v9, %v255_v17  ;;  %v666_v11 = vld [vmem:[%s760_s19 + $0x70] sm:$0xff]  }
  0x17   : > { %v399_v18 = vmul.f32 %v639_v10, %v765_v0  ;;  %v400_v21 = vmul.f32 %v640_v13, %v765_v0  ;;  %v309_v23 = vadd.f32 %v774_v9, %v301_v15  ;;  %v310_v27 = vadd.f32 %v774_v9, %v302_v19  ;;  %v662_v10 = vld [vmem:[%s760_s19 + $0x50] sm:$0xff]  }
  0x18   : > { %v358_v24 = vadd.f32 %v774_v9, %v350_v16  ;;  %v359_v28 = vadd.f32 %v774_v9, %v351_v20  ;;  %v276_v33 = vmax.f32 %v268_v22, 0.0  ;;  %v277_v36 = vmax.f32 %v269_v25, 0.0 }
  0x19   : > { %v407_v26 = vadd.f32 %v774_v9, %v399_v18  ;;  %v408_v29 = vadd.f32 %v774_v9, %v400_v21  ;;  %v317_v34 = vmax.f32 %v309_v23, 0.0  ;;  %v318_v39 = vmax.f32 %v310_v27, 0.0 }
  0x1a   : > { %v366_v35 = vmax.f32 %v358_v24, 0.0  ;;  %v367_v40 = vmax.f32 %v359_v28, 0.0  ;;  %v627_v45 = vunpack.c.l.bf16 %v661_v32  ;;  %v643_v47 = vunpack.c.l.bf16 %v665_v37 }
  0x1b   : > { %v415_v38 = vmax.f32 %v407_v26, 0.0  ;;  %v416_v41 = vmax.f32 %v408_v29, 0.0  ;;  %v325_v42 = vmax.f32 %v276_v33, %v317_v34  ;;  %v326_v46 = vmax.f32 %v277_v36, %v318_v39 }
  0x1c   : > { %v256_v51 = vmul.f32 %v595_v43, %v765_v0  ;;  %v303_v52 = vmul.f32 %v611_v44, %v765_v0  ;;  %v352_v53 = vmul.f32 %v627_v45, %v765_v0  ;;  %v401_v55 = vmul.f32 %v643_v47, %v765_v0  ;;  %v655_v44 = vld [vmem:[%s760_s19 + $0x18] sm:$0xff]  }
  0x1d   : > { %v374_v50 = vmax.f32 %v325_v42, %v366_v35  ;;  %v375_v54 = vmax.f32 %v326_v46, %v367_v40  ;;  %v257_v56 = vmul.f32 %v596_v48, %v765_v0  ;;  %v304_v57 = vmul.f32 %v612_v49, %v765_v0  ;;  %v659_v45 = vld [vmem:[%s760_s19 + $0x38] sm:$0xff]  }
  0x1e   : > { %v270_v59 = vadd.f32 %v774_v9, %v256_v51  ;;  %v311_v60 = vadd.f32 %v774_v9, %v303_v52  ;;  %v360_v61 = vadd.f32 %v774_v9, %v352_v53  ;;  %v409_v63 = vadd.f32 %v774_v9, %v401_v55  ;;  %v667_v55 = vld [vmem:[%s760_s19 + $0x78] sm:$0xff]  }
  0x1f   : > { %v423_v58 = vmax.f32 %v374_v50, %v415_v38  ;;  %v424_v62 = vmax.f32 %v375_v54, %v416_v41  ;;  %v271_v1 = vadd.f32 %v774_v9, %v257_v56  ;;  %v312_v2 = vadd.f32 %v774_v9, %v304_v57  ;;  %v663_v50 = vld [vmem:[%s760_s19 + $0x58] sm:$0xff]  }
  0x20   : > { %v278_v5 = vmax.f32 %v270_v59, 0.0  ;;  %v319_v6 = vmax.f32 %v311_v60, 0.0  ;;  %v368_v7 = vmax.f32 %v360_v61, 0.0  ;;  %v628_v8 = vunpack.c.h.bf16 %v661_v32 }
  0x21   : > { %432 = vst.msk [vmem:[%s803_s27] sm:$0xff] %vm431_vm0, %v423_v58  ;;  %433 = vst.msk [vmem:[%s803_s27 + $0x8] sm:$0xff] %vm431_vm0, %v424_v62  ;;  %v417_v12 = vmax.f32 %v409_v63, 0.0  ;;  %v279_v13 = vmax.f32 %v271_v1, 0.0  ;;  %v320_v14 = vmax.f32 %v312_v2, 0.0  ;;  %v644_v15 = vunpack.c.h.bf16 %v665_v37 }
  0x22   : > { %v327_v16 = vmax.f32 %v278_v5, %v319_v6  ;;  %v353_v17 = vmul.f32 %v628_v8, %v765_v0  ;;  %v599_v18 = vunpack.c.l.bf16 %v654_v3  ;;  %v615_v19 = vunpack.c.l.bf16 %v658_v4 }
  0x23   : > { %v328_v20 = vmax.f32 %v279_v13, %v320_v14  ;;  %v402_v21 = vmul.f32 %v644_v15, %v765_v0  ;;  %v631_v22 = vunpack.c.l.bf16 %v662_v10  ;;  %v647_v23 = vunpack.c.l.bf16 %v666_v11 }
  0x24   : > { %v376_v24 = vmax.f32 %v327_v16, %v368_v7  ;;  %v361_v25 = vadd.f32 %v774_v9, %v353_v17  ;;  %v258_v26 = vmul.f32 %v599_v18, %v765_v0  ;;  %v305_v27 = vmul.f32 %v615_v19, %v765_v0 }
  0x25   : > { %v410_v28 = vadd.f32 %v774_v9, %v402_v21  ;;  %v354_v29 = vmul.f32 %v631_v22, %v765_v0  ;;  %v403_v30 = vmul.f32 %v647_v23, %v765_v0  ;;  %v600_v31 = vunpack.c.h.bf16 %v654_v3 }
  0x26   : > { %v425_v32 = vmax.f32 %v376_v24, %v417_v12  ;;  %v369_v33 = vmax.f32 %v361_v25, 0.0  ;;  %v272_v34 = vadd.f32 %v774_v9, %v258_v26  ;;  %v313_v35 = vadd.f32 %v774_v9, %v305_v27 }
  0x27   : > { %v418_v36 = vmax.f32 %v410_v28, 0.0  ;;  %v362_v37 = vadd.f32 %v774_v9, %v354_v29  ;;  %v411_v38 = vadd.f32 %v774_v9, %v403_v30  ;;  %v259_v39 = vmul.f32 %v600_v31, %v765_v0 }
  0x28   : > { %434 = vst.msk [vmem:[%s803_s27 + $0x10] sm:$0xff] %vm431_vm0, %v425_v32  ;;  %v377_v40 = vmax.f32 %v328_v20, %v369_v33  ;;  %v280_v41 = vmax.f32 %v272_v34, 0.0  ;;  %v321_v42 = vmax.f32 %v313_v35, 0.0  ;;  %v616_v43 = vunpack.c.h.bf16 %v658_v4 }
  0x29   : > { %v370_v46 = vmax.f32 %v362_v37, 0.0  ;;  %v419_v47 = vmax.f32 %v411_v38, 0.0  ;;  %v273_v48 = vadd.f32 %v774_v9, %v259_v39  ;;  %v632_v49 = vunpack.c.h.bf16 %v662_v10 }
  0x2a   : > { %v426_v51 = vmax.f32 %v377_v40, %v418_v36  ;;  %v329_v52 = vmax.f32 %v280_v41, %v321_v42  ;;  %v306_v53 = vmul.f32 %v616_v43, %v765_v0  ;;  %v648_v54 = vunpack.c.h.bf16 %v666_v11 }
  0x2b   : > { %v281_v56 = vmax.f32 %v273_v48, 0.0  ;;  %v355_v57 = vmul.f32 %v632_v49, %v765_v0  ;;  %v603_v58 = vunpack.c.l.bf16 %v655_v44  ;;  %v619_v59 = vunpack.c.l.bf16 %v659_v45 }
  0x2c   : > { %435 = vst.msk [vmem:[%s803_s27 + $0x18] sm:$0xff] %vm431_vm0, %v426_v51  ;;  %v378_v60 = vmax.f32 %v329_v52, %v370_v46  ;;  %v314_v61 = vadd.f32 %v774_v9, %v306_v53  ;;  %v404_v62 = vmul.f32 %v648_v54, %v765_v0  ;;  %v635_v63 = vunpack.c.l.bf16 %v663_v50 }
  0x2d   : > { %v363_v1 = vadd.f32 %v774_v9, %v355_v57  ;;  %v260_v2 = vmul.f32 %v603_v58, %v765_v0  ;;  %v307_v3 = vmul.f32 %v619_v59, %v765_v0  ;;  %v651_v4 = vunpack.c.l.bf16 %v667_v55 }
  0x2e   : > { %v427_v5 = vmax.f32 %v378_v60, %v419_v47  ;;  %v322_v6 = vmax.f32 %v314_v61, 0.0  ;;  %v412_v7 = vadd.f32 %v774_v9, %v404_v62  ;;  %v356_v8 = vmul.f32 %v635_v63, %v765_v0 }
  0x2f   : > { %v371_v10 = vmax.f32 %v363_v1, 0.0  ;;  %v274_v11 = vadd.f32 %v774_v9, %v260_v2  ;;  %v315_v12 = vadd.f32 %v774_v9, %v307_v3  ;;  %v405_v13 = vmul.f32 %v651_v4, %v765_v0 }
  0x30   : > { %436 = vst.msk [vmem:[%s803_s27 + $0x20] sm:$0xff] %vm431_vm0, %v427_v5  ;;  %v330_v14 = vmax.f32 %v281_v56, %v322_v6  ;;  %v420_v15 = vmax.f32 %v412_v7, 0.0  ;;  %v364_v16 = vadd.f32 %v774_v9, %v356_v8  ;;  %v604_v17 = vunpack.c.h.bf16 %v655_v44 }
  0x31   : > { %v282_v18 = vmax.f32 %v274_v11, 0.0  ;;  %v323_v19 = vmax.f32 %v315_v12, 0.0  ;;  %v413_v20 = vadd.f32 %v774_v9, %v405_v13  ;;  %v620_v21 = vunpack.c.h.bf16 %v659_v45 }
  0x32   : > { %v379_v22 = vmax.f32 %v330_v14, %v371_v10  ;;  %v372_v23 = vmax.f32 %v364_v16, 0.0  ;;  %v261_v24 = vmul.f32 %v604_v17, %v765_v0  ;;  %v636_v25 = vunpack.c.h.bf16 %v663_v50 }
  0x33   : > { %v331_v26 = vmax.f32 %v282_v18, %v323_v19  ;;  %v421_v27 = vmax.f32 %v413_v20, 0.0  ;;  %v308_v28 = vmul.f32 %v620_v21, %v765_v0  ;;  %v652_v29 = vunpack.c.h.bf16 %v667_v55 }
  0x34   : > { %v428_v30 = vmax.f32 %v379_v22, %v420_v15  ;;  %v275_v31 = vadd.f32 %v774_v9, %v261_v24  ;;  %v357_v32 = vmul.f32 %v636_v25, %v765_v0 }
  0x35   : > { %v380_v33 = vmax.f32 %v331_v26, %v372_v23  ;;  %v316_v34 = vadd.f32 %v774_v9, %v308_v28  ;;  %v406_v35 = vmul.f32 %v652_v29, %v765_v0 }
  0x36   : > { %437 = vst.msk [vmem:[%s803_s27 + $0x28] sm:$0xff] %vm431_vm0, %v428_v30  ;;  %v283_v36 = vmax.f32 %v275_v31, 0.0  ;;  %v365_v37 = vadd.f32 %v774_v9, %v357_v32 }
  0x37   : > { %v429_v38 = vmax.f32 %v380_v33, %v421_v27  ;;  %v324_v39 = vmax.f32 %v316_v34, 0.0  ;;  %v414_v40 = vadd.f32 %v774_v9, %v406_v35 }
  0x38   : > { %v373_v41 = vmax.f32 %v365_v37, 0.0 }
  0x39   : > { %438 = vst.msk [vmem:[%s803_s27 + $0x30] sm:$0xff] %vm431_vm0, %v429_v38  ;;  %v332_v42 = vmax.f32 %v283_v36, %v324_v39  ;;  %v422_v43 = vmax.f32 %v414_v40, 0.0 }
  0x3b   : > { %v381_v44 = vmax.f32 %v332_v42, %v373_v41 }
  0x3d   : > { %v430_v45 = vmax.f32 %v381_v44, %v422_v43 }
  0x3f   : > { %439 = vst.msk [vmem:[%s803_s27 + $0x38] sm:$0xff] %vm431_vm0, %v430_v45 }
  0x40 PF: > { %s13_s14 = sadd.s32 1, %s714_s14   ;;  %s887_s12 = smov %s710_s13 }
  0x41   : > { %p10_p5 = scmp.ge.s32.totalorder %s13_s14, 4   ;;  %s888_s13 = smov %s890_s15 }
  0x43   :  { %12 = sbr.rel (!%p10_p5) target bundleno = 2 (0x2), region = 71 }

// kernel: conv_block_forward.2
= control target key start
LH: loop header
LB: loop body
LE: loop exit
PB: predicated region body
PF: predicated region fallthrough
CT: control target
= control target key end

     0   :  { %s6224_s15 = smov 0   ;;  %s6226_s16 = smov 0   ;;  %s7188_s0 = inlined_call_operand.vmem [shape: bf16[2,36,9,4], index: 0, kind: input, shape index: {}]   ;;  %s7189_s1 = inlined_call_operand.vmem [shape: bf16[9,4,8], index: 1, kind: input, shape index: {}]   ;;  %s7190_s2 = inlined_call_operand.vmem [shape: bf16[2,32,8,8], index: 2, kind: output, shape index: {0}]   ;;  %s7191_s3 = inlined_call_operand.vmem [shape: f32[2,1,8], index: 3, kind: output, shape index: {1}]   ;;  %s7192_s4 = inlined_call_operand.vmem [shape: f32[2,1,8], index: 4, kind: output, shape index: {2}]  }
   0x1   :  { %s6228_s17 = smov 0  }
   0x2 LB: > { %s27_s18 = sadd.s32 1, %s6193_s16  ;;  %p4865_p0 = scmp.ge.s32.totalorder %s6197_s17, 1  ;;  %s6197_s17 = sphi %s6228_s17, %s15_s17   ;;  %s6193_s16 = sphi %s6226_s16, %s7196_s16   ;;  %s6189_s15 = sphi %s6224_s15, %s7195_s15  }
   0x3   : > { %p29_p1 = scmp.ge.s32.totalorder %s27_s18, 2  ;;  %p194_p2 = scmp.lt.s32.totalorder %s6197_s17, 3 }
   0x5   : > { %s7198_s18 = smov (%p29_p1, %s27_s18), 0  ;;  %p195_p3 = pnand %p4865_p0, %p194_p2 }
   0x6   : > { %v269_v0 = vld [vmem:[%s7189_s1] sm:$0x3] (!%p195_p3)  ;;  %vm442_vm0 = vcmask (!%p195_p3), 1041408   ;;  %p239_p4 = scmp.lt.s32.totalorder (!%p195_p3), %s6189_s15, 1  ;;  %v4870_v2 = vld [vmem:[%s7189_s1 + $0x4] sm:$0x3] (!%p195_p3) }
   0x7   : > { %198 = sbr.rel (%p195_p3) target bundleno = 560 (0x230), region = 28  ;;  %6079 = vmatprep.subr.msk.bf16.mxu1 (!%p195_p3), %vm442_vm0, %v269_v0  ;;  %v6247_v1 = vsel (!%p195_p3), %vm442_vm0, %v269_v0, 0  ;;  %v6255_v3 = vld [vmem:[%s7189_s1 + $0x2] sm:$0x3] (!%p195_p3)  ;;  %6076 = vmatprep.subr.msk.bf16.mxu0 (!%p195_p3), %vm442_vm0, %v4870_v2  ;;  %v6262_v4 = vsel (!%p195_p3), %vm442_vm0, %v4870_v2, 0  ;;  %vm429_vm1 = vcmask (!%p195_p3), 31744  }
   0x8   : > { %5491 = vmatpush3.bf16.msra.mxu1 (!%p195_p3), %v6247_v1  ;;  %5461 = vmatpush3.bf16.msra.mxu0 (!%p195_p3), %v6262_v4  ;;  %v6270_v5 = vld [vmem:[%s7189_s1 + $0xe] sm:$0x3] (!%p195_p3)  ;;  %v6275_v6 = vld [vmem:[%s7189_s1 + $0xc] sm:$0x3] (!%p195_p3)  ;;  %v6281_v7 = vsel (!%p195_p3), %vm442_vm0, %v6255_v3, 0  ;;  %vm4478_vm5 = vcmask (!%p195_p3), 60416  }
   0x9   : > { %6080 = vmatprep.subr.msk.bf16.mxu1 (!%p195_p3), %vm442_vm0, %v6255_v3  ;;  %6077 = vmatprep.subr.msk.bf16.mxu0 (!%p195_p3), %vm442_vm0, %v269_v0  ;;  %vm302_vm2 = vsmask.f32 (!%p195_p3), 3328  ;;  %vm303_vm3 = vsmask.f32 (!%p195_p3), 7440  ;;  %v6290_v8 = vsel (!%p195_p3), %vm442_vm0, %v6270_v5, 0  ;;  %v6294_v9 = vsel (!%p195_p3), %vm442_vm0, %v6275_v6, 0 }
   0xa   : > { %vm6344_vm4 = vmor (!%p195_p3), %vm302_vm2, %vm303_vm3  ;;  %vm4417_vm6 = vcmask (!%p195_p3), 64512   ;;  %vm4694_vm7 = vcmask (!%p195_p3), 57344  }
   0xe   : > { %s7200_s15 = smov (!%p239_p4, %s6189_s15), 1 }
   0xf   : > { %s6112_s29 = smul.u32 288, %s7200_s15  ;;  %s5279_s5 = sshll.u32 %s7200_s15, 7 }
  0x10   : > { %s7035_s8 = scalar_lea.vmem %s7190_s2, %s5279_s5  ;;  %s261_s11 = scalar_lea.vmem %s7191_s3, %s7200_s15 }
  0x11   : > { %s6286_s6 = scalar_lea.vmem %s7188_s0, %s6112_s29  ;;  %s267_s14 = scalar_lea.vmem %s7192_s4, %s7200_s15 }
  0x12   : > { %v6297_v10 = vld [vmem:[%s6286_s6 + $0x48] ss:$8 sps:$4 sm:$0xff]   ;;  %v6300_v11 = vld [vmem:[%s6286_s6 + $0x58] ss:$8 sps:$4 sm:$0xff]   ;;  %v294_v15 = vld [vmem:[%s6286_s6 + $0x4] sm:$0x1] }
  0x13   : > { %5492 = vmatprep.mubr.msk.bf16.mxu1 %vm429_vm1, %v6297_v10  ;;  %v6305_v12 = vld [vmem:[%s6286_s6 + $0x68] ss:$8 sps:$4 sm:$0xff]   ;;  %v6310_v13 = vld [vmem:[%s6286_s6] sm:$0xf]  ;;  %v295_v16 = vld [vmem:[%s6286_s6 + $0xc] sm:$0x1] }
  0x14   : > { %5493 = vmatmul.mubr.msk.bf16.vlgmr.msra.gmra.mrb[0].mxu1 %vm429_vm1, %v6300_v11  ;;  %v6313_v14 = vld [vmem:[%s6286_s6 + $0x8] sm:$0xf]  ;;  %v306_v17 = vshrl.u32 %v6310_v13, 16  ;;  %v309_v18 = vshll.u32 %v6310_v13, 16  ;;  %v315_v19 = vshll.u32 %v294_v15, 16  ;;  %v329_v22 = vshll.u32 %v295_v16, 16 }
  0x15   : > { %5496 = vmatprep.mubr.msk.bf16.mxu1 %vm429_vm1, %v6305_v12  ;;  %5501 = vmatpush3.bf16.msra.mxu1 %v6281_v7  ;;  %v320_v20 = vshrl.u32 %v6313_v14, 16  ;;  %v323_v21 = vshll.u32 %v6313_v14, 16  ;;  %v6326_v27 = vld [vmem:[%s6286_s6 + $0x78] ss:$8 sps:$4 sm:$0xff]   ;;  %v6329_v30 = vld [vmem:[%s6286_s6 + $0x10] sm:$0xf]  ;;  %v4885_v32 = vcombine.low %v6310_v13, %v6313_v14 }
  0x16   : > { %6081 = vmatprep.subr.msk.bf16.mxu1 %vm442_vm0, %v4870_v2  ;;  %v308_v23 = vrot.slane %v306_v17, 4  ;;  %v311_v24 = vrot.slane %v309_v18, 5  ;;  %v317_v25 = vrot.slane %v315_v19, 5  ;;  %v331_v29 = vrot.slane %v329_v22, 5  ;;  %v6332_v31 = vld [vmem:[%s6286_s6 + $0x18] sm:$0xf] }
  0x17   : > { %v322_v26 = vrot.slane %v320_v20, 4  ;;  %v325_v28 = vrot.slane %v323_v21, 5  ;;  %v296_v34 = vld [vmem:[%s6286_s6 + $0x14] sm:$0x1]  ;;  %v297_v35 = vld [vmem:[%s6286_s6 + $0x1c] sm:$0x1]  ;;  %v4886_v38 = vcombine.low %v6329_v30, %v6332_v31 }
  0x18   : > { %v312_v33 = vor.u32 %v311_v24, %v308_v23  ;;  %v334_v36 = vshrl.u32 %v6329_v30, 16  ;;  %v337_v37 = vshll.u32 %v6329_v30, 16  ;;  %v343_v41 = vshll.u32 %v296_v34, 16  ;;  %v6351_v44 = vld [vmem:[%s6286_s6 + $0x20] sm:$0xf] }
  0x19   : > { %v326_v40 = vor.u32 %v325_v28, %v322_v26  ;;  %v348_v42 = vshrl.u32 %v6332_v31, 16  ;;  %v351_v43 = vshll.u32 %v6332_v31, 16  ;;  %v357_v48 = vshll.u32 %v297_v35, 16  ;;  %v6354_v49 = vld [vmem:[%s6286_s6 + $0x28] sm:$0xf] }
  0x1a   : > { %v313_v45 = vrot.slane %v312_v33, 4  ;;  %v336_v46 = vrot.slane %v334_v36, 4  ;;  %v339_v47 = vrot.slane %v337_v37, 5  ;;  %v345_v51 = vrot.slane %v343_v41, 5  ;;  %v298_v54 = vld [vmem:[%s6286_s6 + $0x24] sm:$0x1] }
  0x1b   : > { %v327_v50 = vrot.slane %v326_v40, 4  ;;  %v350_v52 = vrot.slane %v348_v42, 4  ;;  %v353_v53 = vrot.slane %v351_v43, 5  ;;  %v359_v57 = vrot.slane %v357_v48, 5  ;;  %v299_v61 = vld [vmem:[%s6286_s6 + $0x2c] sm:$0x1] }
  0x1c   : > { %5497 = vmatmul.mubr.msk.bf16.gmra.mrb[4].mxu1 %vm429_vm1, %v6326_v27  ;;  %v318_v55 = vsel %vm6344_vm4, %v313_v45, %v317_v25  ;;  %v340_v56 = vor.u32 %v339_v47, %v336_v46  ;;  %v362_v58 = vshrl.u32 %v6351_v44, 16  ;;  %v365_v62 = vshll.u32 %v6351_v44, 16  ;;  %v6367_v0 = vld [vmem:[%s6286_s6 + $0x30] sm:$0xf]  ;;  %v300_v22 = vld [vmem:[%s6286_s6 + $0x34] sm:$0x1] }
  0x1d   : > { %v332_v59 = vsel %vm6344_vm4, %v327_v50, %v331_v29  ;;  %v354_v60 = vor.u32 %v353_v53, %v350_v52  ;;  %v371_v63 = vshll.u32 %v298_v54, 16  ;;  %v376_v17 = vshrl.u32 %v6354_v49, 16  ;;  %v6377_v26 = vld [vmem:[%s6286_s6 + $0x38] sm:$0xf]  ;;  %v301_v35 = vld [vmem:[%s6286_s6 + $0x3c] sm:$0x1] }
  0x1e   : > { %v4877_v2 = vcombine.low %v318_v55, %v332_v59  ;;  %v341_v15 = vrot.slane %v340_v56, 4  ;;  %v364_v16 = vrot.slane %v362_v58, 4  ;;  %v367_v19 = vrot.slane %v365_v62, 5  ;;  %v4917_v37 = vld [vmem:[%s6286_s6 + $0x48] sm:$0xf] }
  0x1f   : > { %v355_v18 = vrot.slane %v354_v60, 4  ;;  %v373_v20 = vrot.slane %v371_v63, 5  ;;  %v379_v21 = vshll.u32 %v6354_v49, 16  ;;  %v378_v24 = vrot.slane %v376_v17, 4  ;;  %v4918_v50 = vld [vmem:[%s6286_s6 + $0x4c] sm:$0x1] }
  0x20   : > { %5462 = vmatprep.mubr.msk.bf16.mxu0 %vm429_vm1, %v4877_v2  ;;  %v346_v23 = vsel %vm6344_vm4, %v341_v15, %v345_v51  ;;  %5502 = vmatprep.mubr.msk.bf16.mxu1 %vm429_vm1, %v4877_v2  ;;  %v385_v25 = vshll.u32 %v299_v61, 16  ;;  %v390_v28 = vshrl.u32 %v6367_v0, 16  ;;  %v368_v33 = vor.u32 %v367_v19, %v364_v16  ;;  %v4919_v54 = vld [vmem:[%s6286_s6 + $0x50] sm:$0xf]  ;;  %v4920_v62 = vld [vmem:[%s6286_s6 + $0x54] sm:$0x1] }
  0x21   : > { %v360_v29 = vsel %vm6344_vm4, %v355_v18, %v359_v57  ;;  %v381_v34 = vrot.slane %v379_v21, 5  ;;  %v393_v36 = vshll.u32 %v6367_v0, 16  ;;  %v399_v43 = vshll.u32 %v300_v22, 16 }
  0x22   : > { %v4878_v40 = vcombine.low %v346_v23, %v360_v29  ;;  %v387_v41 = vrot.slane %v385_v25, 5  ;;  %v392_v42 = vrot.slane %v390_v28, 4  ;;  %v369_v45 = vrot.slane %v368_v33, 4  ;;  %v4921_v23 = vld [vmem:[%s6286_s6 + $0x58] sm:$0xf] }
  0x23   : > { %v382_v46 = vor.u32 %v381_v34, %v378_v24  ;;  %v395_v47 = vrot.slane %v393_v36, 5  ;;  %v404_v48 = vshrl.u32 %v6377_v26, 16  ;;  %v401_v51 = vrot.slane %v399_v43, 5  ;;  %v4922_v24 = vld [vmem:[%s6286_s6 + $0x5c] sm:$0x1] }
  0x24   : > { %5463 = vmatmul.mubr.msk.bf16.vlgmr.msra.gmra.mrb[0].mxu0 %vm429_vm1, %v4878_v40  ;;  %5503 = vmatmul.mubr.msk.bf16.vlgmr.msra.gmra.mrb[0].mxu1 %vm429_vm1, %v4878_v40  ;;  %v407_v52 = vshll.u32 %v6377_v26, 16  ;;  %v413_v53 = vshll.u32 %v301_v35, 16  ;;  %v875_v55 = vshrl.u32 %v4917_v37, 16  ;;  %v374_v56 = vsel %vm6344_vm4, %v369_v45, %v373_v20  ;;  %v4923_v33 = vld [vmem:[%s6286_s6 + $0x60] sm:$0xf] }
  0x25   : > { %5471 = vmatpush3.bf16.msra.mxu0 %v6247_v1  ;;  %v383_v57 = vrot.slane %v382_v46, 4  ;;  %v396_v58 = vor.u32 %v395_v47, %v392_v42  ;;  %v406_v59 = vrot.slane %v404_v48, 4  ;;  %5511 = vmatpush3.bf16.msra.mxu1 %v6262_v4  ;;  %v878_v2 = vshll.u32 %v4917_v37, 16  ;;  %v4924_v48 = vld [vmem:[%s6286_s6 + $0x64] sm:$0x1] }
  0x26   : > { %v409_v60 = vrot.slane %v407_v52, 5  ;;  %v415_v61 = vrot.slane %v413_v53, 5  ;;  %6078 = vmatprep.subr.msk.bf16.mxu0 %vm442_vm0, %v6255_v3  ;;  %v877_v63 = vrot.slane %v875_v55, 4  ;;  %6084 = vmatprep.subr.msk.bf16.mxu1 %vm442_vm0, %v6270_v5  ;;  %v884_v17 = vshll.u32 %v4918_v50, 16 }
  0x27   : > { %v388_v15 = vsel %vm6344_vm4, %v383_v57, %v387_v41  ;;  %v397_v16 = vrot.slane %v396_v58, 4  ;;  %v889_v18 = vshrl.u32 %v4919_v54, 16  ;;  %v880_v21 = vrot.slane %v878_v2, 5  ;;  %v4927_v2 = vld [vmem:[%s6286_s6 + $0x70] sm:$0xf] }
  0x28   : > { %v4879_v19 = vcombine.low %v374_v56, %v388_v15  ;;  %v410_v20 = vor.u32 %v409_v60, %v406_v59  ;;  %v892_v22 = vshll.u32 %v4919_v54, 16  ;;  %v886_v25 = vrot.slane %v884_v17, 5  ;;  %v4926_v56 = vld [vmem:[%s6286_s6 + $0x6c] sm:$0x1]  ;;  %v4928_v15 = vld [vmem:[%s6286_s6 + $0x74] sm:$0x1] }
  0x29   : > { %v402_v3 = vsel %vm6344_vm4, %v397_v16, %v401_v51  ;;  %v891_v28 = vrot.slane %v889_v18, 4  ;;  %v898_v29 = vshll.u32 %v4920_v62, 16  ;;  %v881_v35 = vor.u32 %v880_v21, %v877_v63  ;;  %v4925_v51 = vld [vmem:[%s6286_s6 + $0x68] sm:$0xf]  ;;  %v4929_v21 = vld [vmem:[%s6286_s6 + $0x78] sm:$0xf] }
  0x2a   : > { %5466 = vmatprep.mubr.msk.bf16.mxu0 %vm429_vm1, %v4879_v19  ;;  %v411_v34 = vrot.slane %v410_v20, 4  ;;  %5506 = vmatprep.mubr.msk.bf16.mxu1 %vm429_vm1, %v4879_v19  ;;  %v894_v36 = vrot.slane %v892_v22, 5  ;;  %v4887_v37 = vcombine.low %v6351_v44, %v6354_v49  ;;  %v903_v41 = vshrl.u32 %v4921_v23, 16 }
  0x2b   : > { %v900_v40 = vrot.slane %v898_v29, 5  ;;  %v906_v42 = vshll.u32 %v4921_v23, 16  ;;  %v912_v43 = vshll.u32 %v4922_v24, 16  ;;  %v882_v46 = vrot.slane %v881_v35, 4 }
  0x2c   : > { %v416_v45 = vsel %vm6344_vm4, %v411_v34, %v415_v61  ;;  %v895_v47 = vor.u32 %v894_v36, %v891_v28  ;;  %v917_v50 = vshrl.u32 %v4923_v33, 16  ;;  %v905_v53 = vrot.slane %v903_v41, 4  ;;  %v4932_v36 = vld [vmem:[%s6286_s6 + $0x84] sm:$0x1] }
  0x2d   : > { %v4880_v52 = vcombine.low %v402_v3, %v416_v45  ;;  %v908_v54 = vrot.slane %v906_v42, 5  ;;  %v914_v55 = vrot.slane %v912_v43, 5  ;;  %v887_v57 = vsel %vm6344_vm4, %v882_v46, %v886_v25  ;;  %v4930_v25 = vld [vmem:[%s6286_s6 + $0x7c] sm:$0x1]  ;;  %v4957_v46 = vld [vmem:[%s6286_s6 + $0x8] sm:$0xf] }
  0x2e   : > { %v896_v58 = vrot.slane %v895_v47, 4  ;;  %v919_v59 = vrot.slane %v917_v50, 4  ;;  %v920_v60 = vshll.u32 %v4923_v33, 16  ;;  %v926_v62 = vshll.u32 %v4924_v48, 16  ;;  %v4931_v33 = vld [vmem:[%s6286_s6 + $0x80] sm:$0xf] }
  0x2f   : > { %5467 = vmatmul.mubr.msk.bf16.gmra.mrb[4].mxu0 %vm429_vm1, %v4880_v52  ;;  %5507 = vmatmul.mubr.msk.bf16.gmra.mrb[4].mxu1 %vm429_vm1, %v4880_v52  ;;  %v909_v61 = vor.u32 %v908_v54, %v905_v53  ;;  %v4888_v63 = vcombine.low %v6367_v0, %v6377_v26  ;;  %v931_v16 = vshrl.u32 %v4925_v51, 16  ;;  %v934_v19 = vshll.u32 %v4925_v51, 16 }
  0x30   : > { %5472 = vmatprep.mubr.msk.bf16.mxu0 %vm429_vm1, %v4885_v32  ;;  %v901_v17 = vsel %vm6344_vm4, %v896_v58, %v900_v40  ;;  %v922_v18 = vrot.slane %v920_v60, 5  ;;  %v940_v20 = vshll.u32 %v4926_v56, 16  ;;  %v928_v24 = vrot.slane %v926_v62, 5  ;;  %v4958_v60 = vld [vmem:[%s6286_s6 + $0xc] sm:$0x1] }
  0x31   : > { %v4933_v22 = vcombine.low %v887_v57, %v901_v17  ;;  %v910_v23 = vrot.slane %v909_v61, 4  ;;  %v933_v3 = vrot.slane %v931_v16, 4  ;;  %v936_v29 = vrot.slane %v934_v19, 5  ;;  %v4959_v61 = vld [vmem:[%s6286_s6 + $0x10] sm:$0xf] }
  0x32   : > { %v923_v28 = vor.u32 %v922_v18, %v919_v59  ;;  %v942_v13 = vrot.slane %v940_v20, 5  ;;  %v945_v14 = vshrl.u32 %v4927_v2, 16  ;;  %v948_v34 = vshll.u32 %v4927_v2, 16  ;;  %v4960_v2 = vld [vmem:[%s6286_s6 + $0x14] sm:$0x1] }
  0x33   : > { %5512 = vmatprep.mubr.msk.bf16.mxu1 %vm429_vm1, %v4933_v22  ;;  %v915_v32 = vsel %vm6344_vm4, %v910_v23, %v914_v55  ;;  %v954_v35 = vshll.u32 %v4928_v15, 16  ;;  %v959_v40 = vshrl.u32 %v4929_v21, 16  ;;  %v937_v42 = vor.u32 %v936_v29, %v933_v3  ;;  %v6457_v15 = vld [vmem:[%s7189_s1 + $0xa] sm:$0x3]  ;;  %v4962_v18 = vld [vmem:[%s6286_s6 + $0x1c] sm:$0x1] }
  0x34   : > { %v924_v41 = vrot.slane %v923_v28, 4  ;;  %v947_v43 = vrot.slane %v945_v14, 4  ;;  %v962_v45 = vshll.u32 %v4929_v21, 16  ;;  %v950_v47 = vrot.slane %v948_v34, 5  ;;  %v4963_v28 = vld [vmem:[%s6286_s6 + $0x20] sm:$0xf] }
  0x35   : > { %v956_v48 = vrot.slane %v954_v35, 5  ;;  %v961_v50 = vrot.slane %v959_v40, 4  ;;  %v968_v51 = vshll.u32 %v4930_v25, 16  ;;  %v938_v53 = vrot.slane %v937_v42, 4  ;;  %v4964_v40 = vld [vmem:[%s6286_s6 + $0x24] sm:$0x1] }
  0x36   : > { %v929_v52 = vsel %vm6344_vm4, %v924_v41, %v928_v24  ;;  %v964_v54 = vrot.slane %v962_v45, 5  ;;  %v973_v55 = vshrl.u32 %v4931_v33, 16  ;;  %v951_v57 = vor.u32 %v950_v47, %v947_v43  ;;  %v4965_v41 = vld [vmem:[%s6286_s6 + $0x28] sm:$0xf] }
  0x37   : > { %5473 = vmatmul.mubr.msk.bf16.vlgmr.msra.gmra.mrb[0].mxu0 %vm429_vm1, %v4886_v38  ;;  %v4934_v56 = vcombine.low %v915_v32, %v929_v52  ;;  %v970_v58 = vrot.slane %v968_v51, 5  ;;  %v976_v59 = vshll.u32 %v4931_v33, 16  ;;  %v943_v30 = vsel %vm6344_vm4, %v938_v53, %v942_v13  ;;  %v4966_v52 = vld [vmem:[%s6286_s6 + $0x2c] sm:$0x1] }
  0x38   : > { %5481 = vmatpush3.bf16.msra.mxu0 %v6281_v7  ;;  %5476 = vmatprep.mubr.msk.bf16.mxu0 %vm429_vm1, %v4887_v37  ;;  %v965_v31 = vor.u32 %v964_v54, %v961_v50  ;;  %v975_v38 = vrot.slane %v973_v55, 4  ;;  %v982_v62 = vshll.u32 %v4932_v36, 16  ;;  %v952_v16 = vrot.slane %v951_v57, 4  ;;  %v4961_v37 = vld [vmem:[%s6286_s6 + $0x18] sm:$0xf] }
  0x39   : > { %5513 = vmatmul.mubr.msk.bf16.vlgmr.msra.gmra.mrb[0].mxu1 %vm429_vm1, %v4934_v56  ;;  %v978_v17 = vrot.slane %v976_v59, 5  ;;  %6082 = vmatprep.subr.msk.bf16.mxu0 %vm442_vm0, %v6275_v6  ;;  %v1217_v44 = vshrl.u32 %v4957_v46, 16  ;;  %v1220_v49 = vshll.u32 %v4957_v46, 16  ;;  %v1226_v21 = vshll.u32 %v4958_v60, 16  ;;  %v4967_v57 = vld [vmem:[%s6286_s6 + $0x30] sm:$0xf] }
  0x3a   : > { %5541 = vmatpush3.bf16.msra.mxu1 %v6290_v8  ;;  %v966_v19 = vrot.slane %v965_v31, 4  ;;  %v984_v20 = vrot.slane %v982_v62, 5  ;;  %v1231_v22 = vshrl.u32 %v4959_v61, 16  ;;  %v957_v23 = vsel %vm6344_vm4, %v952_v16, %v956_v48  ;;  %v4968_v60 = vld [vmem:[%s6286_s6 + $0x34] sm:$0x1] }
  0x3b   : > { %v979_v24 = vor.u32 %v978_v17, %v975_v38  ;;  %v1219_v3 = vrot.slane %v1217_v44, 4  ;;  %v1222_v25 = vrot.slane %v1220_v49, 5  ;;  %6085 = vmatprep.subr.msk.bf16.mxu1 %vm442_vm0, %v6457_v15  ;;  %v4935_v29 = vcombine.low %v943_v30, %v957_v23  ;;  %v4969_v31 = vld [vmem:[%s6286_s6 + $0x38] sm:$0xf]  ;;  %v4971_v23 = vld [vmem:[%s6286_s6 + $0x40] sm:$0xf] }
  0x3c   : > { %v971_v13 = vsel %vm6344_vm4, %v966_v19, %v970_v58  ;;  %v1228_v14 = vrot.slane %v1226_v21, 5  ;;  %v1233_v33 = vrot.slane %v1231_v22, 4  ;;  %v1234_v35 = vshll.u32 %v4959_v61, 16 }
  0x3d   : > { %v980_v32 = vrot.slane %v979_v24, 4  ;;  %v1223_v34 = vor.u32 %v1222_v25, %v1219_v3  ;;  %v1240_v36 = vshll.u32 %v4960_v2, 16  ;;  %5516 = vmatprep.mubr.msk.bf16.mxu1 %vm429_vm1, %v4935_v29  ;;  %v1245_v42 = vshrl.u32 %v4961_v37, 16  ;;  %v4972_v29 = vld [vmem:[%s6286_s6 + $0x44] sm:$0x1] }
  0x3e   : > { %v1248_v43 = vshll.u32 %v4961_v37, 16  ;;  %v1254_v45 = vshll.u32 %v4962_v18, 16  ;;  %v1259_v46 = vshrl.u32 %v4963_v28, 16  ;;  %v1236_v50 = vrot.slane %v1234_v35, 5  ;;  %v6493_v37 = vld [vmem:[%s7189_s1 + $0x10] sm:$0x3] }
  0x3f   : > { %5477 = vmatmul.mubr.msk.bf16.gmra.mrb[4].mxu0 %vm429_vm1, %v4888_v63  ;;  %v985_v47 = vsel %vm6344_vm4, %v980_v32, %v984_v20  ;;  %v1224_v48 = vrot.slane %v1223_v34, 4  ;;  %v1242_v51 = vrot.slane %v1240_v36, 5  ;;  %v1247_v54 = vrot.slane %v1245_v42, 4  ;;  %v4970_v18 = vld [vmem:[%s6286_s6 + $0x3c] sm:$0x1] }
  0x40   : > { %5482 = vmatprep.mubr.msk.bf16.mxu0 %vm429_vm1, %v6297_v10  ;;  %v4936_v53 = vcombine.low %v971_v13, %v985_v47  ;;  %v1250_v55 = vrot.slane %v1248_v43, 5  ;;  %v1256_v56 = vrot.slane %v1254_v45, 5  ;;  %v1237_v0 = vor.u32 %v1236_v50, %v1233_v33 }
  0x41   : > { %v1261_v26 = vrot.slane %v1259_v46, 4  ;;  %v1262_v63 = vshll.u32 %v4963_v28, 16  ;;  %v1268_v59 = vshll.u32 %v4964_v40, 16  ;;  %v1273_v61 = vshrl.u32 %v4965_v41, 16 }
  0x42   : > { %5517 = vmatmul.mubr.msk.bf16.gmra.mrb[4].mxu1 %vm429_vm1, %v4936_v53  ;;  %v1251_v58 = vor.u32 %v1250_v55, %v1247_v54  ;;  %v1276_v30 = vshll.u32 %v4965_v41, 16  ;;  %v1229_v10 = vsel %vm6344_vm4, %v1224_v48, %v1228_v14  ;;  %v1238_v38 = vrot.slane %v1237_v0, 4  ;;  %v6524_v53 = vld [vmem:[%s7189_s1 + $0x6] sm:$0x3] }
  0x43   : > { %v1264_v62 = vrot.slane %v1262_v63, 5  ;;  %v1287_v2 = vshrl.u32 %v4967_v57, 16  ;;  %v1275_v17 = vrot.slane %v1273_v61, 4  ;;  %v1282_v49 = vshll.u32 %v4966_v52, 16 }
  0x44   : > { %v1252_v16 = vrot.slane %v1251_v58, 4  ;;  %v1278_v44 = vrot.slane %v1276_v30, 5  ;;  %v1243_v19 = vsel %vm6344_vm4, %v1238_v38, %v1242_v51  ;;  %v1270_v21 = vrot.slane %v1268_v59, 5 }
  0x45   : > { %v1265_v20 = vor.u32 %v1264_v62, %v1261_v26  ;;  %v1289_v22 = vrot.slane %v1287_v2, 4  ;;  %v6499_v24 = vcombine.low %v1229_v10, %v1243_v19  ;;  %v1290_v28 = vshll.u32 %v4967_v57, 16  ;;  %v6146_v10 = vld [vmem:[%s6286_s6 + $0x18] ss:$8 sps:$4 sm:$0xff]  }
  0x46   : > { %v1257_v3 = vsel %vm6344_vm4, %v1252_v16, %v1256_v56  ;;  %v1279_v25 = vor.u32 %v1278_v44, %v1275_v17  ;;  %v1296_v14 = vshll.u32 %v4968_v60, 16  ;;  %v1301_v33 = vshrl.u32 %v4969_v31, 16  ;;  %v6145_v56 = vld [vmem:[%s6286_s6 + $0x8] ss:$8 sps:$4 sm:$0xff]   ;;  %v6148_v2 = vld [vmem:[%s6286_s6 + $0x38] ss:$8 sps:$4 sm:$0xff]  }
  0x47   : > { %5483 = vmatmul.mubr.msk.bf16.vlgmr.msra.gmra.mrb[0].mxu0 %vm429_vm1, %v6300_v11  ;;  %v1266_v13 = vrot.slane %v1265_v20, 4  ;;  %v1304_v32 = vshll.u32 %v4969_v31, 16  ;;  %5542 = vmatprep.mubr.msk.bf16.mxu1 %vm429_vm1, %v6499_v24  ;;  %v1284_v35 = vrot.slane %v1282_v49, 5  ;;  %v1292_v36 = vrot.slane %v1290_v28, 5  ;;  %v6604_v17 = vld [vmem:[%s6286_s6 + $0x60] ss:$8 sps:$4 sm:$0xff]  }
  0x48   : > { %5521 = vmatpush3.bf16.msra.mxu0 %v6294_v9  ;;  %v1280_v34 = vrot.slane %v1279_v25, 4  ;;  %v1315_v40 = vshrl.u32 %v4971_v23, 16  ;;  %5486 = vmatprep.mubr.msk.bf16.mxu0 %vm429_vm1, %v6305_v12  ;;  %v1303_v11 = vrot.slane %v1301_v33, 4  ;;  %v1310_v43 = vshll.u32 %v4970_v18, 16  ;;  %v6607_v44 = vld [vmem:[%s6286_s6 + $0x70] ss:$8 sps:$4 sm:$0xff]  }
  0x49   : > { %v1271_v41 = vsel %vm6344_vm4, %v1266_v13, %v1270_v21  ;;  %6083 = vmatprep.subr.msk.bf16.mxu0 %vm442_vm0, %v6493_v37  ;;  %v1306_v42 = vrot.slane %v1304_v32, 5  ;;  %v1293_v46 = vor.u32 %v1292_v36, %v1289_v22  ;;  %v1298_v47 = vrot.slane %v1296_v14, 5  ;;  %v5025_v49 = vld [vmem:[%s6286_s6 + $0x50] sm:$0xf]  ;;  %v6620_v18 = vld [vmem:[%s6286_s6 + $0x80] ss:$8 sps:$4 sm:$0xff]  }
  0x4a   : > { %v6515_v45 = vcombine.low %v1257_v3, %v1271_v41  ;;  %v6519_v48 = vsel %vm442_vm0, %v6457_v15, 0  ;;  %v1317_v12 = vrot.slane %v1315_v40, 4  ;;  %v1318_v51 = vshll.u32 %v4971_v23, 16  ;;  %v5027_v19 = vld [vmem:[%s6286_s6 + $0x58] sm:$0xf] }
  0x4b   : > { %v1307_v50 = vor.u32 %v1306_v42, %v1303_v11  ;;  %v1324_v52 = vshll.u32 %v4972_v29, 16  ;;  %v1285_v54 = vsel %vm6344_vm4, %v1280_v34, %v1284_v35  ;;  %v1294_v55 = vrot.slane %v1293_v46, 4  ;;  %v5026_v25 = vld [vmem:[%s6286_s6 + $0x54] sm:$0x1]  ;;  %v5028_v13 = vld [vmem:[%s6286_s6 + $0x5c] sm:$0x1] }
  0x4c   : > { %5543 = vmatmul.mubr.msk.bf16.vlgmr.msra.gmra.mrb[0].mxu1 %vm429_vm1, %v6515_v45  ;;  %v1312_v0 = vrot.slane %v1310_v43, 5  ;;  %v1320_v26 = vrot.slane %v1318_v51, 5  ;;  %v6553_v62 = vsel %vm442_vm0, %v6493_v37, 0  ;;  %v6567_v16 = vsel %vm442_vm0, %v6524_v53, 0  ;;  %v5029_v14 = vld [vmem:[%s6286_s6 + $0x60] sm:$0xf] }
  0x4d   : > { %5551 = vmatpush3.bf16.msra.mxu1 %v6519_v48  ;;  %v1308_v57 = vrot.slane %v1307_v50, 4  ;;  %v1299_v63 = vsel %vm6344_vm4, %v1294_v55, %v1298_v47  ;;  %v1326_v60 = vrot.slane %v1324_v52, 5  ;;  %v2050_v20 = vshrl.u32 %v5025_v49, 16  ;;  %v5031_v33 = vld [vmem:[%s6286_s6 + $0x68] sm:$0xf] }
  0x4e   : > { %6086 = vmatprep.subr.msk.bf16.mxu1 %vm442_vm0, %v6524_v53  ;;  %v6538_v58 = vcombine.low %v1285_v54, %v1299_v63  ;;  %v1321_v59 = vor.u32 %v1320_v26, %v1317_v12  ;;  %v2053_v21 = vshll.u32 %v5025_v49, 16  ;;  %v2064_v23 = vshrl.u32 %v5027_v19, 16  ;;  %v5033_v40 = vld [vmem:[%s6286_s6 + $0x70] sm:$0xf]  ;;  %v5035_v46 = vld [vmem:[%s6286_s6 + $0x78] sm:$0xf] }
  0x4f   : > { %5487 = vmatmul.mubr.msk.bf16.gmra.mrb[4].mxu0 %vm429_vm1, %v6326_v27  ;;  %v1313_v61 = vsel %vm6344_vm4, %v1308_v57, %v1312_v0  ;;  %v6147_v27 = vld [vmem:[%s6286_s6 + $0x28] ss:$8 sps:$4 sm:$0xff]   ;;  %v2067_v3 = vshll.u32 %v5027_v19, 16  ;;  %v2052_v28 = vrot.slane %v2050_v20, 4  ;;  %v2059_v36 = vshll.u32 %v5026_v25, 16 }
  0x50   : > { %5522 = vmatprep.mubr.msk.bf16.mxu0 %vm429_vm1, %v6145_v56  ;;  %5546 = vmatprep.mubr.msk.bf16.mxu1 %vm429_vm1, %v6538_v58  ;;  %v1322_v30 = vrot.slane %v1321_v59, 4  ;;  %v2055_v29 = vrot.slane %v2053_v21, 5  ;;  %v2066_v32 = vrot.slane %v2064_v23, 4  ;;  %v2073_v41 = vshll.u32 %v5028_v13, 16  ;;  %v5030_v51 = vld [vmem:[%s6286_s6 + $0x64] sm:$0x1] }
  0x51   : > { %v2069_v34 = vrot.slane %v2067_v3, 5  ;;  %v2078_v11 = vshrl.u32 %v5029_v14, 16  ;;  %v2081_v42 = vshll.u32 %v5029_v14, 16  ;;  %v2092_v43 = vshrl.u32 %v5031_v33, 16  ;;  %v5034_v20 = vld [vmem:[%s6286_s6 + $0x74] sm:$0x1] }
  0x52   : > { %v1327_v31 = vsel %vm6344_vm4, %v1322_v30, %v1326_v60  ;;  %v2056_v35 = vor.u32 %v2055_v29, %v2052_v28  ;;  %v2095_v50 = vshll.u32 %v5031_v33, 16  ;;  %v2061_v12 = vrot.slane %v2059_v36, 5  ;;  %v5037_v30 = vld [vmem:[%s6286_s6 + $0x80] sm:$0xf]  ;;  %v5036_v21 = vld [vmem:[%s6286_s6 + $0x7c] sm:$0x1] }
  0x53   : > { %v6548_v38 = vcombine.low %v1313_v61, %v1327_v31  ;;  %v2070_v47 = vor.u32 %v2069_v34, %v2066_v32  ;;  %v2106_v52 = vshrl.u32 %v5033_v40, 16  ;;  %v2109_v54 = vshll.u32 %v5033_v40, 16  ;;  %v5032_v61 = vld [vmem:[%s6286_s6 + $0x6c] sm:$0x1] }
  0x54   : > { %v2120_v55 = vshrl.u32 %v5035_v46, 16  ;;  %v2075_v57 = vrot.slane %v2073_v41, 5  ;;  %v2080_v0 = vrot.slane %v2078_v11, 4  ;;  %v2083_v26 = vrot.slane %v2081_v42, 5 }
  0x55   : > { %5547 = vmatmul.mubr.msk.bf16.gmra.mrb[4].mxu1 %vm429_vm1, %v6548_v38  ;;  %v2094_v63 = vrot.slane %v2092_v43, 4  ;;  %v2071_v59 = vrot.slane %v2070_v47, 4  ;;  %v2097_v60 = vrot.slane %v2095_v50, 5  ;;  %v2108_v31 = vrot.slane %v2106_v52, 4  ;;  %v5038_v43 = vld [vmem:[%s6286_s6 + $0x84] sm:$0x1] }
  0x56   : > { %5552 = vmatprep.mubr.msk.bf16.mxu1 %vm429_vm1, %v6499_v24  ;;  %v2087_v19 = vshll.u32 %v5030_v51, 16  ;;  %v2084_v3 = vor.u32 %v2083_v26, %v2080_v0  ;;  %v2101_v28 = vshll.u32 %v5032_v61, 16  ;;  %v2134_v29 = vshrl.u32 %v5037_v30, 16  ;;  %v5073_v61 = vld [vmem:[%s6286_s6 + $0x90] sm:$0xf] }
  0x57   : > { %5523 = vmatmul.mubr.msk.bf16.vlgmr.msra.gmra.mrb[0].mxu0 %vm429_vm1, %v6146_v10  ;;  %v2076_v23 = vsel %vm6344_vm4, %v2071_v59, %v2075_v57  ;;  %v2098_v25 = vor.u32 %v2097_v60, %v2094_v63  ;;  %v2137_v13 = vshll.u32 %v5037_v30, 16  ;;  %v2115_v32 = vshll.u32 %v5034_v20, 16 }
  0x58   : > { %5531 = vmatpush3.bf16.msra.mxu0 %v6553_v62  ;;  %5526 = vmatprep.mubr.msk.bf16.mxu0 %vm429_vm1, %v6147_v27  ;;  %v2089_v36 = vrot.slane %v2087_v19, 5  ;;  %v2085_v41 = vrot.slane %v2084_v3, 4  ;;  %v2103_v42 = vrot.slane %v2101_v28, 5  ;;  %v5076_v28 = vld [vmem:[%s6286_s6 + $0x9c] sm:$0x1] }
  0x59   : > { %6087 = vmatprep.subr.msk.bf16.mxu0 %vm442_vm0, %v6270_v5  ;;  %v6149_v5 = vld [vmem:[%s6286_s6 + $0x50] ss:$8 sps:$4 sm:$0xff]   ;;  %v2099_v11 = vrot.slane %v2098_v25, 4 }
  0x5b   : > { %v2104_v57 = vsel %vm6344_vm4, %v2099_v11, %v2103_v42 }
  0x5d   : > { %5553 = vmatmul.mubr.msk.bf16.vlgmr.msra.gmra.mrb[8].mxu1 %vm429_vm1, %v6515_v45 }
  0x5e   : > { %5556 = vmatprep.mubr.msk.bf16.mxu1 %vm429_vm1, %v6538_v58  ;;  %5561 = vmatpush3.bf16.msra.mxu1 %v6567_v16 }
  0x5f   : > { %5527 = vmatmul.mubr.msk.bf16.gmra.mrb[4].mxu0 %vm429_vm1, %v6148_v2  ;;  %6088 = vmatprep.subr.msk.bf16.mxu1 %vm442_vm0, %v6275_v6  ;;  %v6594_v6 = vld [vmem:[%s7189_s1 + $0x8] sm:$0x3] }
  0x60   : > { %5532 = vmatprep.mubr.msk.bf16.mxu0 %vm429_vm1, %v6499_v24  ;;  %v6625_v22 = vsel %vm442_vm0, %v6594_v6, 0 }
  0x65   : > { %5557 = vmatmul.mubr.msk.bf16.gmra.mrb[12].mxu1 %vm429_vm1, %v6548_v38 }
  0x66   : > { %5562 = vmatprep.mubr.msk.bf16.mxu1 %vm429_vm1, %v6145_v56  ;;  %v2123_v56 = vshll.u32 %v5035_v46, 16  ;;  %v2139_v46 = vrot.slane %v2137_v13, 5 }
  0x67   : > { %5533 = vmatmul.mubr.msk.bf16.vlgmr.msra.gmra.mrb[0].mxu0 %vm429_vm1, %v6515_v45 }
  0x68   : > { %5571 = vmatpush3.bf16.msra.mxu0 %v6290_v8  ;;  %5536 = vmatprep.mubr.msk.bf16.mxu0 %vm429_vm1, %v6538_v58 }
  0x69   : > { %6090 = vmatprep.subr.msk.bf16.mxu0 %vm442_vm0, %v6524_v53 }
  0x6d   : > { %5563 = vmatmul.mubr.msk.bf16.vlgmr.msra.gmra.mrb[8].mxu1 %vm429_vm1, %v6146_v10  ;;  %v2111_v10 = vrot.slane %v2109_v54, 5  ;;  %v5040_v54 = vld [vmem:[%s6286_s6 + $0x8c] sm:$0x1] }
  0x6e   : > { %5566 = vmatprep.mubr.msk.bf16.mxu1 %vm429_vm1, %v6147_v27  ;;  %5581 = vmatpush3.bf16.msra.mxu1 %v6294_v9  ;;  %v2122_v27 = vrot.slane %v2120_v55, 4  ;;  %v2090_v55 = vsel %vm6344_vm4, %v2085_v41, %v2089_v36  ;;  %v2157_v63 = vshll.u32 %v5040_v54, 16  ;;  %v5083_v41 = vld [vmem:[%s6286_s6 + $0xb8] sm:$0xf] }
  0x6f   : > { %5537 = vmatmul.mubr.msk.bf16.gmra.mrb[4].mxu0 %vm429_vm1, %v6548_v38  ;;  %6089 = vmatprep.subr.msk.bf16.mxu1 %vm442_vm0, %v6594_v6  ;;  %v5042_v59 = vcombine.low %v2090_v55, %v2104_v57  ;;  %v5078_v55 = vld [vmem:[%s6286_s6 + $0xa4] sm:$0x1] }
  0x70   : > { %5572 = vmatprep.mubr.msk.bf16.mxu0 %vm429_vm1, %v6149_v5 }
  0x75   : > { %5567 = vmatmul.mubr.msk.bf16.gmra.mrb[12].mxu1 %vm429_vm1, %v6148_v2  ;;  %v2125_v2 = vrot.slane %v2123_v56, 5  ;;  %v2143_v56 = vshll.u32 %v5038_v43, 16 }
  0x76   : > { %5582 = vmatprep.mubr.msk.bf16.mxu1 %vm429_vm1, %v6149_v5 }
  0x77   : > { %5573 = vmatmul.mubr.msk.bf16.vlgmr.msra.gmra.mrb[0].mxu0 %vm429_vm1, %v6604_v17  ;;  %v2126_v34 = vor.u32 %v2125_v2, %v2122_v27  ;;  %v2145_v60 = vrot.slane %v2143_v56, 5  ;;  %v2159_v27 = vrot.slane %v2157_v63, 5  ;;  %v5075_v2 = vld [vmem:[%s6286_s6 + $0x98] sm:$0xf] }
  0x78   : > { %5601 = vmatpush3.bf16.msra.mxu0 %v6567_v16  ;;  %5576 = vmatprep.mubr.msk.bf16.mxu0 %vm429_vm1, %v6607_v44  ;;  %v2552_v19 = vshll.u32 %v5075_v2, 16 }
  0x79   : > { %6091 = vmatprep.subr.msk.bf16.mxu0 %vm442_vm0, %v6594_v6  ;;  %v2127_v51 = vrot.slane %v2126_v34, 4 }
  0x7a   : > { %v2554_v13 = vrot.slane %v2552_v19, 5 }
  0x7d   : > { %5583 = vmatmul.mubr.msk.bf16.vlgmr.msra.gmra.mrb[0].mxu1 %vm429_vm1, %v6604_v17 }
  0x7e   : > { %5586 = vmatprep.mubr.msk.bf16.mxu1 %vm429_vm1, %v6607_v44  ;;  %5591 = vmatpush3.bf16.msra.mxu1 %v6625_v22 }
  0x7f   : > { %5577 = vmatmul.mubr.msk.bf16.gmra.mrb[4].mxu0 %vm429_vm1, %v6620_v18  ;;  %6092 = vmatprep.subr.msk.bf16.mxu1 %vm442_vm0, %v6493_v37  ;;  %v2057_v37 = vrot.slane %v2056_v35, 4  ;;  %v2129_v35 = vshll.u32 %v5036_v21, 16 }
  0x80   : > { %5602 = vmatprep.mubr.msk.bf16.mxu0 %vm429_vm1, %v6149_v5 }
  0x81   : > { %v2062_v49 = vsel %vm6344_vm4, %v2057_v37, %v2061_v12  ;;  %v2117_v12 = vrot.slane %v2115_v32, 5  ;;  %v2131_v52 = vrot.slane %v2129_v35, 5  ;;  %v2558_v35 = vshll.u32 %v5076_v28, 16 }
  0x82   : > { %v5041_v40 = vcombine.low %v2062_v49, %v2076_v23  ;;  %v2549_v49 = vshrl.u32 %v5075_v2, 16  ;;  %v5074_v23 = vld [vmem:[%s6286_s6 + $0x94] sm:$0x1] }
  0x83   : > { %v2544_v32 = vshll.u32 %v5074_v23, 16  ;;  %v2560_v54 = vrot.slane %v2558_v35, 5 }
  0x85   : > { %5587 = vmatmul.mubr.msk.bf16.gmra.mrb[4].mxu1 %vm429_vm1, %v6620_v18 }
  0x86   : > { %5592 = vmatprep.mubr.msk.bf16.mxu1 %vm429_vm1, %v6149_v5  ;;  %v5039_v5 = vld [vmem:[%s6286_s6 + $0x88] sm:$0xf] }
  0x87   : > { %5603 = vmatmul.mubr.msk.bf16.vlgmr.msra.gmra.mrb[8].mxu0 %vm429_vm1, %v6604_v17  ;;  %v2148_v14 = vshrl.u32 %v5039_v5, 16  ;;  %v2151_v33 = vshll.u32 %v5039_v5, 16  ;;  %v2535_v5 = vshrl.u32 %v5073_v61, 16 }
  0x88   : > { %5611 = vmatpush3.bf16.msra.mxu0 %v6625_v22  ;;  %5606 = vmatprep.mubr.msk.bf16.mxu0 %vm429_vm1, %v6607_v44 }
  0x89   : > { %6093 = vmatprep.subr.msk.bf16.mxu0 %vm442_vm0, %v6457_v15  ;;  %v2150_v47 = vrot.slane %v2148_v14, 4  ;;  %v2153_v50 = vrot.slane %v2151_v33, 5  ;;  %v5077_v14 = vld [vmem:[%s6286_s6 + $0xa0] sm:$0xf]  ;;  %v6153_v33 = vld [vmem:[%s6286_s6 + $0x90] ss:$8 sps:$4 sm:$0xff]  }
  0x8a   : > { %v2563_v36 = vshrl.u32 %v5077_v14, 16  ;;  %v2566_v42 = vshll.u32 %v5077_v14, 16 }
  0x8b   : > { %v2154_v26 = vor.u32 %v2153_v50, %v2150_v47 }
  0x8c   : > { %v2565_v56 = vrot.slane %v2563_v36, 4 }
  0x8d   : > { %5593 = vmatmul.mubr.msk.bf16.vlgmr.msra.gmra.mrb[8].mxu1 %vm429_vm1, %v6604_v17  ;;  %v2112_v17 = vor.u32 %v2111_v10, %v2108_v31  ;;  %v2155_v10 = vrot.slane %v2154_v26, 4  ;;  %v2568_v26 = vrot.slane %v2566_v42, 5 }
  0x8e   : > { %5596 = vmatprep.mubr.msk.bf16.mxu1 %vm429_vm1, %v6607_v44  ;;  %5621 = vmatpush3.bf16.msra.mxu1 %v6553_v62  ;;  %v6675_v44 = vld [vmem:[%s7189_s1] sm:$0x3] }
  0x8f   : > { %5607 = vmatmul.mubr.msk.bf16.gmra.mrb[12].mxu0 %vm429_vm1, %v6620_v18  ;;  %6095 = vmatprep.subr.msk.bf16.mxu1 %vm442_vm0, %v6675_v44  ;;  %v2113_v37 = vrot.slane %v2112_v17, 4  ;;  %v2160_v21 = vsel %vm6344_vm4, %v2155_v10, %v2159_v27  ;;  %v5079_v17 = vld [vmem:[%s6286_s6 + $0xa8] sm:$0xf]  ;;  %v2572_v27 = vshll.u32 %v5078_v55, 16 }
  0x90   : > { %5612 = vmatprep.mubr.msk.bf16.mxu0 %vm429_vm1, %v6499_v24  ;;  %v2136_v24 = vrot.slane %v2134_v29, 4  ;;  %v2551_v29 = vrot.slane %v2549_v49, 4  ;;  %v2577_v43 = vshrl.u32 %v5079_v17, 16  ;;  %v5087_v10 = vld [vmem:[%s6286_s6 + $0xc8] sm:$0xf] }
  0x91   : > { %v2636_v28 = vshll.u32 %v5087_v10, 16 }
  0x92   : > { %v2140_v0 = vor.u32 %v2139_v46, %v2136_v24  ;;  %v2555_v11 = vor.u32 %v2554_v13, %v2551_v29  ;;  %v2580_v24 = vshll.u32 %v5079_v17, 16  ;;  %v6726_v46 = vld [vmem:[%s6286_s6 + $0xa0] ss:$8 sps:$4 sm:$0xff]   ;;  %v2579_v63 = vrot.slane %v2577_v43, 4 }
  0x94   : > { %v2141_v31 = vrot.slane %v2140_v0, 4  ;;  %v2556_v57 = vrot.slane %v2555_v11, 4  ;;  %v5080_v0 = vld [vmem:[%s6286_s6 + $0xac] sm:$0x1] }
  0x95   : > { %5597 = vmatmul.mubr.msk.bf16.gmra.mrb[12].mxu1 %vm429_vm1, %v6620_v18  ;;  %v2118_v18 = vsel %vm6344_vm4, %v2113_v37, %v2117_v12  ;;  %v2605_v37 = vshrl.u32 %v5083_v41, 16  ;;  %v2608_v12 = vshll.u32 %v5083_v41, 16  ;;  %v2586_v2 = vshll.u32 %v5080_v0, 16 }
  0x96   : > { %5622 = vmatprep.mubr.msk.bf16.mxu1 %vm429_vm1, %v5041_v40  ;;  %v2146_v20 = vsel %vm6344_vm4, %v2141_v31, %v2145_v60  ;;  %v2561_v19 = vsel %vm6344_vm4, %v2556_v57, %v2560_v54 }
  0x97   : > { %5613 = vmatmul.mubr.msk.bf16.vlgmr.msra.gmra.mrb[8].mxu0 %vm429_vm1, %v6515_v45  ;;  %v2132_v45 = vsel %vm6344_vm4, %v2127_v51, %v2131_v52  ;;  %v5044_v25 = vcombine.low %v2146_v20, %v2160_v21  ;;  %v2546_v52 = vrot.slane %v2544_v32, 5  ;;  %v2610_v31 = vrot.slane %v2608_v12, 5 }
  0x98   : > { %5631 = vmatpush3.bf16.msra.mxu0 %v6519_v48  ;;  %5616 = vmatprep.mubr.msk.bf16.mxu0 %vm429_vm1, %v6538_v58  ;;  %v5043_v30 = vcombine.low %v2118_v18, %v2132_v45  ;;  %v2538_v58 = vshll.u32 %v5073_v61, 16  ;;  %v2582_v18 = vrot.slane %v2580_v24, 5  ;;  %v6155_v45 = vld [vmem:[%s6286_s6 + $0xb0] ss:$8 sps:$4 sm:$0xff]   ;;  %v2569_v20 = vor.u32 %v2568_v26, %v2565_v56 }
  0x99   : > { %6094 = vmatprep.subr.msk.bf16.mxu0 %vm442_vm0, %v6524_v53  ;;  %v2574_v32 = vrot.slane %v2572_v27, 5  ;;  %v2588_v41 = vrot.slane %v2586_v2, 5  ;;  %v2638_v24 = vrot.slane %v2636_v28, 5  ;;  %v5137_v2 = vld [vmem:[%s6286_s6 + $0xd8] sm:$0xf] }
  0x9a   : > { %v2540_v3 = vrot.slane %v2538_v58, 5  ;;  %v5084_v58 = vld [vmem:[%s6286_s6 + $0xbc] sm:$0x1]  ;;  %v2583_v21 = vor.u32 %v2582_v18, %v2579_v63  ;;  %v2570_v36 = vrot.slane %v2569_v20, 4 }
  0x9b   : > { %v2614_v17 = vshll.u32 %v5084_v58, 16  ;;  %v5138_v20 = vld [vmem:[%s6286_s6 + $0xdc] sm:$0x1] }
  0x9d   : > { %5623 = vmatmul.mubr.msk.bf16.vlgmr.msra.gmra.mrb[0].mxu1 %vm429_vm1, %v5042_v59  ;;  %v2616_v12 = vrot.slane %v2614_v17, 5 }
  0x9e   : > { %5626 = vmatprep.mubr.msk.bf16.mxu1 %vm429_vm1, %v5043_v30  ;;  %5651 = vmatpush3.bf16.msra.mxu1 %v6247_v1 }
  0x9f   : > { %5617 = vmatmul.mubr.msk.bf16.gmra.mrb[12].mxu0 %vm429_vm1, %v6548_v38  ;;  %6097 = vmatprep.subr.msk.bf16.mxu1 %vm442_vm0, %v6594_v6  ;;  %v2537_v38 = vrot.slane %v2535_v5, 4  ;;  %v5082_v5 = vld [vmem:[%s6286_s6 + $0xb4] sm:$0x1] }
  0xa0   : > { %5632 = vmatprep.mubr.msk.bf16.mxu0 %vm429_vm1, %v5041_v40  ;;  %v5081_v40 = vld [vmem:[%s6286_s6 + $0xb0] sm:$0xf]  ;;  %v2600_v13 = vshll.u32 %v5082_v5, 16  ;;  %v5139_v5 = vld [vmem:[%s6286_s6 + $0xe0] sm:$0xf] }
  0xa1   : > { %v2541_v34 = vor.u32 %v2540_v3, %v2537_v38  ;;  %v2591_v47 = vshrl.u32 %v5081_v40, 16  ;;  %v2594_v50 = vshll.u32 %v5081_v40, 16  ;;  %v2633_v3 = vshrl.u32 %v5087_v10, 16 }
  0xa2   : > { %v2584_v40 = vrot.slane %v2583_v21, 4  ;;  %v3326_v58 = vshrl.u32 %v5139_v5, 16  ;;  %v5140_v21 = vld [vmem:[%s6286_s6 + $0xe4] sm:$0x1] }
  0xa3   : > { %v2542_v51 = vrot.slane %v2541_v34, 4  ;;  %v2593_v60 = vrot.slane %v2591_v47, 4  ;;  %v2596_v61 = vrot.slane %v2594_v50, 5  ;;  %v6156_v34 = vld [vmem:[%s6286_s6 + $0xc0] ss:$8 sps:$4 sm:$0xff]   ;;  %v2635_v43 = vrot.slane %v2633_v3, 4 }
  0xa4   : > { %v2602_v50 = vrot.slane %v2600_v13, 5  ;;  %v2589_v55 = vsel %vm6344_vm4, %v2584_v40, %v2588_v41  ;;  %v3328_v3 = vrot.slane %v3326_v58, 4  ;;  %v5143_v13 = vld [vmem:[%s6286_s6 + $0xf0] sm:$0xf]  ;;  %v3335_v17 = vshll.u32 %v5140_v21, 16 }
  0xa5   : > { %5627 = vmatmul.mubr.msk.bf16.gmra.mrb[4].mxu1 %vm429_vm1, %v5044_v25  ;;  %v2547_v49 = vsel %vm6344_vm4, %v2542_v51, %v2546_v52  ;;  %v2597_v29 = vor.u32 %v2596_v61, %v2593_v60  ;;  %v5088_v51 = vld [vmem:[%s6286_s6 + $0xcc] sm:$0x1]  ;;  %v2575_v52 = vsel %vm6344_vm4, %v2570_v36, %v2574_v32  ;;  %v2639_v57 = vor.u32 %v2638_v24, %v2635_v43  ;;  %v5145_v32 = vld [vmem:[%s6286_s6 + $0xf8] sm:$0xf] }
  0xa6   : > { %5652 = vmatprep.mubr.msk.bf16.mxu1 %vm429_vm1, %v6153_v33  ;;  %v5089_v35 = vcombine.low %v2547_v49, %v2561_v19  ;;  %v2642_v0 = vshll.u32 %v5088_v51, 16  ;;  %v5090_v18 = vcombine.low %v2575_v52, %v2589_v55  ;;  %v3329_v49 = vshll.u32 %v5139_v5, 16  ;;  %v6829_v19 = vld [vmem:[%s6286_s6 + $0x108] ss:$8 sps:$4 sm:$0xff]   ;;  %v5144_v55 = vld [vmem:[%s6286_s6 + $0xf4] sm:$0x1] }
  0xa7   : > { %5633 = vmatmul.mubr.msk.bf16.vlgmr.msra.gmra.mrb[8].mxu0 %vm429_vm1, %v5042_v59  ;;  %v5085_v59 = vld [vmem:[%s6286_s6 + $0xc0] sm:$0xf]  ;;  %v2598_v47 = vrot.slane %v2597_v29, 4  ;;  %v5141_v29 = vld [vmem:[%s6286_s6 + $0xe8] sm:$0xf]  ;;  %v3354_v40 = vshrl.u32 %v5143_v13, 16 }
  0xa8   : > { %5641 = vmatpush3.bf16.msra.mxu0 %v6567_v16  ;;  %5636 = vmatprep.mubr.msk.bf16.mxu0 %vm429_vm1, %v5043_v30  ;;  %v2607_v30 = vrot.slane %v2605_v37, 4  ;;  %v2619_v23 = vshrl.u32 %v5085_v59, 16  ;;  %v2622_v38 = vshll.u32 %v5085_v59, 16  ;;  %v3331_v28 = vrot.slane %v3329_v49, 5  ;;  %v5149_v51 = vld [vmem:[%s6286_s6 + $0x108] sm:$0xf] }
  0xa9   : > { %6096 = vmatprep.subr.msk.bf16.mxu0 %vm442_vm0, %v6457_v15  ;;  %v2603_v26 = vsel %vm6344_vm4, %v2598_v47, %v2602_v50  ;;  %v3357_v41 = vshll.u32 %v5143_v13, 16  ;;  %v3337_v47 = vrot.slane %v3335_v17, 5  ;;  %v5142_v50 = vld [vmem:[%s6286_s6 + $0xec] sm:$0x1]  ;;  %v3363_v5 = vshll.u32 %v5144_v55, 16 }
  0xaa   : > { %v2611_v14 = vor.u32 %v2610_v31, %v2607_v30  ;;  %v2621_v11 = vrot.slane %v2619_v23, 4  ;;  %v2624_v42 = vrot.slane %v2622_v38, 5  ;;  %v2640_v30 = vrot.slane %v2639_v57, 4  ;;  %v6897_v55 = vld [vmem:[%s7189_s1 + $0xe] sm:$0x3] }
  0xab   : > { %v2644_v31 = vrot.slane %v2642_v0, 5  ;;  %v3332_v36 = vor.u32 %v3331_v28, %v3328_v3  ;;  %v3359_v57 = vrot.slane %v3357_v41, 5  ;;  %v5146_v0 = vld [vmem:[%s6286_s6 + $0xfc] sm:$0x1]  ;;  %v5152_v28 = vld [vmem:[%s6286_s6 + $0x114] sm:$0x1] }
  0xac   : > { %v2612_v37 = vrot.slane %v2611_v14, 4  ;;  %v2625_v56 = vor.u32 %v2624_v42, %v2621_v11  ;;  %v3321_v14 = vshll.u32 %v5138_v20, 16  ;;  %v3371_v11 = vshll.u32 %v5145_v32, 16  ;;  %v6870_v20 = vld [vmem:[%s7189_s1 + $0xc] sm:$0x3] }
  0xad   : > { %5653 = vmatmul.mubr.msk.bf16.vlgmr.msra.gmra.mrb[8].mxu1 %vm429_vm1, %v6726_v46  ;;  %v2645_v10 = vsel %vm6344_vm4, %v2640_v30, %v2644_v31  ;;  %v3365_v17 = vrot.slane %v3363_v5, 5 }
  0xae   : > { %5656 = vmatprep.mubr.msk.bf16.mxu1 %vm429_vm1, %v6155_v45  ;;  %5671 = vmatpush3.bf16.msra.mxu1 %v6625_v22  ;;  %v2617_v63 = vsel %vm6344_vm4, %v2612_v37, %v2616_v12  ;;  %v2626_v61 = vrot.slane %v2625_v56, 4  ;;  %v3323_v24 = vrot.slane %v3321_v14, 5  ;;  %v3356_v56 = vrot.slane %v3354_v40, 4 }
  0xaf   : > { %5637 = vmatmul.mubr.msk.bf16.gmra.mrb[12].mxu0 %vm429_vm1, %v5044_v25  ;;  %v6750_v25 = vld [vmem:[%s7189_s1 + $0x4] sm:$0x3]  ;;  %v5091_v60 = vcombine.low %v2603_v26, %v2617_v63  ;;  %v3373_v63 = vrot.slane %v3371_v11, 5  ;;  %v3419_v11 = vshll.u32 %v5152_v28, 16 }
  0xb0   : > { %5642 = vmatprep.mubr.msk.bf16.mxu0 %vm429_vm1, %v6153_v33  ;;  %6098 = vmatprep.subr.msk.bf16.mxu1 %vm442_vm0, %v6750_v25  ;;  %v5086_v33 = vld [vmem:[%s6286_s6 + $0xc4] sm:$0x1] }
  0xb1   : > { %v2628_v54 = vshll.u32 %v5086_v33, 16  ;;  %v3368_v33 = vshrl.u32 %v5145_v32, 16  ;;  %v5181_v32 = vld [vmem:[%s6286_s6 + $0x98] sm:$0xf] }
  0xb3   : > { %v2630_v59 = vrot.slane %v2628_v54, 5  ;;  %v3333_v54 = vrot.slane %v3332_v36, 4  ;;  %v3370_v26 = vrot.slane %v3368_v33, 4  ;;  %v5183_v36 = vld [vmem:[%s6286_s6 + $0xa0] sm:$0xf] }
  0xb5   : > { %5657 = vmatmul.mubr.msk.bf16.gmra.mrb[12].mxu1 %vm429_vm1, %v6156_v34 }
  0xb6   : > { %5672 = vmatprep.mubr.msk.bf16.mxu1 %vm429_vm1, %v5089_v35 }
  0xb7   : > { %5643 = vmatmul.mubr.msk.bf16.vlgmr.msra.gmra.mrb[0].mxu0 %vm429_vm1, %v6726_v46  ;;  %v6171_v46 = vld [vmem:[%s7189_s1 + $0x2] sm:$0x3] }
  0xb8   : > { %5661 = vmatpush3.bf16.msra.mxu0 %v6519_v48  ;;  %5646 = vmatprep.mubr.msk.bf16.mxu0 %vm429_vm1, %v6155_v45  ;;  %v2631_v45 = vsel %vm6344_vm4, %v2626_v61, %v2630_v59  ;;  %v5148_v59 = vld [vmem:[%s6286_s6 + $0x104] sm:$0x1] }
  0xb9   : > { %6099 = vmatprep.subr.msk.bf16.mxu0 %vm442_vm0, %v6171_v46  ;;  %v5092_v27 = vcombine.low %v2631_v45, %v2645_v10  ;;  %v3349_v45 = vshll.u32 %v5142_v50, 16  ;;  %v3391_v49 = vshll.u32 %v5148_v59, 16  ;;  %v3738_v50 = vshrl.u32 %v5183_v36, 16  ;;  %v5187_v59 = vld [vmem:[%s6286_s6 + $0xb0] sm:$0xf] }
  0xbb   : > { %v3351_v3 = vrot.slane %v3349_v45, 5 }
  0xbd   : > { %5673 = vmatmul.mubr.msk.bf16.vlgmr.msra.gmra.mrb[0].mxu1 %vm429_vm1, %v5090_v18 }
  0xbe   : > { %5676 = vmatprep.mubr.msk.bf16.mxu1 %vm429_vm1, %v5091_v60  ;;  %5681 = vmatpush3.bf16.msra.mxu1 %v6262_v4 }
  0xbf   : > { %5647 = vmatmul.mubr.msk.bf16.gmra.mrb[4].mxu0 %vm429_vm1, %v6156_v34  ;;  %6101 = vmatprep.subr.msk.bf16.mxu1 %vm442_vm0, %v6524_v53  ;;  %v6800_v53 = vld [vmem:[%s6286_s6 + $0xd8] ss:$8 sps:$4 sm:$0xff]   ;;  %v3340_v34 = vshrl.u32 %v5141_v29, 16 }
  0xc0   : > { %5662 = vmatprep.mubr.msk.bf16.mxu0 %vm429_vm1, %v5089_v35 }
  0xc1   : > { %v3342_v37 = vrot.slane %v3340_v34, 4 }
  0xc5   : > { %5677 = vmatmul.mubr.msk.bf16.gmra.mrb[4].mxu1 %vm429_vm1, %v5092_v27 }
  0xc6   : > { %5682 = vmatprep.mubr.msk.bf16.mxu1 %vm429_vm1, %v5089_v35 }
  0xc7   : > { %5663 = vmatmul.mubr.msk.bf16.vlgmr.msra.gmra.mrb[0].mxu0 %vm429_vm1, %v5090_v18 }
  0xc8   : > { %5691 = vmatpush3.bf16.msra.mxu0 %v6281_v7  ;;  %5666 = vmatprep.mubr.msk.bf16.mxu0 %vm429_vm1, %v5091_v60 }
  0xc9   : > { %6100 = vmatprep.subr.msk.bf16.mxu0 %vm442_vm0, %v6594_v6  ;;  %v6814_v6 = vld [vmem:[%s6286_s6 + $0xf8] ss:$8 sps:$4 sm:$0xff]  }
  0xcd   : > { %5683 = vmatmul.mubr.msk.bf16.vlgmr.msra.gmra.mrb[8].mxu1 %vm429_vm1, %v5090_v18 }
  0xce   : > { %5686 = vmatprep.mubr.msk.bf16.mxu1 %vm429_vm1, %v5091_v60  ;;  %5711 = vmatpush3.bf16.msra.mxu1 %v6567_v16  ;;  %v6811_v16 = vld [vmem:[%s6286_s6 + $0xe8] ss:$8 sps:$4 sm:$0xff]  }
  0xcf   : > { %5667 = vmatmul.mubr.msk.bf16.gmra.mrb[4].mxu0 %vm429_vm1, %v5092_v27  ;;  %6102 = vmatprep.subr.msk.bf16.mxu1 %vm442_vm0, %v6171_v46 }
  0xd0   : > { %5692 = vmatprep.mubr.msk.bf16.mxu0 %vm429_vm1, %v5089_v35  ;;  %v3343_v35 = vshll.u32 %v5141_v29, 16 }
  0xd2   : > { %v3345_v12 = vrot.slane %v3343_v35, 5 }
  0xd4   : > { %v3346_v31 = vor.u32 %v3345_v12, %v3342_v37  ;;  %v3741_v37 = vshll.u32 %v5183_v36, 16 }
  0xd5   : > { %5687 = vmatmul.mubr.msk.bf16.gmra.mrb[12].mxu1 %vm429_vm1, %v5092_v27 }
  0xd6   : > { %5712 = vmatprep.mubr.msk.bf16.mxu1 %vm429_vm1, %v6800_v53  ;;  %v3347_v13 = vrot.slane %v3346_v31, 4 }
  0xd7   : > { %5693 = vmatmul.mubr.msk.bf16.vlgmr.msra.gmra.mrb[8].mxu0 %vm429_vm1, %v5090_v18 }
  0xd8   : > { %5701 = vmatpush3.bf16.msra.mxu0 %v6625_v22  ;;  %5696 = vmatprep.mubr.msk.bf16.mxu0 %vm429_vm1, %v5091_v60  ;;  %v3312_v22 = vshrl.u32 %v5137_v2, 16  ;;  %v3399_v60 = vshll.u32 %v5149_v51, 16 }
  0xd9   : > { %6103 = vmatprep.subr.msk.bf16.mxu0 %vm442_vm0, %v6675_v44  ;;  %v3315_v44 = vshll.u32 %v5137_v2, 16  ;;  %v3360_v2 = vor.u32 %v3359_v57, %v3356_v56  ;;  %v5185_v57 = vld [vmem:[%s6286_s6 + $0xa8] sm:$0xf] }
  0xda   : > { %v3314_v23 = vrot.slane %v3312_v22, 4  ;;  %v3374_v22 = vor.u32 %v3373_v63, %v3370_v26  ;;  %v5182_v26 = vld [vmem:[%s6286_s6 + $0x9c] sm:$0x1]  ;;  %v3740_v63 = vrot.slane %v3738_v50, 4  ;;  %v3755_v45 = vshll.u32 %v5185_v57, 16 }
  0xdb   : > { %v3317_v38 = vrot.slane %v3315_v44, 5  ;;  %v3377_v44 = vshll.u32 %v5146_v0, 16  ;;  %v3361_v14 = vrot.slane %v3360_v2, 4  ;;  %v3733_v31 = vshll.u32 %v5182_v26, 16 }
  0xdd   : > { %5713 = vmatmul.mubr.msk.bf16.vlgmr.msra.gmra.mrb[0].mxu1 %vm429_vm1, %v6811_v16  ;;  %v3379_v34 = vrot.slane %v3377_v44, 5  ;;  %v3769_v44 = vshll.u32 %v5187_v59, 16 }
  0xde   : > { %5716 = vmatprep.mubr.msk.bf16.mxu1 %vm429_vm1, %v6814_v6  ;;  %5721 = vmatpush3.bf16.msra.mxu1 %v6281_v7  ;;  %v5147_v7 = vld [vmem:[%s6286_s6 + $0x100] sm:$0xf] }
  0xdf   : > { %5697 = vmatmul.mubr.msk.bf16.gmra.mrb[12].mxu0 %vm429_vm1, %v5092_v27  ;;  %6104 = vmatprep.subr.msk.bf16.mxu1 %vm442_vm0, %v6457_v15  ;;  %v3318_v15 = vor.u32 %v3317_v38, %v3314_v23  ;;  %v3382_v42 = vshrl.u32 %v5147_v7, 16  ;;  %v3385_v43 = vshll.u32 %v5147_v7, 16  ;;  %v3338_v27 = vsel %vm6344_vm4, %v3333_v54, %v3337_v47 }
  0xe0   : > { %5702 = vmatprep.mubr.msk.bf16.mxu0 %vm429_vm1, %v6800_v53  ;;  %v3401_v23 = vrot.slane %v3399_v60, 5  ;;  %v3375_v7 = vrot.slane %v3374_v22, 4  ;;  %v3366_v47 = vsel %vm6344_vm4, %v3361_v14, %v3365_v17  ;;  %v3421_v54 = vrot.slane %v3419_v11, 5  ;;  %v5186_v17 = vld [vmem:[%s6286_s6 + $0xac] sm:$0x1] }
  0xe1   : > { %v3319_v52 = vrot.slane %v3318_v15, 4  ;;  %v3384_v46 = vrot.slane %v3382_v42, 4  ;;  %v3387_v18 = vrot.slane %v3385_v43, 5  ;;  %v3393_v15 = vrot.slane %v3391_v49, 5  ;;  %v6922_v49 = vld [vmem:[%s7189_s1 + $0x10] sm:$0x3] }
  0xe2   : > { %v3724_v42 = vshrl.u32 %v5181_v32, 16  ;;  %v3727_v43 = vshll.u32 %v5181_v32, 16  ;;  %v3766_v22 = vshrl.u32 %v5187_v59, 16 }
  0xe3   : > { %v3324_v10 = vsel %vm6344_vm4, %v3319_v52, %v3323_v24  ;;  %v3388_v58 = vor.u32 %v3387_v18, %v3384_v46  ;;  %v3352_v24 = vsel %vm6344_vm4, %v3347_v13, %v3351_v3  ;;  %v3743_v46 = vrot.slane %v3741_v37, 5  ;;  %v5184_v18 = vld [vmem:[%s6286_s6 + $0xa4] sm:$0x1] }
  0xe4   : > { %v5153_v29 = vcombine.low %v3324_v10, %v3338_v27  ;;  %v3729_v56 = vrot.slane %v3727_v43, 5  ;;  %v5189_v10 = vld [vmem:[%s6286_s6 + $0xb8] sm:$0xf]  ;;  %v5191_v27 = vld [vmem:[%s6286_s6 + $0xc0] sm:$0xf]  ;;  %v3747_v5 = vshll.u32 %v5184_v18, 16 }
  0xe5   : > { %5717 = vmatmul.mubr.msk.bf16.gmra.mrb[4].mxu1 %vm429_vm1, %v6829_v19  ;;  %v3389_v35 = vrot.slane %v3388_v58, 4  ;;  %v3744_v2 = vor.u32 %v3743_v46, %v3740_v63  ;;  %v3768_v32 = vrot.slane %v3766_v22, 4  ;;  %v5190_v43 = vld [vmem:[%s6286_s6 + $0xbc] sm:$0x1]  ;;  %v6163_v63 = vld [vmem:[%s6286_s6 + $0xb8] ss:$8 sps:$4 sm:$0xff]  }
  0xe6   : > { %5722 = vmatprep.mubr.msk.bf16.mxu1 %vm429_vm1, %v6800_v53  ;;  %v3749_v14 = vrot.slane %v3747_v5, 5 }
  0xe7   : > { %5703 = vmatmul.mubr.msk.bf16.vlgmr.msra.gmra.mrb[0].mxu0 %vm429_vm1, %v6811_v16  ;;  %v3394_v12 = vsel %vm6344_vm4, %v3389_v35, %v3393_v15  ;;  %v3745_v13 = vrot.slane %v3744_v2, 4  ;;  %v5193_v35 = vld [vmem:[%s6286_s6 + $0xc8] sm:$0xf]  ;;  %v5196_v2 = vld [vmem:[%s6286_s6 + $0xd4] sm:$0x1] }
  0xe8   : > { %5731 = vmatpush3.bf16.msra.mxu0 %v6247_v1  ;;  %5706 = vmatprep.mubr.msk.bf16.mxu0 %vm429_vm1, %v6814_v6  ;;  %v5151_v1 = vld [vmem:[%s6286_s6 + $0x110] sm:$0xf] }
  0xe9   : > { %6105 = vmatprep.subr.msk.bf16.mxu0 %vm442_vm0, %v6750_v25  ;;  %v3396_v25 = vshrl.u32 %v5149_v51, 16  ;;  %v3410_v61 = vshrl.u32 %v5151_v1, 16  ;;  %v3413_v30 = vshll.u32 %v5151_v1, 16  ;;  %v3750_v50 = vsel %vm6344_vm4, %v3745_v13, %v3749_v14 }
  0xeb   : > { %v3398_v21 = vrot.slane %v3396_v25, 4  ;;  %v3415_v38 = vrot.slane %v3413_v30, 5 }
  0xed   : > { %5723 = vmatmul.mubr.msk.bf16.vlgmr.msra.gmra.mrb[8].mxu1 %vm429_vm1, %v6811_v16  ;;  %v3402_v40 = vor.u32 %v3401_v23, %v3398_v21  ;;  %v3783_v21 = vshll.u32 %v5189_v10, 16  ;;  %v3794_v23 = vshrl.u32 %v5191_v27, 16 }
  0xee   : > { %5726 = vmatprep.mubr.msk.bf16.mxu1 %vm429_vm1, %v6814_v6  ;;  %5741 = vmatpush3.bf16.msra.mxu1 %v6519_v48  ;;  %v3412_v48 = vrot.slane %v3410_v61, 4  ;;  %v3752_v61 = vshrl.u32 %v5185_v57, 16  ;;  %v6162_v57 = vld [vmem:[%s6286_s6 + $0xa8] ss:$8 sps:$4 sm:$0xff]  }
  0xef   : > { %5707 = vmatmul.mubr.msk.bf16.gmra.mrb[4].mxu0 %vm429_vm1, %v6829_v19  ;;  %6106 = vmatprep.subr.msk.bf16.mxu1 %vm442_vm0, %v6870_v20  ;;  %v3403_v51 = vrot.slane %v3402_v40, 4  ;;  %v3785_v36 = vrot.slane %v3783_v21, 5  ;;  %v3796_v40 = vrot.slane %v3794_v23, 4  ;;  %v3831_v23 = vshll.u32 %v5196_v2, 16 }
  0xf0   : > { %5732 = vmatprep.mubr.msk.bf16.mxu0 %vm429_vm1, %v6800_v53  ;;  %v5150_v53 = vld [vmem:[%s6286_s6 + $0x10c] sm:$0x1]  ;;  %v3416_v33 = vor.u32 %v3415_v38, %v3412_v48  ;;  %v3797_v48 = vshll.u32 %v5191_v27, 16  ;;  %v6161_v38 = vld [vmem:[%s6286_s6 + $0x98] ss:$8 sps:$4 sm:$0xff]   ;;  %v3754_v28 = vrot.slane %v3752_v61, 4 }
  0xf1   : > { %v3405_v41 = vshll.u32 %v5150_v53, 16  ;;  %v3735_v53 = vrot.slane %v3733_v31, 5 }
  0xf2   : > { %v3417_v52 = vrot.slane %v3416_v33, 4  ;;  %v5195_v33 = vld [vmem:[%s6286_s6 + $0xd0] sm:$0xf] }
  0xf3   : > { %v3407_v1 = vrot.slane %v3405_v41, 5  ;;  %v3799_v41 = vrot.slane %v3797_v48, 5 }
  0xf4   : > { %v3422_v60 = vsel %vm6344_vm4, %v3417_v52, %v3421_v54  ;;  %v3825_v52 = vshll.u32 %v5195_v33, 16 }
  0xf5   : > { %5727 = vmatmul.mubr.msk.bf16.gmra.mrb[12].mxu1 %vm429_vm1, %v6829_v19  ;;  %v3408_v25 = vsel %vm6344_vm4, %v3403_v51, %v3407_v1  ;;  %v3811_v51 = vshll.u32 %v5193_v35, 16  ;;  %v3822_v1 = vshrl.u32 %v5195_v33, 16  ;;  %v5233_v33 = vld [vmem:[%s6286_s6 + $0xf0] sm:$0xf] }
  0xf6   : > { %5742 = vmatprep.mubr.msk.bf16.mxu1 %vm429_vm1, %v5153_v29  ;;  %v6916_v58 = vcombine.low %v3408_v25, %v3422_v60  ;;  %v5194_v25 = vld [vmem:[%s6286_s6 + $0xcc] sm:$0x1]  ;;  %v3827_v31 = vrot.slane %v3825_v52, 5 }
  0xf7   : > { %5733 = vmatmul.mubr.msk.bf16.vlgmr.msra.gmra.mrb[8].mxu0 %vm429_vm1, %v6811_v16  ;;  %v3380_v16 = vsel %vm6344_vm4, %v3375_v7, %v3379_v34  ;;  %v3771_v7 = vrot.slane %v3769_v44, 5  ;;  %v5188_v34 = vld [vmem:[%s6286_s6 + $0xb4] sm:$0x1]  ;;  %v3813_v61 = vrot.slane %v3811_v51, 5  ;;  %v3817_v22 = vshll.u32 %v5194_v25, 16 }
  0xf8   : > { %5751 = vmatpush3.bf16.msra.mxu0 %v6262_v4  ;;  %5736 = vmatprep.mubr.msk.bf16.mxu0 %vm429_vm1, %v6814_v6  ;;  %v5154_v4 = vcombine.low %v3352_v24, %v3366_v47  ;;  %v3726_v6 = vrot.slane %v3724_v42, 4  ;;  %v5155_v0 = vcombine.low %v3380_v16, %v3394_v12  ;;  %v3761_v42 = vshll.u32 %v5186_v17, 16  ;;  %v5192_v24 = vld [vmem:[%s6286_s6 + $0xc4] sm:$0x1] }
  0xf9   : > { %6108 = vmatprep.subr.msk.bf16.mxu0 %vm442_vm0, %v6897_v55  ;;  %v3772_v37 = vor.u32 %v3771_v7, %v3768_v32  ;;  %v3775_v16 = vshll.u32 %v5188_v34, 16  ;;  %v3808_v12 = vshrl.u32 %v5193_v35, 16  ;;  %v3833_v17 = vrot.slane %v3831_v23, 5  ;;  %v5231_v32 = vld [vmem:[%s6286_s6 + $0xe8] sm:$0xf] }
  0xfa   : > { %v3730_v30 = vor.u32 %v3729_v56, %v3726_v6  ;;  %v3800_v6 = vor.u32 %v3799_v41, %v3796_v40  ;;  %v3803_v56 = vshll.u32 %v5192_v24, 16  ;;  %v3763_v18 = vrot.slane %v3761_v42, 5  ;;  %v5230_v42 = vld [vmem:[%s6286_s6 + $0xe4] sm:$0x1]  ;;  %v6165_v24 = vld [vmem:[%s6286_s6 + $0xe0] ss:$8 sps:$4 sm:$0xff]  }
  0xfb   : > { %v3773_v59 = vrot.slane %v3772_v37, 4  ;;  %v3810_v60 = vrot.slane %v3808_v12, 4  ;;  %v4226_v35 = vshll.u32 %v5231_v32, 16  ;;  %v4237_v37 = vshrl.u32 %v5233_v33, 16  ;;  %v5238_v23 = vld [vmem:[%s6286_s6 + $0x104] sm:$0x1] }
  0xfc   : > { %v3731_v3 = vrot.slane %v3730_v30, 4  ;;  %v3824_v30 = vrot.slane %v3822_v1, 4  ;;  %v3805_v27 = vrot.slane %v3803_v56, 5  ;;  %v4218_v12 = vshll.u32 %v5230_v42, 16  ;;  %v5239_v1 = vld [vmem:[%s6286_s6 + $0x108] sm:$0xf] }
  0xfd   : > { %5743 = vmatmul.mubr.msk.bf16.vlgmr.msra.gmra.mrb[0].mxu1 %vm429_vm1, %v5154_v4  ;;  %v4240_v51 = vshll.u32 %v5233_v33, 16  ;;  %v5242_v33 = vld [vmem:[%s6286_s6 + $0x114] sm:$0x1] }
  0xfe   : > { %5746 = vmatprep.mubr.msk.bf16.mxu1 %vm429_vm1, %v5155_v0  ;;  %5761 = vmatpush3.bf16.msra.mxu1 %v6294_v9  ;;  %v3736_v47 = vsel %vm6344_vm4, %v3731_v3, %v3735_v53  ;;  %v3828_v21 = vor.u32 %v3827_v31, %v3824_v30  ;;  %v3819_v53 = vrot.slane %v3817_v22, 5 }
  0xff   : > { %5737 = vmatmul.mubr.msk.bf16.gmra.mrb[12].mxu0 %vm429_vm1, %v6829_v19  ;;  %6107 = vmatprep.subr.msk.bf16.mxu1 %vm442_vm0, %v6922_v49  ;;  %v3780_v19 = vshrl.u32 %v5189_v10, 16  ;;  %v5197_v46 = vcombine.low %v3736_v47, %v3750_v50  ;;  %v5232_v47 = vld [vmem:[%s6286_s6 + $0xec] sm:$0x1]  ;;  %v5235_v50 = vld [vmem:[%s6286_s6 + $0xf8] sm:$0xf]  ;;  %v4242_v25 = vrot.slane %v4240_v51, 5 }
 0x100   : > { %5752 = vmatprep.mubr.msk.bf16.mxu0 %vm429_vm1, %v5153_v29  ;;  %v3757_v29 = vrot.slane %v3755_v45, 5  ;;  %v3829_v14 = vrot.slane %v3828_v21, 4 }
 0x101   : > { %v3782_v15 = vrot.slane %v3780_v19, 4  ;;  %v3814_v19 = vor.u32 %v3813_v61, %v3810_v60 }
 0x102   : > { %v3758_v11 = vor.u32 %v3757_v29, %v3754_v28  ;;  %v5229_v28 = vld [vmem:[%s6286_s6 + $0xe0] sm:$0xf] }
 0x103   : > { %v3786_v54 = vor.u32 %v3785_v36, %v3782_v15  ;;  %v3815_v13 = vrot.slane %v3814_v19, 4  ;;  %v4209_v7 = vshrl.u32 %v5229_v28, 16  ;;  %v4212_v34 = vshll.u32 %v5229_v28, 16 }
 0x104   : > { %v3759_v26 = vrot.slane %v3758_v11, 4  ;;  %v3834_v36 = vsel %vm6344_vm4, %v3829_v14, %v3833_v17 }
 0x105   : > { %5747 = vmatmul.mubr.msk.bf16.gmra.mrb[4].mxu1 %vm429_vm1, %v6916_v58  ;;  %v3787_v45 = vrot.slane %v3786_v54, 4  ;;  %v3820_v15 = vsel %vm6344_vm4, %v3815_v13, %v3819_v53  ;;  %v4211_v40 = vrot.slane %v4209_v7, 4  ;;  %v4214_v41 = vrot.slane %v4212_v34, 5 }
 0x106   : > { %5762 = vmatprep.mubr.msk.bf16.mxu1 %vm429_vm1, %v6161_v38  ;;  %v3764_v5 = vsel %vm6344_vm4, %v3759_v26, %v3763_v18  ;;  %v6164_v38 = vld [vmem:[%s6286_s6 + $0xc8] ss:$8 sps:$4 sm:$0xff]   ;;  %v5200_v11 = vcombine.low %v3820_v15, %v3834_v36  ;;  %v4232_v54 = vshll.u32 %v5232_v47, 16  ;;  %v4279_v26 = vshrl.u32 %v5239_v1, 16 }
 0x107   : > { %5753 = vmatmul.mubr.msk.bf16.vlgmr.msra.gmra.mrb[8].mxu0 %vm429_vm1, %v5154_v4  ;;  %v3789_v4 = vshll.u32 %v5190_v43, 16 }
 0x108   : > { %5781 = vmatpush3.bf16.msra.mxu0 %v6290_v8  ;;  %5756 = vmatprep.mubr.msk.bf16.mxu0 %vm429_vm1, %v5155_v0  ;;  %v3777_v0 = vrot.slane %v3775_v16, 5  ;;  %v4215_v16 = vor.u32 %v4214_v41, %v4211_v40  ;;  %v4234_v61 = vrot.slane %v4232_v54, 5 }
 0x109   : > { %6110 = vmatprep.subr.msk.bf16.mxu0 %vm442_vm0, %v6870_v20  ;;  %v3791_v10 = vrot.slane %v3789_v4, 5  ;;  %v3801_v20 = vrot.slane %v3800_v6, 4  ;;  %v4251_v4 = vshrl.u32 %v5235_v50, 16  ;;  %v4254_v6 = vshll.u32 %v5235_v50, 16 }
 0x10a   : > { %v3778_v44 = vsel %vm6344_vm4, %v3773_v59, %v3777_v0  ;;  %v4216_v18 = vrot.slane %v4215_v16, 4  ;;  %v4220_v59 = vrot.slane %v4218_v12, 5  ;;  %v4239_v0 = vrot.slane %v4237_v37, 4  ;;  %v5244_v37 = vld [vmem:[%s6286_s6 + $0x11c] sm:$0x1] }
 0x10b   : > { %v3806_v48 = vsel %vm6344_vm4, %v3801_v20, %v3805_v27  ;;  %v5198_v3 = vcombine.low %v3764_v5, %v3778_v44  ;;  %v4253_v30 = vrot.slane %v4251_v4, 4  ;;  %v4256_v31 = vrot.slane %v4254_v6, 5  ;;  %v5241_v20 = vld [vmem:[%s6286_s6 + $0x110] sm:$0xf]  ;;  %v5243_v44 = vld [vmem:[%s6286_s6 + $0x118] sm:$0xf] }
 0x10c   : > { %v4281_v5 = vrot.slane %v4279_v26, 4  ;;  %v4243_v19 = vor.u32 %v4242_v25, %v4239_v0  ;;  %v4293_v28 = vshrl.u32 %v5241_v20, 16  ;;  %v4307_v13 = vshrl.u32 %v5243_v44, 16 }
 0x10d   : > { %5763 = vmatmul.mubr.msk.bf16.vlgmr.msra.gmra.mrb[8].mxu1 %vm429_vm1, %v6162_v57  ;;  %v4310_v14 = vshll.u32 %v5243_v44, 16  ;;  %v4302_v12 = vshll.u32 %v5242_v33, 16 }
 0x10e   : > { %5766 = vmatprep.mubr.msk.bf16.mxu1 %vm429_vm1, %v6163_v63  ;;  %5771 = vmatpush3.bf16.msra.mxu1 %v6553_v62  ;;  %v4282_v63 = vshll.u32 %v5239_v1, 16  ;;  %v4309_v42 = vrot.slane %v4307_v13, 4 }
 0x10f   : > { %5757 = vmatmul.mubr.msk.bf16.gmra.mrb[12].mxu0 %vm429_vm1, %v6916_v58  ;;  %v3792_v58 = vsel %vm6344_vm4, %v3787_v45, %v3791_v10  ;;  %6109 = vmatprep.subr.msk.bf16.mxu1 %vm442_vm0, %v6897_v55  ;;  %v4223_v55 = vshrl.u32 %v5231_v32, 16  ;;  %v6167_v45 = vld [vmem:[%s6286_s6 + $0x100] ss:$8 sps:$4 sm:$0xff]   ;;  %v5236_v10 = vld [vmem:[%s6286_s6 + $0xfc] sm:$0x1]  ;;  %v4274_v32 = vshll.u32 %v5238_v23, 16 }
 0x110   : > { %5782 = vmatprep.mubr.msk.bf16.mxu0 %vm429_vm1, %v5197_v46  ;;  %v5199_v29 = vcombine.low %v3792_v58, %v3806_v48  ;;  %v4284_v22 = vrot.slane %v4282_v63, 5  ;;  %v5240_v58 = vld [vmem:[%s6286_s6 + $0x10c] sm:$0x1]  ;;  %v4221_v48 = vsel %vm6344_vm4, %v4216_v18, %v4220_v59  ;;  %v4260_v53 = vshll.u32 %v5236_v10, 16 }
 0x111   : > { %v4225_v43 = vrot.slane %v4223_v55, 4  ;;  %v4288_v34 = vshll.u32 %v5240_v58, 16  ;;  %v4244_v55 = vrot.slane %v4243_v19, 4 }
 0x112   : > { %v4285_v7 = vor.u32 %v4284_v22, %v4281_v5  ;;  %v4262_v41 = vrot.slane %v4260_v53, 5 }
 0x113   : > { %v4290_v50 = vrot.slane %v4288_v34, 5 }
 0x114   : > { %v4286_v47 = vrot.slane %v4285_v7, 4 }
 0x115   : > { %5767 = vmatmul.mubr.msk.bf16.gmra.mrb[12].mxu1 %vm429_vm1, %v6164_v38 }
 0x116   : > { %5772 = vmatprep.mubr.msk.bf16.mxu1 %vm429_vm1, %v5197_v46  ;;  %v6166_v46 = vld [vmem:[%s6286_s6 + $0xf0] ss:$8 sps:$4 sm:$0xff]   ;;  %v4291_v4 = vsel %vm6344_vm4, %v4286_v47, %v4290_v50 }
 0x117   : > { %5783 = vmatmul.mubr.msk.bf16.vlgmr.msra.gmra.mrb[8].mxu0 %vm429_vm1, %v5198_v3 }
 0x118   : > { %5801 = vmatpush3.bf16.msra.mxu0 %v6294_v9  ;;  %5786 = vmatprep.mubr.msk.bf16.mxu0 %vm429_vm1, %v5199_v29  ;;  %v4228_v9 = vrot.slane %v4226_v35, 5  ;;  %v6168_v35 = vld [vmem:[%s6286_s6 + $0x110] ss:$8 sps:$4 sm:$0xff]  }
 0x119   : > { %6111 = vmatprep.subr.msk.bf16.mxu0 %vm442_vm0, %v6922_v49  ;;  %v5237_v49 = vld [vmem:[%s6286_s6 + $0x100] sm:$0xf] }
 0x11a   : > { %v4229_v52 = vor.u32 %v4228_v9, %v4225_v43  ;;  %v4265_v56 = vshrl.u32 %v5237_v49, 16  ;;  %v4268_v57 = vshll.u32 %v5237_v49, 16  ;;  %v4312_v43 = vrot.slane %v4310_v14, 5 }
 0x11c   : > { %v4230_v60 = vrot.slane %v4229_v52, 4  ;;  %v4267_v27 = vrot.slane %v4265_v56, 4  ;;  %v4270_v2 = vrot.slane %v4268_v57, 5  ;;  %v4313_v1 = vor.u32 %v4312_v43, %v4309_v42 }
 0x11d   : > { %5773 = vmatmul.mubr.msk.bf16.vlgmr.msra.gmra.mrb[8].mxu1 %vm429_vm1, %v5198_v3  ;;  %v4257_v3 = vor.u32 %v4256_v31, %v4253_v30  ;;  %v4316_v52 = vshll.u32 %v5244_v37, 16  ;;  %v4304_v56 = vrot.slane %v4302_v12, 5 }
 0x11e   : > { %5776 = vmatprep.mubr.msk.bf16.mxu1 %vm429_vm1, %v5199_v29  ;;  %5791 = vmatpush3.bf16.msra.mxu1 %v6290_v8  ;;  %v5234_v8 = vld [vmem:[%s6286_s6 + $0xf4] sm:$0x1]  ;;  %v4235_v38 = vsel %vm6344_vm4, %v4230_v60, %v4234_v61  ;;  %v4296_v29 = vshll.u32 %v5241_v20, 16  ;;  %v4271_v17 = vor.u32 %v4270_v2, %v4267_v27  ;;  %v4314_v63 = vrot.slane %v4313_v1, 4 }
 0x11f   : > { %5787 = vmatmul.mubr.msk.bf16.gmra.mrb[12].mxu0 %vm429_vm1, %v5200_v11  ;;  %v4246_v21 = vshll.u32 %v5234_v8, 16  ;;  %v5245_v15 = vcombine.low %v4221_v48, %v4235_v38  ;;  %v4258_v40 = vrot.slane %v4257_v3, 4 }
 0x120   : > { %5802 = vmatprep.mubr.msk.bf16.mxu0 %vm429_vm1, %v6165_v24  ;;  %v4272_v9 = vrot.slane %v4271_v17, 4 }
 0x121   : > { %v4248_v36 = vrot.slane %v4246_v21, 5  ;;  %v4263_v51 = vsel %vm6344_vm4, %v4258_v40, %v4262_v41 }
 0x123   : > { %v4249_v16 = vsel %vm6344_vm4, %v4244_v55, %v4248_v36 }
 0x124   : > { %v5246_v6 = vcombine.low %v4249_v16, %v4263_v51 }
 0x125   : > { %5777 = vmatmul.mubr.msk.bf16.gmra.mrb[12].mxu1 %vm429_vm1, %v5200_v11  ;;  %v4298_v11 = vrot.slane %v4296_v29, 5 }
 0x126   : > { %5792 = vmatprep.mubr.msk.bf16.mxu1 %vm429_vm1, %v6165_v24  ;;  %v4276_v24 = vrot.slane %v4274_v32, 5 }
 0x127   : > { %5803 = vmatmul.mubr.msk.bf16.vlgmr.msra.gmra.mrb[8].mxu0 %vm429_vm1, %v6166_v46 }
 0x128   : > { %5811 = vmatpush3.bf16.msra.mxu0 %v6553_v62  ;;  %5806 = vmatprep.mubr.msk.bf16.mxu0 %vm429_vm1, %v6167_v45  ;;  %v4295_v62 = vrot.slane %v4293_v28, 4  ;;  %v4277_v54 = vsel %vm6344_vm4, %v4272_v9, %v4276_v24 }
 0x129   : > { %v5247_v57 = vcombine.low %v4277_v54, %v4291_v4 }
 0x12a   : > { %v4299_v49 = vor.u32 %v4298_v11, %v4295_v62 }
 0x12c   : > { %v4300_v26 = vrot.slane %v4299_v49, 4 }
 0x12d   : > { %5793 = vmatmul.mubr.msk.bf16.vlgmr.msra.gmra.mrb[8].mxu1 %vm429_vm1, %v6166_v46  ;;  %v4318_v46 = vrot.slane %v4316_v52, 5 }
 0x12e   : > { %5796 = vmatprep.mubr.msk.bf16.mxu1 %vm429_vm1, %v6167_v45  ;;  %v4305_v18 = vsel %vm6344_vm4, %v4300_v26, %v4304_v56 }
 0x12f   : > { %5807 = vmatmul.mubr.msk.bf16.gmra.mrb[12].mxu0 %vm429_vm1, %v6168_v35  ;;  %v4319_v59 = vsel %vm6344_vm4, %v4314_v63, %v4318_v46 }
 0x130   : > { %5812 = vmatprep.mubr.msk.bf16.mxu0 %vm429_vm1, %v5245_v15  ;;  %v5248_v0 = vcombine.low %v4305_v18, %v4319_v59 }
 0x135   : > { %5797 = vmatmul.mubr.msk.bf16.gmra.mrb[12].mxu1 %vm429_vm1, %v6168_v35 }
 0x137   : > { %5813 = vmatmul.mubr.msk.bf16.vlgmr.msra.gmra.mrb[8].mxu0 %vm429_vm1, %v5246_v6 }
 0x138   : > { %5816 = vmatprep.mubr.msk.bf16.mxu0 %vm429_vm1, %v5247_v57 }
 0x13f   : > { %5817 = vmatmul.mubr.msk.bf16.gmra.mrb[12].mxu0 %vm429_vm1, %v5248_v0 }
 0x1ba   : > { %v5704_v25 = vpop.f32.mrb[0].mxu0 }
 0x1bb   : > { %v4472_v60 = vpack.c.bf16 %v5704_v25, %v5704_v25  ;;  %v3037_v61 = vpop.f32.mrb[1].mxu0  ;;  %v4442_v31 = vmul.f32 %v5704_v25, %v5704_v25  ;;  %v4421_v19 = vsel %vm4417_vm6, %v5704_v25, 0.0 }
 0x1bc   : > { %v4440_v8 = vmul.f32 %v3037_v61, %v3037_v61  ;;  %v4470_v39 = vpack.c.bf16 %v3037_v61, %v3037_v61  ;;  %v5705_v30 = vpop.f32.mrb[2].mxu0  ;;  %v4418_v20 = vsel %vm4417_vm6, %v3037_v61, 0.0 }
 0x1bd   : > { %4481 = vst.msk [vmem:[%s7035_s8 + $0x8] sm:$0xf] %vm4478_vm5, %v4472_v60  ;;  %v4473_v45 = vpack.c.bf16 %v5705_v30, %v5705_v30  ;;  %v3040_v10 = vpop.f32.mrb[3].mxu0  ;;  %v4443_v22 = vmul.f32 %v5705_v30, %v5705_v30  ;;  %v4451_v38 = vsel %vm4417_vm6, %v4442_v31, 0.0  ;;  %v4423_v53 = vsel %vm4417_vm6, %v5705_v30, 0.0 }
 0x1be   : > { %4479 = vst.msk [vmem:[%s7035_s8] sm:$0xf] %vm4478_vm5, %v4470_v39  ;;  %v4419_v27 = vsel %vm4417_vm6, %v3040_v10, 0.0  ;;  %v4441_v2 = vmul.f32 %v3040_v10, %v3040_v10  ;;  %v4471_v5 = vpack.c.bf16 %v3040_v10, %v3040_v10  ;;  %v4448_v21 = vsel %vm4417_vm6, %v4440_v8, 0.0 }
 0x1bf   : > { %4482 = vst.msk [vmem:[%s7035_s8 + $0xc] sm:$0xf] %vm4478_vm5, %v4473_v45  ;;  %v4420_v44 = vadd.f32 %v4419_v27, %v4418_v20  ;;  %v4453_v28 = vsel %vm4417_vm6, %v4443_v22, 0.0 }
 0x1c0   : > { %v4449_v23 = vsel %vm4417_vm6, %v4441_v2, 0.0  ;;  %4480 = vst.msk [vmem:[%s7035_s8 + $0x4] sm:$0xf] %vm4478_vm5, %v4471_v5 }
 0x1c1   : > { %v4422_v58 = vadd.f32 %v4421_v19, %v4420_v44  ;;  %v4450_v48 = vadd.f32 %v4449_v23, %v4448_v21 }
 0x1c2   : > { %v5708_v3 = vpop.f32.mrb[4].mxu0 }
 0x1c3   : > { %v4452_v29 = vadd.f32 %v4451_v38, %v4450_v48  ;;  %v4476_v13 = vpack.c.bf16 %v5708_v3, %v5708_v3  ;;  %v3053_v14 = vpop.f32.mrb[5].mxu0  ;;  %v4424_v17 = vadd.f32 %v4423_v53, %v4422_v58  ;;  %v4446_v62 = vmul.f32 %v5708_v3, %v5708_v3 }
 0x1c4   : > { %v4425_v32 = vsel %vm4417_vm6, %v3053_v14, 0.0  ;;  %v4444_v7 = vmul.f32 %v3053_v14, %v3053_v14  ;;  %v4474_v34 = vpack.c.bf16 %v3053_v14, %v3053_v14  ;;  %v5709_v55 = vpop.f32.mrb[6].mxu0  ;;  %v4429_v24 = vsel %vm4417_vm6, %v5708_v3, 0.0 }
 0x1c5   : > { %4485 = vst.msk [vmem:[%s7035_s8 + $0x18] sm:$0xf] %vm4478_vm5, %v4476_v13  ;;  %v4454_v35 = vadd.f32 %v4453_v28, %v4452_v29  ;;  %v3056_v15 = vpop.f32.mrb[7].mxu0  ;;  %v4426_v36 = vadd.f32 %v4425_v32, %v4424_v17  ;;  %v4477_v41 = vpack.c.bf16 %v5709_v55, %v5709_v55  ;;  %v4447_v47 = vmul.f32 %v5709_v55, %v5709_v55 }
 0x1c6   : > { %v4455_v40 = vsel %vm4417_vm6, %v4444_v7, 0.0  ;;  %4483 = vst.msk [vmem:[%s7035_s8 + $0x10] sm:$0xf] %vm4478_vm5, %v4474_v34  ;;  %v4427_v33 = vsel %vm4417_vm6, %v3056_v15, 0.0  ;;  %v4445_v42 = vmul.f32 %v3056_v15, %v3056_v15  ;;  %v4475_v43 = vpack.c.bf16 %v3056_v15, %v3056_v15 }
 0x1c7   : > { %v4456_v11 = vadd.f32 %v4455_v40, %v4454_v35  ;;  %4486 = vst.msk [vmem:[%s7035_s8 + $0x1c] sm:$0xf] %vm4478_vm5, %v4477_v41  ;;  %v4428_v9 = vadd.f32 %v4427_v33, %v4426_v36  ;;  %v4459_v12 = vsel %vm4417_vm6, %v4446_v62, 0.0  ;;  %v4431_v51 = vsel %vm4417_vm6, %v5709_v55, 0.0 }
 0x1c8   : > { %v4457_v50 = vsel %vm4417_vm6, %v4445_v42, 0.0  ;;  %4484 = vst.msk [vmem:[%s7035_s8 + $0x14] sm:$0xf] %vm4478_vm5, %v4475_v43  ;;  %v4461_v52 = vsel %vm4417_vm6, %v4447_v47, 0.0 }
 0x1c9   : > { %v4430_v37 = vadd.f32 %v4429_v24, %v4428_v9  ;;  %v4458_v16 = vadd.f32 %v4457_v50, %v4456_v11 }
 0x1cb   : > { %v4432_v49 = vadd.f32 %v4431_v51, %v4430_v37  ;;  %v4460_v1 = vadd.f32 %v4459_v12, %v4458_v16 }
 0x1cd   : > { %v4462_v54 = vadd.f32 %v4461_v52, %v4460_v1  ;;  %v4433_v2 = vrot.slane %v4432_v49, 4 }
 0x1cf   : > { %v4463_v3 = vrot.slane %v4462_v54, 4  ;;  %v4434_v15 = vadd.f32 %v4433_v2, %v4432_v49 }
 0x1d0   : > { %v5744_v4 = vpop.f32.mrb[0].mxu1 }
 0x1d1   : > { %v3481_v6 = vpop.f32.mrb[1].mxu1  ;;  %v4541_v56 = vpack.c.bf16 %v5744_v4, %v5744_v4  ;;  %v4511_v25 = vmul.f32 %v5744_v4, %v5744_v4  ;;  %v4490_v8 = vsel %vm4417_vm6, %v5744_v4, 0.0  ;;  %v4464_v11 = vadd.f32 %v4463_v3, %v4462_v54 }
 0x1d2   : > { %v4539_v57 = vpack.c.bf16 %v3481_v6, %v3481_v6  ;;  %v5745_v26 = vpop.f32.mrb[2].mxu1  ;;  %v4509_v63 = vmul.f32 %v3481_v6, %v3481_v6  ;;  %v4487_v18 = vsel %vm4417_vm6, %v3481_v6, 0.0  ;;  %v4435_v47 = vrot.slane %v4434_v15, 2 }
 0x1d3   : > { %v3484_v46 = vpop.f32.mrb[3].mxu1  ;;  %5255 = vst.msk [vmem:[%s7035_s8 + $0x28] sm:$0xf] %vm4478_vm5, %v4541_v56  ;;  %v4542_v59 = vpack.c.bf16 %v5745_v26, %v5745_v26  ;;  %v4512_v31 = vmul.f32 %v5745_v26, %v5745_v26  ;;  %v4520_v5 = vsel %vm4417_vm6, %v4511_v25, 0.0  ;;  %v4492_v22 = vsel %vm4417_vm6, %v5745_v26, 0.0 }
 0x1d4   : > { %5253 = vst.msk [vmem:[%s7035_s8 + $0x20] sm:$0xf] %vm4478_vm5, %v4539_v57  ;;  %v4488_v0 = vsel %vm4417_vm6, %v3484_v46, 0.0  ;;  %v4510_v61 = vmul.f32 %v3484_v46, %v3484_v46  ;;  %v4540_v39 = vpack.c.bf16 %v3484_v46, %v3484_v46  ;;  %v4517_v30 = vsel %vm4417_vm6, %v4509_v63, 0.0 }
 0x1d5   : > { %v4489_v60 = vadd.f32 %v4488_v0, %v4487_v18  ;;  %5256 = vst.msk [vmem:[%s7035_s8 + $0x2c] sm:$0xf] %vm4478_vm5, %v4542_v59  ;;  %v4522_v53 = vsel %vm4417_vm6, %v4512_v31, 0.0  ;;  %v4465_v12 = vrot.slane %v4464_v11, 2  ;;  %v4436_v1 = vadd.f32 %v4435_v47, %v4434_v15 }
 0x1d6   : > { %v4518_v10 = vsel %vm4417_vm6, %v4510_v61, 0.0  ;;  %5254 = vst.msk [vmem:[%s7035_s8 + $0x24] sm:$0xf] %vm4478_vm5, %v4540_v39 }
 0x1d7   : > { %v4491_v45 = vadd.f32 %v4490_v8, %v4489_v60  ;;  %v4519_v20 = vadd.f32 %v4518_v10, %v4517_v30  ;;  %v4466_v6 = vadd.f32 %v4465_v12, %v4464_v11  ;;  %v4437_v57 = vrot.slane %v4436_v1, 1 }
 0x1d8   : > { %v5748_v27 = vpop.f32.mrb[4].mxu1 }
 0x1d9   : > { %v4545_v44 = vpack.c.bf16 %v5748_v27, %v5748_v27  ;;  %v3497_v19 = vpop.f32.mrb[5].mxu1  ;;  %v4521_v21 = vadd.f32 %v4520_v5, %v4519_v20  ;;  %v4493_v23 = vadd.f32 %v4492_v22, %v4491_v45  ;;  %v4515_v7 = vmul.f32 %v5748_v27, %v5748_v27 }
 0x1da   : > { %v4494_v58 = vsel %vm4417_vm6, %v3497_v19, 0.0  ;;  %v4513_v48 = vmul.f32 %v3497_v19, %v3497_v19  ;;  %v5749_v38 = vpop.f32.mrb[6].mxu1  ;;  %v4543_v28 = vpack.c.bf16 %v3497_v19, %v3497_v19  ;;  %v4498_v41 = vsel %vm4417_vm6, %v5748_v27, 0.0 }
 0x1db   : > { %5259 = vst.msk [vmem:[%s7035_s8 + $0x38] sm:$0xf] %vm4478_vm5, %v4545_v44  ;;  %v3500_v29 = vpop.f32.mrb[7].mxu1  ;;  %v4495_v13 = vadd.f32 %v4494_v58, %v4493_v23  ;;  %v4523_v14 = vadd.f32 %v4522_v53, %v4521_v21  ;;  %v4546_v32 = vpack.c.bf16 %v5749_v38, %v5749_v38  ;;  %v4516_v33 = vmul.f32 %v5749_v38, %v5749_v38 }
 0x1dc   : > { %v4524_v17 = vsel %vm4417_vm6, %v4513_v48, 0.0  ;;  %5257 = vst.msk [vmem:[%s7035_s8 + $0x30] sm:$0xf] %vm4478_vm5, %v4543_v28  ;;  %v4496_v34 = vsel %vm4417_vm6, %v3500_v29, 0.0  ;;  %v4514_v55 = vmul.f32 %v3500_v29, %v3500_v29  ;;  %v4544_v35 = vpack.c.bf16 %v3500_v29, %v3500_v29 }
 0x1dd   : > { %v4525_v36 = vadd.f32 %v4524_v17, %v4523_v14  ;;  %5260 = vst.msk [vmem:[%s7035_s8 + $0x3c] sm:$0xf] %vm4478_vm5, %v4546_v32  ;;  %v4497_v40 = vadd.f32 %v4496_v34, %v4495_v13  ;;  %v4528_v9 = vsel %vm4417_vm6, %v4515_v7, 0.0  ;;  %v4500_v24 = vsel %vm4417_vm6, %v5749_v38, 0.0 }
 0x1de   : > { %v4526_v62 = vsel %vm4417_vm6, %v4514_v55, 0.0  ;;  %5258 = vst.msk [vmem:[%s7035_s8 + $0x34] sm:$0xf] %vm4478_vm5, %v4544_v35  ;;  %v4530_v16 = vsel %vm4417_vm6, %v4516_v33, 0.0  ;;  %v4467_v46 = vrot.slane %v4466_v6, 1  ;;  %v4438_v0 = vadd.f32 %v4437_v57, %v4436_v1 }
 0x1df   : > { %v4499_v42 = vadd.f32 %v4498_v41, %v4497_v40  ;;  %v4527_v43 = vadd.f32 %v4526_v62, %v4525_v36 }
 0x1e0   : > { %v4468_v61 = vadd.f32 %v4467_v46, %v4466_v6 }
 0x1e1   : > { %v4501_v50 = vadd.f32 %v4500_v24, %v4499_v42  ;;  %v4529_v37 = vadd.f32 %v4528_v9, %v4527_v43 }
 0x1e3   : > { %v4502_v51 = vrot.slane %v4501_v50, 4  ;;  %v4531_v49 = vadd.f32 %v4530_v16, %v4529_v37 }
 0x1e5   : > { %v4503_v52 = vadd.f32 %v4502_v51, %v4501_v50  ;;  %v4532_v4 = vrot.slane %v4531_v49, 4 }
 0x1e7   : > { %v4504_v56 = vrot.slane %v4503_v52, 2  ;;  %v4533_v54 = vadd.f32 %v4532_v4, %v4531_v49 }
 0x1e9   : > { %v4505_v26 = vadd.f32 %v4504_v56, %v4503_v52  ;;  %v4534_v63 = vrot.slane %v4533_v54, 2 }
 0x1eb   : > { %v4506_v18 = vrot.slane %v4505_v26, 1  ;;  %v4535_v59 = vadd.f32 %v4534_v63, %v4533_v54 }
 0x1ed   : > { %v4507_v25 = vadd.f32 %v4506_v18, %v4505_v26  ;;  %v4536_v60 = vrot.slane %v4535_v59, 1 }
 0x1ef   : > { %v7101_v8 = vadd.f32 %v4507_v25, %v4438_v0  ;;  %v4537_v39 = vadd.f32 %v4536_v60, %v4535_v59 }
 0x1f1   : > { %v7103_v30 = vadd.f32 %v4537_v39, %v4468_v61 }
 0x200   : > { %v5794_v31 = vpop.f32.mrb[8].mxu1 }
 0x201   : > { %v4610_v45 = vpack.c.bf16 %v5794_v31, %v5794_v31  ;;  %v4080_v10 = vpop.f32.mrb[9].mxu1  ;;  %v4580_v5 = vmul.f32 %v5794_v31, %v5794_v31  ;;  %v4559_v3 = vsel %vm4417_vm6, %v5794_v31, 0.0 }
 0x202   : > { %v4578_v20 = vmul.f32 %v4080_v10, %v4080_v10  ;;  %v4608_v27 = vpack.c.bf16 %v4080_v10, %v4080_v10  ;;  %v5795_v2 = vpop.f32.mrb[10].mxu1  ;;  %v4556_v19 = vsel %vm4417_vm6, %v4080_v10, 0.0 }
 0x203   : > { %5263 = vst.msk [vmem:[%s7035_s8 + $0x48] sm:$0xf] %vm4478_vm5, %v4610_v45  ;;  %v4611_v22 = vpack.c.bf16 %v5795_v2, %v5795_v2  ;;  %v4083_v44 = vpop.f32.mrb[11].mxu1  ;;  %v4581_v48 = vmul.f32 %v5795_v2, %v5795_v2  ;;  %v4589_v14 = vsel %vm4417_vm6, %v4580_v5, 0.0  ;;  %v4561_v17 = vsel %vm4417_vm6, %v5795_v2, 0.0 }
 0x204   : > { %5261 = vst.msk [vmem:[%s7035_s8 + $0x40] sm:$0xf] %vm4478_vm5, %v4608_v27  ;;  %v4557_v21 = vsel %vm4417_vm6, %v4083_v44, 0.0  ;;  %v4579_v23 = vmul.f32 %v4083_v44, %v4083_v44  ;;  %v4609_v58 = vpack.c.bf16 %v4083_v44, %v4083_v44  ;;  %v4586_v53 = vsel %vm4417_vm6, %v4578_v20, 0.0 }
 0x205   : > { %5264 = vst.msk [vmem:[%s7035_s8 + $0x4c] sm:$0xf] %vm4478_vm5, %v4611_v22  ;;  %v4558_v38 = vadd.f32 %v4557_v21, %v4556_v19  ;;  %v4591_v7 = vsel %vm4417_vm6, %v4581_v48, 0.0 }
 0x206   : > { %v4587_v28 = vsel %vm4417_vm6, %v4579_v23, 0.0  ;;  %5262 = vst.msk [vmem:[%s7035_s8 + $0x44] sm:$0xf] %vm4478_vm5, %v4609_v58 }
 0x207   : > { %v4560_v29 = vadd.f32 %v4559_v3, %v4558_v38  ;;  %v4588_v13 = vadd.f32 %v4587_v28, %v4586_v53 }
 0x208   : > { %v5798_v32 = vpop.f32.mrb[12].mxu1 }
 0x209   : > { %v4590_v34 = vadd.f32 %v4589_v14, %v4588_v13  ;;  %v4584_v55 = vmul.f32 %v5798_v32, %v5798_v32  ;;  %v4614_v35 = vpack.c.bf16 %v5798_v32, %v5798_v32  ;;  %v4096_v15 = vpop.f32.mrb[13].mxu1  ;;  %v4562_v40 = vadd.f32 %v4561_v17, %v4560_v29 }
 0x20a   : > { %v5814_v36 = vpop.f32.mrb[8].mxu0  ;;  %v4563_v41 = vsel %vm4417_vm6, %v4096_v15, 0.0  ;;  %v4582_v33 = vmul.f32 %v4096_v15, %v4096_v15  ;;  %v4612_v62 = vpack.c.bf16 %v4096_v15, %v4096_v15  ;;  %v5799_v11 = vpop.f32.mrb[14].mxu1  ;;  %v4567_v51 = vsel %vm4417_vm6, %v5798_v32, 0.0 }
 0x20b   : > { %v4378_v42 = vpop.f32.mrb[9].mxu0  ;;  %5267 = vst.msk [vmem:[%s7035_s8 + $0x58] sm:$0xf] %vm4478_vm5, %v4614_v35  ;;  %v4592_v43 = vadd.f32 %v4591_v7, %v4590_v34  ;;  %v4099_v9 = vpop.f32.mrb[15].mxu1  ;;  %v4564_v47 = vadd.f32 %v4563_v41, %v4562_v40  ;;  %v4649_v37 = vmul.f32 %v5814_v36, %v5814_v36  ;;  %v4679_v16 = vpack.c.bf16 %v5814_v36, %v5814_v36 }
 0x20c   : > { %v5815_v24 = vpop.f32.mrb[10].mxu0  ;;  %v4593_v50 = vsel %vm4417_vm6, %v4582_v33, 0.0  ;;  %5265 = vst.msk [vmem:[%s7035_s8 + $0x50] sm:$0xf] %vm4478_vm5, %v4612_v62  ;;  %v4597_v49 = vsel %vm4417_vm6, %v4584_v55, 0.0  ;;  %v4615_v52 = vpack.c.bf16 %v5799_v11, %v5799_v11  ;;  %v4628_v4 = vsel %vm4417_vm6, %v5814_v36, 0.0 }
 0x20d   : > { %v4381_v12 = vpop.f32.mrb[11].mxu0  ;;  %v4594_v1 = vadd.f32 %v4593_v50, %v4592_v43  ;;  %5271 = vst.msk [vmem:[%s7035_s8 + $0x68] sm:$0xf] %vm4478_vm5, %v4679_v16  ;;  %v4585_v6 = vmul.f32 %v5799_v11, %v5799_v11  ;;  %v4677_v56 = vpack.c.bf16 %v4378_v42, %v4378_v42  ;;  %v4565_v54 = vsel %vm4417_vm6, %v4099_v9, 0.0 }
 0x20e   : > { %5268 = vst.msk [vmem:[%s7035_s8 + $0x5c] sm:$0xf] %vm4478_vm5, %v4615_v52  ;;  %v4647_v57 = vmul.f32 %v4378_v42, %v4378_v42  ;;  %v4566_v26 = vadd.f32 %v4565_v54, %v4564_v47  ;;  %v4583_v63 = vmul.f32 %v4099_v9, %v4099_v9  ;;  %v4613_v46 = vpack.c.bf16 %v4099_v9, %v4099_v9 }
 0x20f   : > { %v4658_v18 = vsel %vm4417_vm6, %v4649_v37, 0.0  ;;  %v4569_v59 = vsel %vm4417_vm6, %v5799_v11, 0.0  ;;  %v4625_v0 = vsel %vm4417_vm6, %v4378_v42, 0.0  ;;  %5269 = vst.msk [vmem:[%s7035_s8 + $0x60] sm:$0xf] %vm4478_vm5, %v4677_v56  ;;  %v4680_v25 = vpack.c.bf16 %v5815_v24, %v5815_v24 }
 0x210   : > { %v4568_v60 = vadd.f32 %v4567_v51, %v4566_v26  ;;  %v4595_v61 = vsel %vm4417_vm6, %v4583_v63, 0.0  ;;  %5266 = vst.msk [vmem:[%s7035_s8 + $0x54] sm:$0xf] %vm4478_vm5, %v4613_v46  ;;  %v4626_v39 = vsel %vm4417_vm6, %v4381_v12, 0.0  ;;  %v4648_v31 = vmul.f32 %v4381_v12, %v4381_v12 }
 0x211   : > { %v4599_v10 = vsel %vm4417_vm6, %v4585_v6, 0.0  ;;  %v4596_v20 = vadd.f32 %v4595_v61, %v4594_v1  ;;  %5272 = vst.msk [vmem:[%s7035_s8 + $0x6c] sm:$0xf] %vm4478_vm5, %v4680_v25  ;;  %v4627_v27 = vadd.f32 %v4626_v39, %v4625_v0  ;;  %v4678_v2 = vpack.c.bf16 %v4381_v12, %v4381_v12 }
 0x212   : > { %v5818_v45 = vpop.f32.mrb[12].mxu0  ;;  %v4655_v22 = vsel %vm4417_vm6, %v4647_v57, 0.0  ;;  %v4570_v44 = vadd.f32 %v4569_v59, %v4568_v60  ;;  %v4650_v19 = vmul.f32 %v5815_v24, %v5815_v24  ;;  %v4656_v21 = vsel %vm4417_vm6, %v4648_v31, 0.0 }
 0x213   : > { %v4394_v5 = vpop.f32.mrb[13].mxu0  ;;  %v4598_v58 = vadd.f32 %v4597_v49, %v4596_v20  ;;  %v4629_v48 = vadd.f32 %v4628_v4, %v4627_v27  ;;  %v4657_v38 = vadd.f32 %v4656_v21, %v4655_v22  ;;  %5270 = vst.msk [vmem:[%s7035_s8 + $0x64] sm:$0xf] %vm4478_vm5, %v4678_v2  ;;  %v4683_v3 = vpack.c.bf16 %v5818_v45, %v5818_v45 }
 0x214   : > { %v5819_v23 = vpop.f32.mrb[14].mxu0  ;;  %v4571_v28 = vrot.slane %v4570_v44, 4  ;;  %v4630_v29 = vsel %vm4417_vm6, %v5815_v24, 0.0  ;;  %v4632_v13 = vsel %vm4417_vm6, %v4394_v5, 0.0  ;;  %v4651_v14 = vmul.f32 %v4394_v5, %v4394_v5 }
 0x215   : > { %v4397_v53 = vpop.f32.mrb[15].mxu0  ;;  %v4600_v17 = vadd.f32 %v4599_v10, %v4598_v58  ;;  %v4659_v32 = vadd.f32 %v4658_v18, %v4657_v38  ;;  %5275 = vst.msk [vmem:[%s7035_s8 + $0x78] sm:$0xf] %vm4478_vm5, %v4683_v3  ;;  %v4631_v7 = vadd.f32 %v4630_v29, %v4629_v48  ;;  %v4681_v34 = vpack.c.bf16 %v4394_v5, %v4394_v5 }
 0x216   : > { %v4572_v55 = vadd.f32 %v4571_v28, %v4570_v44  ;;  %v4660_v35 = vsel %vm4417_vm6, %v4650_v19, 0.0  ;;  %v4662_v15 = vsel %vm4417_vm6, %v4651_v14, 0.0  ;;  %v4684_v33 = vpack.c.bf16 %v5819_v23, %v5819_v23 }
 0x217   : > { %v4601_v36 = vrot.slane %v4600_v17, 4  ;;  %v4633_v40 = vadd.f32 %v4632_v13, %v4631_v7  ;;  %v4661_v41 = vadd.f32 %v4660_v35, %v4659_v32  ;;  %5273 = vst.msk [vmem:[%s7035_s8 + $0x70] sm:$0xf] %vm4478_vm5, %v4681_v34  ;;  %v4653_v11 = vmul.f32 %v5818_v45, %v5818_v45 }
 0x218   : > { %v4573_v62 = vrot.slane %v4572_v55, 2  ;;  %v4634_v42 = vsel %vm4417_vm6, %v4397_v53, 0.0  ;;  %v4652_v43 = vmul.f32 %v4397_v53, %v4397_v53  ;;  %5276 = vst.msk [vmem:[%s7035_s8 + $0x7c] sm:$0xf] %vm4478_vm5, %v4684_v33  ;;  %v4682_v50 = vpack.c.bf16 %v4397_v53, %v4397_v53 }
 0x219   : > { %v4602_v9 = vadd.f32 %v4601_v36, %v4600_v17  ;;  %v4663_v24 = vadd.f32 %v4662_v15, %v4661_v41  ;;  %v4635_v47 = vadd.f32 %v4634_v42, %v4633_v40  ;;  %v4636_v16 = vsel %vm4417_vm6, %v5818_v45, 0.0 }
 0x21a   : > { %v4574_v37 = vadd.f32 %v4573_v62, %v4572_v55  ;;  %v4654_v12 = vmul.f32 %v5819_v23, %v5819_v23  ;;  %v4664_v51 = vsel %vm4417_vm6, %v4652_v43, 0.0  ;;  %5274 = vst.msk [vmem:[%s7035_s8 + $0x74] sm:$0xf] %vm4478_vm5, %v4682_v50  ;;  %v4666_v6 = vsel %vm4417_vm6, %v4653_v11, 0.0 }
 0x21b   : > { %v4603_v49 = vrot.slane %v4602_v9, 2  ;;  %v4637_v1 = vadd.f32 %v4636_v16, %v4635_v47  ;;  %v4665_v52 = vadd.f32 %v4664_v51, %v4663_v24  ;;  %v4638_v56 = vsel %vm4417_vm6, %v5819_v23, 0.0 }
 0x21c   : > { %v4575_v4 = vrot.slane %v4574_v37, 1  ;;  %v4668_v46 = vsel %vm4417_vm6, %v4654_v12, 0.0 }
 0x21d   : > { %v4604_v54 = vadd.f32 %v4603_v49, %v4602_v9  ;;  %v4639_v57 = vadd.f32 %v4638_v56, %v4637_v1  ;;  %v4667_v26 = vadd.f32 %v4666_v6, %v4665_v52 }
 0x21e   : > { %v4576_v63 = vadd.f32 %v4575_v4, %v4574_v37 }
 0x21f   : > { %v4605_v18 = vrot.slane %v4604_v54, 1  ;;  %v4640_v59 = vrot.slane %v4639_v57, 4  ;;  %v4669_v0 = vadd.f32 %v4668_v46, %v4667_v26 }
 0x220   : > { %v4577_v25 = vadd.f32 %v4576_v63, %v7101_v8 }
 0x221   : > { %v4606_v60 = vadd.f32 %v4605_v18, %v4604_v54  ;;  %v4641_v61 = vadd.f32 %v4640_v59, %v4639_v57  ;;  %v4670_v39 = vrot.slane %v4669_v0, 4 }
 0x223   : > { %v4607_v31 = vadd.f32 %v4606_v60, %v7103_v30  ;;  %v4642_v45 = vrot.slane %v4641_v61, 2  ;;  %v4671_v10 = vadd.f32 %v4670_v39, %v4669_v0 }
 0x225   : > { %v4643_v20 = vadd.f32 %v4642_v45, %v4641_v61  ;;  %v4672_v27 = vrot.slane %v4671_v10, 2 }
 0x227   : > { %v4644_v2 = vrot.slane %v4643_v20, 1  ;;  %v4673_v5 = vadd.f32 %v4672_v27, %v4671_v10 }
 0x229   : > { %v4645_v22 = vadd.f32 %v4644_v2, %v4643_v20  ;;  %v4674_v44 = vrot.slane %v4673_v5, 1 }
 0x22b   : > { %v4646_v8 = vadd.f32 %v4645_v22, %v4577_v25  ;;  %v4675_v19 = vadd.f32 %v4674_v44, %v4673_v5 }
 0x22d   : > { %v4676_v30 = vadd.f32 %v4675_v19, %v4607_v31  ;;  %4695 = vst.msk [vmem:[%s261_s11] sm:$0x1] %vm4694_vm7, %v4646_v8 }
 0x22f   : > { %4696 = vst.msk [vmem:[%s267_s14] sm:$0x1] %vm4694_vm7, %v4676_v30 }
 0x230 PF: > { %s15_s17 = sadd.s32 1, %s6197_s17   ;;  %s7195_s15 = smov %s6193_s16 }
 0x231   : > { %p12_p5 = scmp.ge.s32.totalorder %s15_s17, 4   ;;  %s7196_s16 = smov %s7198_s18 }
 0x233   :  { %14 = sbr.rel (!%p12_p5) target bundleno = 2 (0x2), region = 103 }

</bundles_post_ra>
